<compile_context>
chip_gen: v6e
topology: v6e:2x2x1
jax: 0.10.0
libtpu: 0.0.40
codegen_flags: <defaults>
</compile_context>

<pallas_src>
from functools import partial

import numpy as np
import jax
import jax.numpy as jnp
from jax import lax
from jax.experimental import pallas as pl
from jax.experimental.pallas import tpu as pltpu


def _round_up(x, mult):
    return ((x + mult - 1) // mult) * mult


def _batch_tile(batch):
    """Largest batch tile (multiple of 8, <=512) that still splits `batch`
    into >=2 grid steps (pipelining + v7x megacore); else the full batch."""
    for t in (512, 256, 128, 64, 32, 16, 8):
        if batch % t == 0 and batch // t >= 2:
            return t
    return batch


def _vmem_limit_bytes():
    """Per-generation scoped-VMEM budget (v5e/v6e: 128 MiB, v7x: 64 MiB
    physical) with headroom, instead of a flat constant."""
    try:
        cap = int(pltpu.get_tpu_info().vmem_capacity_bytes)
    except Exception:
        cap = 64 * 1024 * 1024
    return max(32 * 1024 * 1024, min((cap * 3) // 4, 96 * 1024 * 1024))


def _sum11(x):
    """Reduce a 2-D tile to (1,1): lane reduce, then sublane reduce."""
    return jnp.sum(jnp.sum(x, axis=1, keepdims=True), axis=0, keepdims=True)


# ----------------------------------------------------------------------------
# Fused kernel: classifier smoothed-CE + stand-in DML contrastive + DistLoss.
# Emits per-grid-step partial sums in sublane 0 of an (8,128) block:
#   lane 0            -> classifier CE partial sum
#   lane 1..n_dml     -> DML contrastive partial sums (one per extra branch)
#   lane 1+n_dml      -> DistLoss pairwise-distance partial sum
# ----------------------------------------------------------------------------
def _make_fused_kernel(num_classes, smooth, tile, n_dml, margins, eps_div):
    m = n_dml + 1
    on_val = np.float32(1.0 - smooth)
    off_val = np.float32(smooth / (num_classes - 1))

    def kernel(*refs):
        x_refs = refs[:m]                        # m x (TB, e) bf16 branch tiles
        y_ref = refs[m]                          # (TB, 1) int32 labels tile
        w1_ref, b1_ref, w2_ref, b2_ref = refs[m + 1:m + 5]
        xnT_refs = refs[m + 5:m + 5 + n_dml]     # (e, B) bf16 normalized^T (resident)
        y_row_ref = refs[m + 5 + n_dml]          # (1, B) int32 labels (resident)
        out_ref = refs[m + 6 + n_dml]            # (8, 128) f32 per-step partials

        i = pl.program_id(0)

        # Each branch tile is loaded from VMEM exactly once and reused below.
        x_tiles = [r[...] for r in x_refs]                     # bf16
        x_f32 = [t.astype(jnp.float32) for t in x_tiles]

        # --- 1) classifier: Linear -> ReLU -> Linear -> smoothed CE (LSE) ---
        h = jnp.dot(x_tiles[0], w1_ref[...],
                    preferred_element_type=jnp.float32) + b1_ref[...]
        h = jnp.maximum(h, 0.0)
        logits = jnp.dot(h.astype(jnp.bfloat16), w2_ref[...],
                         preferred_element_type=jnp.float32) + b2_ref[...]
        mx = jnp.max(logits, axis=-1, keepdims=True)
        lse = mx + jnp.log(jnp.sum(jnp.exp(logits - mx), axis=-1, keepdims=True))

        lab = y_ref[...]                                       # (TB, 1) int32
        cls = lax.broadcasted_iota(jnp.int32, logits.shape, 1)
        onehot = (cls == lab).astype(jnp.float32)
        valid = (cls < num_classes).astype(jnp.float32)        # mask lane padding
        ysm = onehot * on_val + (valid - onehot) * off_val
        parts = [_sum11(ysm * (lse - logits))]

        # --- 2) stand-in DML contrastive loss per extra branch --------------
        # TODO(synk): real dml_layers are external nn.Modules with unspecified
        #             semantics; this contrastive loss is a documented stand-in.
        if n_dml > 0:
            same = y_ref[...] == y_row_ref[...]                # (TB, B) bool
            row = lax.broadcasted_iota(jnp.int32, same.shape, 0) + i * tile
            col = lax.broadcasted_iota(jnp.int32, same.shape, 1)
            offd = row != col
            for j in range(n_dml):
                xr = x_f32[j + 1]
                xr_n = xr * lax.rsqrt(
                    jnp.sum(xr * xr, axis=-1, keepdims=True) + 1e-8)
                # plain (TB,e)@(e,B) on the MXU; rhs is the once-normalized,
                # pre-transposed resident operand (no per-step renorm/transpose)
                sim = jnp.dot(xr_n.astype(jnp.bfloat16), xnT_refs[j][...],
                              preferred_element_type=jnp.float32)
                d2 = jnp.maximum(2.0 - 2.0 * sim, 0.0)
                hng = jnp.maximum(margins[j] - jnp.sqrt(d2 + 1e-12), 0.0)
                pair = jnp.where(same, d2, hng * hng)          # 2 selects (VPU-lean)
                pair = jnp.where(offd, pair, 0.0)
                parts.append(_sum11(pair))

        # --- 3) DistLoss: sum of pairwise L2 distances over this tile -------
        dtot = jnp.zeros((1, 1), jnp.float32)
        for a in range(m):                                     # m small & static
            for b in range(a + 1, m):
                diff = x_f32[a] - x_f32[b] + eps_div           # torch eps semantics
                dtot = dtot + _sum11(
                    jnp.sqrt(jnp.sum(diff * diff, axis=-1, keepdims=True)))
        parts.append(dtot)

        # --- lane-indexed partial-sum block (sublane 0 carries the values) --
        sub = lax.broadcasted_iota(jnp.int32, (8, 128), 0)
        lane = lax.broadcasted_iota(jnp.int32, (8, 128), 1)
        acc = jnp.zeros((8, 128), jnp.float32)
        for k, p in enumerate(parts):
            acc = acc + jnp.where((sub == 0) & (lane == k), p, 0.0)
        out_ref[...] = acc

    return kernel


@partial(jax.jit, static_argnames=("num_classes", "smooth", "margins", "eps_div"))
def fused_wedl_losses(Xl, y, W1, b1, W2, b2, *, num_classes, smooth, margins,
                      eps_div=1e-6):
    """Returns (losses_dev: (m,) f32, loss_div_raw: scalar f32) on device."""
    m = len(Xl)
    assert m >= 2, "WEDL needs the classifier plus at least one dml branch"
    n_dml = m - 1
    batch, emb = Xl[0].shape
    hdim = W1.shape[1]
    cpad = W2.shape[1]
    tile = _batch_tile(batch)
    grid_steps = batch // tile

    # bf16 streamed operands: halves HBM->VMEM bytes; MXU consumes bf16 anyway.
    x_bf = [x.astype(jnp.bfloat16) for x in Xl]
    y_col = y.reshape(batch, 1).astype(jnp.int32)
    y_row = y.reshape(1, batch).astype(jnp.int32)

    # L2-normalize the Gram column operand ONCE (from the same bf16-cast data
    # the kernel sees), store pre-transposed (emb, B) bf16, resident in VMEM.
    xnT = []
    for j in range(1, m):
        xf = x_bf[j].astype(jnp.float32)
        xn = xf * lax.rsqrt(jnp.sum(xf * xf, axis=-1, keepdims=True) + 1e-8)
        xnT.append(jnp.transpose(xn).astype(jnp.bfloat16))

    stream_x = pl.BlockSpec((tile, emb), lambda i: (i, 0))
    stream_y = pl.BlockSpec((tile, 1), lambda i: (i, 0))

    def const(shape):
        return pl.BlockSpec(shape, lambda i: (0, 0))

    in_specs = (
        [stream_x] * m
        + [stream_y]
        + [const((emb, hdim)), const((1, hdim)),
           const((hdim, cpad)), const((1, cpad))]
        + [const((emb, batch))] * n_dml
        + [const((1, batch))]
    )

    partials = pl.pallas_call(
        _make_fused_kernel(num_classes, smooth, tile, n_dml, margins, eps_div),
        out_shape=jax.ShapeDtypeStruct((grid_steps * 8, 128), jnp.float32),
        grid=(grid_steps,),
        in_specs=in_specs,
        out_specs=pl.BlockSpec((8, 128), lambda i: (i, 0)),
        compiler_params=pltpu.CompilerParams(
            dimension_semantics=("parallel",),     # independent per-tile partials
            vmem_limit_bytes=_vmem_limit_bytes()),
    )(*x_bf, y_col, *([W1, b1, W2, b2]), *xnT, y_row)

    sums = jnp.sum(partials, axis=0)               # (128,) tiny wrapper reduce

    ce = sums[0] * (1.0 / batch)
    denom = float(max(batch * (batch - 1), 1))     # off-diagonal pair count
    dml = [sums[1 + j] * (1.0 / denom) for j in range(n_dml)]
    losses_dev = jnp.stack([ce] + dml)             # (m,)

    dist = sums[1 + n_dml] * (2.0 / (m * (m - 1)) / batch)
    loss_div_raw = jnp.maximum(2.0 - dist, 0.0)    # relu(2 - dist)
    return losses_dev, loss_div_raw


# ----------------------------------------------------------------------------
# Module glue
# ----------------------------------------------------------------------------
class StandInDMLLayer:
    """Config stand-in for an externally supplied dml_layers[i] nn.Module.
    The fused kernel implements a pairwise contrastive loss parameterised by
    this layer's margin (documented stand-in)."""
    def __init__(self, nb_classes, margin=0.5):
        self.nb_classes = nb_classes
        self.margin = margin


class WEDL:
    def __init__(self, dml_layers, params):
        self.train_classes = params["train_classes"]
        self.c = len(self.train_classes)
        assert self.c >= 2
        self.ext_dml_layers = list(dml_layers)          # classifier occupies slot 0
        self.m = len(self.ext_dml_layers) + 1
        self.margins = tuple(float(getattr(l, "margin", 0.5))
                             for l in self.ext_dml_layers)
        self.min_coeff2 = 1.0 / (4.0 * self.m)
        prior = np.asarray(params["prior"], dtype=np.float64)
        c0 = prior / np.sum(prior) - self.min_coeff2
        self.coeffs = jnp.asarray(np.sqrt(c0), dtype=jnp.float32)   # learnable (forward only)
        self.eta = params["eta"]
        self.lam = params["lam"]
        self.l_ma = np.zeros(self.m)
        self.smooth_factor = float(params["smooth_factor"])
        self.num_batch = 0

        d, h_dim = params["embed_dim"], params["h_dim"]
        assert h_dim > 0, "this port implements the h_dim > 0 classifier path"
        self.c_pad = _round_up(self.c, 128)             # lane-dense class dim
        # deterministic classifier init (synthetic weights, PyTorch-like scale);
        # weights stored as (in, out) so kernels compute X @ W + b, in bf16.
        k1, k2, k3, k4 = jax.random.split(jax.random.PRNGKey(42), 4)
        lim1, lim2 = 1.0 / np.sqrt(d), 1.0 / np.sqrt(h_dim)
        self.W1 = jax.random.uniform(k1, (d, h_dim), jnp.float32, -lim1, lim1).astype(jnp.bfloat16)
        self.b1 = jax.random.uniform(k2, (1, h_dim), jnp.float32, -lim1, lim1)
        w2 = jax.random.uniform(k3, (h_dim, self.c), jnp.float32, -lim2, lim2)
        b2 = jax.random.uniform(k4, (1, self.c), jnp.float32, -lim2, lim2)
        self.W2 = jnp.zeros((h_dim, self.c_pad), jnp.float32).at[:, :self.c].set(w2).astype(jnp.bfloat16)
        # padded columns get a finite -1e9 bias (NOT -inf: ysm==0 there, and
        # 0 * 1e9 is safe while 0 * inf would be NaN).
        self.b2 = jnp.full((1, self.c_pad), -1e9, jnp.float32).at[:, :self.c].set(b2)

    def forward(self, X, Xl, X_fea, y):
        # (X and X_fea are unused by the original WEDL.forward as well.)
        m = self.m
        coeff2 = self.coeffs ** 2
        err_coeff2 = jnp.sum(coeff2) + m * self.min_coeff2 - 1.0

        # single fused kernel: all m branch losses + diversity term
        losses_dev, loss_div_raw = fused_wedl_losses(
            Xl, y, self.W1, self.b1, self.W2, self.b2,
            num_classes=self.c, smooth=self.smooth_factor, margins=self.margins)
        loss_div = self.lam * loss_div_raw

        # host bookkeeping (mirrors .item() + numpy running means): ONE transfer
        losses = np.asarray(jax.device_get(losses_dev), dtype=np.float64)
        for i in range(m):
            self.l_ma[i] = (losses[i] + self.num_batch * self.l_ma[i]) / (self.num_batch + 1)
        self.num_batch += 1
        l_mean = float(np.mean(self.l_ma))

        # guard the divide (a branch loss that is exactly 0 would otherwise
        # produce inf, inherited from the PyTorch logic)
        l_ma_safe = np.where(self.l_ma == 0.0, 1e-12, self.l_ma)
        w_host = jnp.asarray(l_mean / l_ma_safe, dtype=jnp.float32)     # (m,)

        final_loss = jnp.sum((coeff2 + self.min_coeff2) * w_host * losses_dev)
        final_loss = final_loss + loss_div
        total = final_loss + 100.0 * self.eta * err_coeff2 ** 2
        weights = np.asarray(jax.device_get(coeff2)) + self.min_coeff2
        return total, losses, weights, loss_div


# ----------------------------------------------------------------------------
if __name__ == "__main__":
    # Small, deterministic synthetic setup: batch 256 -> tile 128, 2 parallel
    # grid steps (both v7x TensorCores usable), classifier + 1 dml branch.
    B, EMB, H_DIM, N_CLASSES = 256, 32, 64, 8

    params = {
        "train_classes": list(range(N_CLASSES)),
        "prior": np.array([0.6, 0.4]),   # classifier + 1 dml layer -> m = 2
        "eta": 0.01,
        "lam": 0.1,
        "smooth_factor": 0.1,
        "embed_dim": EMB,
        "h_dim": H_DIM,
    }
    dml_layers = [StandInDMLLayer(N_CLASSES)]
    wedl = WEDL(dml_layers, params)

    key = jax.random.PRNGKey(0)
    k0, k1, kf, ky = jax.random.split(key, 4)
    Xl = [jax.random.normal(k0, (B, EMB), jnp.float32),    # branch 0 -> classifier
          jax.random.normal(k1, (B, EMB), jnp.float32)]    # branch 1 -> dml layer
    X = Xl[0]                                              # unused by forward (matches spec)
    X_fea = jax.random.normal(kf, (B, EMB), jnp.float32)   # unused by forward (matches spec)
    y = jax.random.randint(ky, (B,), 0, N_CLASSES, dtype=jnp.int32)

    total, losses, weights, loss_div = wedl.forward(X, Xl, X_fea, y)
    jax.block_until_ready(total)

    assert np.isfinite(float(total))
    assert np.all(np.isfinite(losses))
    assert np.isfinite(float(loss_div))
    assert np.isclose(np.sum(weights), 1.0, atol=1e-5)     # err_coeff2 == 0 at init
    print("KERNEL_OK")
</pallas_src>

<mosaic_0001>
module attributes {stable_mosaic.version = 11 : i64} {
  func.func @kernel(%arg0: i32, %arg1: memref<128x32xbf16, #tpu.memory_space<vmem>>, %arg2: memref<128x32xbf16, #tpu.memory_space<vmem>>, %arg3: memref<128x1xi32, #tpu.memory_space<vmem>>, %arg4: memref<32x64xbf16, #tpu.memory_space<vmem>>, %arg5: memref<1x64xf32, #tpu.memory_space<vmem>>, %arg6: memref<64x128xbf16, #tpu.memory_space<vmem>>, %arg7: memref<1x128xf32, #tpu.memory_space<vmem>>, %arg8: memref<32x256xbf16, #tpu.memory_space<vmem>>, %arg9: memref<1x256xi32, #tpu.memory_space<vmem>>, %arg10: memref<8x128xf32, #tpu.memory_space<vmem>>) attributes {dimension_semantics = [#tpu.dimension_semantics<parallel>], iteration_bounds = array<i64: 2>, scalar_prefetch = 0 : i64, scratch_operands = 0 : i64, tpu.core_type = #tpu.core_type<tc>, window_params = [{transform_indices = @transform_0, window_bounds = array<i64: 128, 32>}, {transform_indices = @transform_1, window_bounds = array<i64: 128, 32>}, {transform_indices = @transform_2, window_bounds = array<i64: 128, 1>}, {pipeline_mode = #tpu.pipeline_mode<synchronous>, transform_indices = @transform_3, window_bounds = array<i64: 32, 64>}, {pipeline_mode = #tpu.pipeline_mode<synchronous>, transform_indices = @transform_4, window_bounds = array<i64: 1, 64>}, {pipeline_mode = #tpu.pipeline_mode<synchronous>, transform_indices = @transform_5, window_bounds = array<i64: 64, 128>}, {pipeline_mode = #tpu.pipeline_mode<synchronous>, transform_indices = @transform_6, window_bounds = array<i64: 1, 128>}, {pipeline_mode = #tpu.pipeline_mode<synchronous>, transform_indices = @transform_7, window_bounds = array<i64: 32, 256>}, {pipeline_mode = #tpu.pipeline_mode<synchronous>, transform_indices = @transform_8, window_bounds = array<i64: 1, 256>}, {transform_indices = @transform_9, window_bounds = array<i64: 8, 128>}]} {
    %c0 = arith.constant 0 : index
    %c0_0 = arith.constant 0 : index
    %0 = vector.load %arg1[%c0, %c0_0] : memref<128x32xbf16, #tpu.memory_space<vmem>>, vector<128x32xbf16>
    %c0_1 = arith.constant 0 : index
    %c0_2 = arith.constant 0 : index
    %1 = vector.load %arg2[%c0_1, %c0_2] : memref<128x32xbf16, #tpu.memory_space<vmem>>, vector<128x32xbf16>
    %2 = arith.extf %0 : vector<128x32xbf16> to vector<128x32xf32>
    %3 = arith.extf %1 : vector<128x32xbf16> to vector<128x32xf32>
    %c0_3 = arith.constant 0 : index
    %c0_4 = arith.constant 0 : index
    %4 = vector.load %arg4[%c0_3, %c0_4] : memref<32x64xbf16, #tpu.memory_space<vmem>>, vector<32x64xbf16>
    %cst = arith.constant dense<0.000000e+00> : vector<128x64xf32>
    %5 = tpu.matmul %0, %4, %cst {dimension_numbers = #tpu.dot_dimension_numbers<[1], [0], [0], [1], [0, 0, 1, 1], [], []>} : vector<128x32xbf16>, vector<32x64xbf16>, vector<128x64xf32> -> vector<128x64xf32>
    %c0_5 = arith.constant 0 : index
    %c0_6 = arith.constant 0 : index
    %6 = vector.load %arg5[%c0_5, %c0_6] : memref<1x64xf32, #tpu.memory_space<vmem>>, vector<1x64xf32>
    %7 = vector.broadcast %6 : vector<1x64xf32> to vector<128x64xf32>
    %8 = arith.addf %5, %7 : vector<128x64xf32>
    %cst_7 = arith.constant 0.000000e+00 : f32
    %9 = vector.broadcast %cst_7 : f32 to vector<128x64xf32>
    %10 = arith.maximumf %8, %9 : vector<128x64xf32>
    %11 = arith.truncf %10 : vector<128x64xf32> to vector<128x64xbf16>
    %c0_8 = arith.constant 0 : index
    %c0_9 = arith.constant 0 : index
    %12 = vector.load %arg6[%c0_8, %c0_9] : memref<64x128xbf16, #tpu.memory_space<vmem>>, vector<64x128xbf16>
    %cst_10 = arith.constant dense<0.000000e+00> : vector<128x128xf32>
    %13 = tpu.matmul %11, %12, %cst_10 {dimension_numbers = #tpu.dot_dimension_numbers<[1], [0], [0], [1], [0, 0, 1, 1], [], []>} : vector<128x64xbf16>, vector<64x128xbf16>, vector<128x128xf32> -> vector<128x128xf32>
    %c0_11 = arith.constant 0 : index
    %c0_12 = arith.constant 0 : index
    %14 = vector.load %arg7[%c0_11, %c0_12] : memref<1x128xf32, #tpu.memory_space<vmem>>, vector<1x128xf32>
    %15 = vector.broadcast %14 : vector<1x128xf32> to vector<128x128xf32>
    %16 = arith.addf %13, %15 : vector<128x128xf32>
    %cst_13 = arith.constant dense<0xFF800000> : vector<128xf32>
    %17 = vector.multi_reduction <maximumf>, %16, %cst_13 [1] : vector<128x128xf32> to vector<128xf32>
    %18 = vector.shape_cast %17 : vector<128xf32> to vector<128x1xf32>
    %19 = vector.broadcast %18 : vector<128x1xf32> to vector<128x128xf32>
    %20 = arith.subf %16, %19 : vector<128x128xf32>
    %21 = math.exp %20 : vector<128x128xf32>
    %cst_14 = arith.constant dense<0.000000e+00> : vector<128xf32>
    %22 = vector.multi_reduction <add>, %21, %cst_14 [1] : vector<128x128xf32> to vector<128xf32>
    %23 = vector.shape_cast %22 : vector<128xf32> to vector<128x1xf32>
    %24 = math.log %23 : vector<128x1xf32>
    %25 = arith.addf %18, %24 : vector<128x1xf32>
    %c0_15 = arith.constant 0 : index
    %c0_16 = arith.constant 0 : index
    %26 = vector.load %arg3[%c0_15, %c0_16] : memref<128x1xi32, #tpu.memory_space<vmem>>, vector<128x1xi32>
    %27 = tpu.iota {dimensions = array<i32: 1>} : vector<128x128xi32>
    %28 = vector.broadcast %26 : vector<128x1xi32> to vector<128x128xi32>
    %29 = arith.cmpi eq, %27, %28 : vector<128x128xi32>
    %30 = arith.extui %29 : vector<128x128xi1> to vector<128x128xi32>
    %31 = arith.sitofp %30 : vector<128x128xi32> to vector<128x128xf32>
    %c8_i32 = arith.constant 8 : i32
    %32 = vector.broadcast %c8_i32 : i32 to vector<128x128xi32>
    %33 = arith.cmpi slt, %27, %32 : vector<128x128xi32>
    %34 = arith.extui %33 : vector<128x128xi1> to vector<128x128xi32>
    %35 = arith.sitofp %34 : vector<128x128xi32> to vector<128x128xf32>
    %cst_17 = arith.constant 0.899999976 : f32
    %36 = vector.broadcast %cst_17 : f32 to vector<128x128xf32>
    %37 = arith.mulf %31, %36 : vector<128x128xf32>
    %38 = arith.subf %35, %31 : vector<128x128xf32>
    %cst_18 = arith.constant 0.0142857144 : f32
    %39 = vector.broadcast %cst_18 : f32 to vector<128x128xf32>
    %40 = arith.mulf %38, %39 : vector<128x128xf32>
    %41 = arith.addf %37, %40 : vector<128x128xf32>
    %42 = vector.broadcast %25 : vector<128x1xf32> to vector<128x128xf32>
    %43 = arith.subf %42, %16 : vector<128x128xf32>
    %44 = arith.mulf %41, %43 : vector<128x128xf32>
    %cst_19 = arith.constant dense<0.000000e+00> : vector<128xf32>
    %45 = vector.multi_reduction <add>, %44, %cst_19 [1] : vector<128x128xf32> to vector<128xf32>
    %46 = vector.shape_cast %45 : vector<128xf32> to vector<128x1xf32>
    %cst_20 = arith.constant dense<0.000000e+00> : vector<1xf32>
    %47 = vector.multi_reduction <add>, %46, %cst_20 [0] : vector<128x1xf32> to vector<1xf32>
    %48 = vector.shape_cast %47 : vector<1xf32> to vector<1x1xf32>
    %c0_21 = arith.constant 0 : index
    %c0_22 = arith.constant 0 : index
    %49 = vector.load %arg3[%c0_21, %c0_22] : memref<128x1xi32, #tpu.memory_space<vmem>>, vector<128x1xi32>
    %c0_23 = arith.constant 0 : index
    %c0_24 = arith.constant 0 : index
    %50 = vector.load %arg9[%c0_23, %c0_24] : memref<1x256xi32, #tpu.memory_space<vmem>>, vector<1x256xi32>
    %51 = vector.broadcast %49 : vector<128x1xi32> to vector<128x256xi32>
    %52 = vector.broadcast %50 : vector<1x256xi32> to vector<128x256xi32>
    %53 = arith.cmpi eq, %51, %52 : vector<128x256xi32>
    %54 = tpu.iota {dimensions = array<i32: 0>} : vector<128x256xi32>
    %c128_i32 = arith.constant 128 : i32
    %55 = arith.muli %arg0, %c128_i32 : i32
    %56 = vector.broadcast %55 : i32 to vector<128x256xi32>
    %57 = arith.addi %54, %56 : vector<128x256xi32>
    %58 = tpu.iota {dimensions = array<i32: 1>} : vector<128x256xi32>
    %59 = arith.cmpi ne, %57, %58 : vector<128x256xi32>
    %60 = arith.mulf %3, %3 : vector<128x32xf32>
    %cst_25 = arith.constant dense<0.000000e+00> : vector<128xf32>
    %61 = vector.multi_reduction <add>, %60, %cst_25 [1] : vector<128x32xf32> to vector<128xf32>
    %62 = vector.shape_cast %61 : vector<128xf32> to vector<128x1xf32>
    %cst_26 = arith.constant 9.99999993E-9 : f32
    %63 = vector.broadcast %cst_26 : f32 to vector<128x1xf32>
    %64 = arith.addf %62, %63 : vector<128x1xf32>
    %65 = math.rsqrt %64 : vector<128x1xf32>
    %66 = vector.broadcast %65 : vector<128x1xf32> to vector<128x32xf32>
    %67 = arith.mulf %3, %66 : vector<128x32xf32>
    %68 = arith.truncf %67 : vector<128x32xf32> to vector<128x32xbf16>
    %c0_27 = arith.constant 0 : index
    %c0_28 = arith.constant 0 : index
    %69 = vector.load %arg8[%c0_27, %c0_28] : memref<32x256xbf16, #tpu.memory_space<vmem>>, vector<32x256xbf16>
    %cst_29 = arith.constant dense<0.000000e+00> : vector<128x256xf32>
    %70 = tpu.matmul %68, %69, %cst_29 {dimension_numbers = #tpu.dot_dimension_numbers<[1], [0], [0], [1], [0, 0, 1, 1], [], []>} : vector<128x32xbf16>, vector<32x256xbf16>, vector<128x256xf32> -> vector<128x256xf32>
    %cst_30 = arith.constant 2.000000e+00 : f32
    %71 = vector.broadcast %cst_30 : f32 to vector<128x256xf32>
    %72 = arith.mulf %71, %70 : vector<128x256xf32>
    %cst_31 = arith.constant 2.000000e+00 : f32
    %73 = vector.broadcast %cst_31 : f32 to vector<128x256xf32>
    %74 = arith.subf %73, %72 : vector<128x256xf32>
    %cst_32 = arith.constant 0.000000e+00 : f32
    %75 = vector.broadcast %cst_32 : f32 to vector<128x256xf32>
    %76 = arith.maximumf %74, %75 : vector<128x256xf32>
    %cst_33 = arith.constant 9.99999996E-13 : f32
    %77 = vector.broadcast %cst_33 : f32 to vector<128x256xf32>
    %78 = arith.addf %76, %77 : vector<128x256xf32>
    %79 = math.sqrt %78 : vector<128x256xf32>
    %cst_34 = arith.constant 5.000000e-01 : f32
    %80 = vector.broadcast %cst_34 : f32 to vector<128x256xf32>
    %81 = arith.subf %80, %79 : vector<128x256xf32>
    %cst_35 = arith.constant 0.000000e+00 : f32
    %82 = vector.broadcast %cst_35 : f32 to vector<128x256xf32>
    %83 = arith.maximumf %81, %82 : vector<128x256xf32>
    %84 = arith.mulf %83, %83 : vector<128x256xf32>
    %85 = arith.select %53, %76, %84 : vector<128x256xi1>, vector<128x256xf32>
    %cst_36 = arith.constant 0.000000e+00 : f32
    %86 = vector.broadcast %cst_36 : f32 to vector<128x256xf32>
    %87 = arith.select %59, %85, %86 : vector<128x256xi1>, vector<128x256xf32>
    %cst_37 = arith.constant dense<0.000000e+00> : vector<128xf32>
    %88 = vector.multi_reduction <add>, %87, %cst_37 [1] : vector<128x256xf32> to vector<128xf32>
    %89 = vector.shape_cast %88 : vector<128xf32> to vector<128x1xf32>
    %cst_38 = arith.constant dense<0.000000e+00> : vector<1xf32>
    %90 = vector.multi_reduction <add>, %89, %cst_38 [0] : vector<128x1xf32> to vector<1xf32>
    %91 = vector.shape_cast %90 : vector<1xf32> to vector<1x1xf32>
    %cst_39 = arith.constant 0.000000e+00 : f32
    %92 = vector.broadcast %cst_39 : f32 to vector<1x1xf32>
    %93 = arith.subf %2, %3 : vector<128x32xf32>
    %cst_40 = arith.constant 9.99999997E-7 : f32
    %94 = vector.broadcast %cst_40 : f32 to vector<128x32xf32>
    %95 = arith.addf %93, %94 : vector<128x32xf32>
    %96 = arith.mulf %95, %95 : vector<128x32xf32>
    %cst_41 = arith.constant dense<0.000000e+00> : vector<128xf32>
    %97 = vector.multi_reduction <add>, %96, %cst_41 [1] : vector<128x32xf32> to vector<128xf32>
    %98 = vector.shape_cast %97 : vector<128xf32> to vector<128x1xf32>
    %99 = math.sqrt %98 : vector<128x1xf32>
    %cst_42 = arith.constant dense<0.000000e+00> : vector<128xf32>
    %100 = vector.multi_reduction <add>, %99, %cst_42 [1] : vector<128x1xf32> to vector<128xf32>
    %101 = vector.shape_cast %100 : vector<128xf32> to vector<128x1xf32>
    %cst_43 = arith.constant dense<0.000000e+00> : vector<1xf32>
    %102 = vector.multi_reduction <add>, %101, %cst_43 [0] : vector<128x1xf32> to vector<1xf32>
    %103 = vector.shape_cast %102 : vector<1xf32> to vector<1x1xf32>
    %104 = arith.addf %92, %103 : vector<1x1xf32>
    %105 = tpu.iota {dimensions = array<i32: 0>} : vector<8x128xi32>
    %106 = tpu.iota {dimensions = array<i32: 1>} : vector<8x128xi32>
    %cst_44 = arith.constant 0.000000e+00 : f32
    %107 = vector.broadcast %cst_44 : f32 to vector<8x128xf32>
    %c0_i32 = arith.constant 0 : i32
    %108 = vector.broadcast %c0_i32 : i32 to vector<8x128xi32>
    %109 = arith.cmpi eq, %105, %108 : vector<8x128xi32>
    %c0_i32_45 = arith.constant 0 : i32
    %110 = vector.broadcast %c0_i32_45 : i32 to vector<8x128xi32>
    %111 = arith.cmpi eq, %106, %110 : vector<8x128xi32>
    %112 = arith.andi %109, %111 : vector<8x128xi1>
    %cst_46 = arith.constant 0.000000e+00 : f32
    %113 = vector.shape_cast %48 : vector<1x1xf32> to vector<1x1xf32>
    %114 = vector.broadcast %113 : vector<1x1xf32> to vector<8x128xf32>
    %115 = vector.broadcast %cst_46 : f32 to vector<8x128xf32>
    %116 = arith.select %112, %114, %115 : vector<8x128xi1>, vector<8x128xf32>
    %117 = arith.addf %107, %116 : vector<8x128xf32>
    %c0_i32_47 = arith.constant 0 : i32
    %118 = vector.broadcast %c0_i32_47 : i32 to vector<8x128xi32>
    %119 = arith.cmpi eq, %105, %118 : vector<8x128xi32>
    %c1_i32 = arith.constant 1 : i32
    %120 = vector.broadcast %c1_i32 : i32 to vector<8x128xi32>
    %121 = arith.cmpi eq, %106, %120 : vector<8x128xi32>
    %122 = arith.andi %119, %121 : vector<8x128xi1>
    %cst_48 = arith.constant 0.000000e+00 : f32
    %123 = vector.shape_cast %91 : vector<1x1xf32> to vector<1x1xf32>
    %124 = vector.broadcast %123 : vector<1x1xf32> to vector<8x128xf32>
    %125 = vector.broadcast %cst_48 : f32 to vector<8x128xf32>
    %126 = arith.select %122, %124, %125 : vector<8x128xi1>, vector<8x128xf32>
    %127 = arith.addf %117, %126 : vector<8x128xf32>
    %c0_i32_49 = arith.constant 0 : i32
    %128 = vector.broadcast %c0_i32_49 : i32 to vector<8x128xi32>
    %129 = arith.cmpi eq, %105, %128 : vector<8x128xi32>
    %c2_i32 = arith.constant 2 : i32
    %130 = vector.broadcast %c2_i32 : i32 to vector<8x128xi32>
    %131 = arith.cmpi eq, %106, %130 : vector<8x128xi32>
    %132 = arith.andi %129, %131 : vector<8x128xi1>
    %cst_50 = arith.constant 0.000000e+00 : f32
    %133 = vector.shape_cast %104 : vector<1x1xf32> to vector<1x1xf32>
    %134 = vector.broadcast %133 : vector<1x1xf32> to vector<8x128xf32>
    %135 = vector.broadcast %cst_50 : f32 to vector<8x128xf32>
    %136 = arith.select %132, %134, %135 : vector<8x128xi1>, vector<8x128xf32>
    %137 = arith.addf %127, %136 : vector<8x128xf32>
    %c0_51 = arith.constant 0 : index
    %c0_52 = arith.constant 0 : index
    %138 = vector.load %arg10[%c0_51, %c0_52] : memref<8x128xf32, #tpu.memory_space<vmem>>, vector<8x128xf32>
    tpu.vector_store %arg10[%c0_51, %c0_52], %137 {strides = array<i32>} : memref<8x128xf32, #tpu.memory_space<vmem>>, vector<8x128xf32>,
    return
  }
  func.func @transform_0(%arg0: i32) -> (i32, i32) {
    %c0_i32 = arith.constant 0 : i32
    %c0_i32_0 = arith.constant 0 : i32
    return %arg0, %c0_i32 : i32, i32
  }
  func.func @transform_1(%arg0: i32) -> (i32, i32) {
    %c0_i32 = arith.constant 0 : i32
    %c0_i32_0 = arith.constant 0 : i32
    return %arg0, %c0_i32 : i32, i32
  }
  func.func @transform_2(%arg0: i32) -> (i32, i32) {
    %c0_i32 = arith.constant 0 : i32
    %c0_i32_0 = arith.constant 0 : i32
    return %arg0, %c0_i32 : i32, i32
  }
  func.func @transform_3(%arg0: i32) -> (i32, i32) {
    %c0_i32 = arith.constant 0 : i32
    %c0_i32_0 = arith.constant 0 : i32
    %c0_i32_1 = arith.constant 0 : i32
    return %c0_i32, %c0_i32_0 : i32, i32
  }
  func.func @transform_4(%arg0: i32) -> (i32, i32) {
    %c0_i32 = arith.constant 0 : i32
    %c0_i32_0 = arith.constant 0 : i32
    %c0_i32_1 = arith.constant 0 : i32
    return %c0_i32, %c0_i32_0 : i32, i32
  }
  func.func @transform_5(%arg0: i32) -> (i32, i32) {
    %c0_i32 = arith.constant 0 : i32
    %c0_i32_0 = arith.constant 0 : i32
    %c0_i32_1 = arith.constant 0 : i32
    return %c0_i32, %c0_i32_0 : i32, i32
  }
  func.func @transform_6(%arg0: i32) -> (i32, i32) {
    %c0_i32 = arith.constant 0 : i32
    %c0_i32_0 = arith.constant 0 : i32
    %c0_i32_1 = arith.constant 0 : i32
    return %c0_i32, %c0_i32_0 : i32, i32
  }
  func.func @transform_7(%arg0: i32) -> (i32, i32) {
    %c0_i32 = arith.constant 0 : i32
    %c0_i32_0 = arith.constant 0 : i32
    %c0_i32_1 = arith.constant 0 : i32
    return %c0_i32, %c0_i32_0 : i32, i32
  }
  func.func @transform_8(%arg0: i32) -> (i32, i32) {
    %c0_i32 = arith.constant 0 : i32
    %c0_i32_0 = arith.constant 0 : i32
    %c0_i32_1 = arith.constant 0 : i32
    return %c0_i32, %c0_i32_0 : i32, i32
  }
  func.func @transform_9(%arg0: i32) -> (i32, i32) {
    %c0_i32 = arith.constant 0 : i32
    %c0_i32_0 = arith.constant 0 : i32
    return %arg0, %c0_i32 : i32, i32
  }
}

</mosaic_0001>

<bundles_post_ra>
// kernel: fused_wedl_losses.1
= control target key start
LH: loop header
LB: loop body
LE: loop exit
PB: predicated region body
PF: predicated region fallthrough
CT: control target
= control target key end

     0   :  { %s3026_s30 = smov 0   ;;  %s4739_s0 = inlined_call_operand.vmem [shape: bf16[256,32], index: 0, kind: input, shape index: {}]   ;;  %s4740_s1 = inlined_call_operand.vmem [shape: bf16[256,32], index: 1, kind: input, shape index: {}]   ;;  %s4741_s2 = inlined_call_operand.vmem [shape: s32[256,1], index: 2, kind: input, shape index: {}]   ;;  %s4742_s3 = inlined_call_operand.vmem [shape: bf16[32,64], index: 3, kind: input, shape index: {}]   ;;  %s4743_s4 = inlined_call_operand.vmem [shape: f32[1,64], index: 4, kind: input, shape index: {}]   ;;  %s4744_s5 = inlined_call_operand.vmem [shape: bf16[64,128], index: 5, kind: input, shape index: {}]   ;;  %s4745_s6 = inlined_call_operand.vmem [shape: f32[1,128], index: 6, kind: input, shape index: {}]   ;;  %s4746_s7 = inlined_call_operand.vmem [shape: bf16[32,256], index: 7, kind: input, shape index: {}]   ;;  %s4747_s8 = inlined_call_operand.vmem [shape: s32[1,256], index: 8, kind: input, shape index: {}]   ;;  %s4748_s9 = inlined_call_operand.vmem [shape: f32[16,128], index: 9, kind: output, shape index: {}]  }
   0x1 LB: > { %s3032_s10 = sadd.s32 4294967295, %s2972_s30   ;;  %p2550_p0 = scmp.ge.s32.totalorder %s2972_s30, 1  ;;  %s2972_s30 = sphi %s3026_s30, %s19_s30  }
   0x2   : > { %p310_p1 = scmp.lt.s32.totalorder %s2972_s30, 3 }
   0x4   : > { %p311_p2 = pnand %p2550_p0, %p310_p1 }
   0x6   : > { %314 = sbr.rel (%p311_p2) target bundleno = 956 (0x3bc), region = 56 }
   0xb   : > { %v2739_v0 = vld [vmem:[%s4742_s3 + $0x8] sm:$0xff]   ;;  %s2551_s13 = sshll.u32 %s3032_s10, 4  ;;  %v2740_v1 = vld [vmem:[%s4742_s3] sm:$0xff]   ;;  %v2749_v2 = vld [vmem:[%s4744_s5 + $0x18] sm:$0xff]   ;;  %vm505_vm0 = vcmask 261120   ;;  %vm690_vm1 = vcmask 523264  }
   0xc   : > { %p356_p3 = scmp.lt.s32.totalorder %s2551_s13, 31  ;;  %2683 = vmatprep.subr.bf16.mxu1 %v2739_v0  ;;  %v2750_v7 = vld [vmem:[%s4744_s5 + $0x10] sm:$0xff]   ;;  %v2751_v52 = vld [vmem:[%s4744_s5 + $0x8] sm:$0xff]   ;;  %s2607_s29 = sshll.u32 %s3032_s10, 7 }
   0xd   : > { %2684 = vmatpush3.bf16.msra.mxu1 %v2739_v0  ;;  %p373_p4 = scmp.lt.s32.totalorder %s3032_s10, 1 }
   0xe   : > { %s5003_s13 = smov (!%p356_p3, %s2551_s13), 31  ;;  %2685 = vmatprep.subr.bf16.mxu1 %v2740_v1 }
   0xf   : > { %s2552_s18 = sshll.u32 %s5003_s13, 2  ;;  %s2556_s22 = sshll.u32 %s5003_s13, 3 }
  0x10   : > { %s3052_s21 = scalar_lea.vmem %s4739_s0, %s2552_s18  ;;  %s3057_s24 = scalar_lea.vmem %s4740_s1, %s2552_s18 }
  0x11   : > { %2686 = vmatpush3.bf16.msra.mxu1 %v2740_v1  ;;  %v3060_v3 = vld [vmem:[%s3052_s21] sm:$0xff]   ;;  %v380_v4 = vld [vmem:[%s3052_s21 + $0x8] sm:$0xff]   ;;  %v382_v5 = vld [vmem:[%s3052_s21 + $0x10] sm:$0xff]   ;;  %s3194_s25 = scalar_lea.vmem %s4741_s2, %s2556_s22  ;;  %s5005_s10 = smov (!%p373_p4, %s3032_s10), 1 }
  0x12   : > { %2703 = vmatprep.subr.bf16.mxu1 %v2749_v2  ;;  %v2623_v6 = vld [vmem:[%s3057_s24] sm:$0xff]   ;;  %2687 = vmatprep.mubr.msk.bf16.mxu1 %vm505_vm0, %v3060_v3  ;;  %v2654_v10 = vld [vmem:[%s3057_s24 + $0x8] sm:$0xff]   ;;  %v2655_v11 = vld [vmem:[%s3057_s24 + $0x10] sm:$0xff]  }
  0x13   : > { %v3070_v8 = vunpack.c.l.bf16 %v2623_v6  ;;  %v3072_v9 = vunpack.c.h.bf16 %v2623_v6  ;;  %v3077_v12 = vunpack.c.l.bf16 %v2654_v10  ;;  %v3079_v13 = vunpack.c.h.bf16 %v2654_v10  ;;  %v384_v14 = vld [vmem:[%s3052_s21 + $0x18] sm:$0xff]   ;;  %v386_v18 = vld [vmem:[%s3052_s21 + $0x20] sm:$0xff]   ;;  %v388_v32 = vld [vmem:[%s3052_s21 + $0x28] sm:$0xff]  }
  0x14   : > { %2688 = vmatmul.mubr.msk.bf16.vlgmr.msra.gmra.mxu1 %vm505_vm0, %v380_v4  ;;  %v3087_v17 = vunpack.c.l.bf16 %v2655_v11  ;;  %v3094_v21 = vunpack.c.h.bf16 %v2655_v11  ;;  %v2656_v22 = vld [vmem:[%s3057_s24 + $0x18] sm:$0xff]   ;;  %v2657_v31 = vld [vmem:[%s3057_s24 + $0x20] sm:$0xff]   ;;  %v390_v36 = vld [vmem:[%s3052_s21 + $0x30] sm:$0xff]  }
  0x15   : > { %4831 = vst [vmem:[#allocation2_spill] sm:$0xff] %v3072_v9  ;;  %4832 = vst [vmem:[#allocation3_spill] sm:$0xff] %v3077_v12  ;;  %2691 = vmatprep.mubr.msk.bf16.mxu1 %vm505_vm0, %v382_v5  ;;  %v1347_v15 = vmul.f32 %v3070_v8, %v3070_v8  ;;  %v1348_v16 = vmul.f32 %v3072_v9, %v3072_v9  ;;  %2704 = vmatpush3.bf16.msra.mxu1 %v2749_v2  ;;  %v3102_v27 = vunpack.c.l.bf16 %v2656_v22  ;;  %v2658_v44 = vld [vmem:[%s3057_s24 + $0x28] sm:$0xff]   ;;  %v392_v45 = vld [vmem:[%s3052_s21 + $0x38] sm:$0xff]  }
  0x16   : > { %4833 = vst [vmem:[#allocation4_spill] sm:$0xff] %v3087_v17  ;;  %v1349_v19 = vmul.f32 %v3077_v12, %v3077_v12  ;;  %v1350_v20 = vmul.f32 %v3079_v13, %v3079_v13  ;;  %2705 = vmatprep.subr.bf16.mxu1 %v2750_v7  ;;  %v1351_v26 = vmul.f32 %v3087_v17, %v3087_v17  ;;  %v3107_v30 = vunpack.c.h.bf16 %v2656_v22  ;;  %v2659_v53 = vld [vmem:[%s3057_s24 + $0x30] sm:$0xff]   ;;  %v2660_v62 = vld [vmem:[%s3057_s24 + $0x38] sm:$0xff]   ;;  %v2752_v10 = vld [vmem:[%s4744_s5] sm:$0xff]  }
  0x17   : > { %v1363_v23 = vsel %vm505_vm0, %v1347_v15, 0.0  ;;  %v1366_v25 = vsel %vm505_vm0, %v1348_v16, 0.0  ;;  %4834 = vst [vmem:[#allocation5_spill] sm:$0xff] %v3102_v27  ;;  %v1352_v29 = vmul.f32 %v3094_v21, %v3094_v21  ;;  %v1353_v34 = vmul.f32 %v3102_v27, %v3102_v27  ;;  %v2753_v4 = vld [vmem:[%s4746_s7 + $0x14] ss:$8 sps:$4 sm:$0xff]   ;;  %v973_v16 = vld [vmem:[%s3194_s25 + $0x8] sm:$0xff] }
  0x18   : > { %1364 = vadd.xlane.f32.xlu0 %v1363_v23  ;;  %v1369_v24 = vsel %vm505_vm0, %v1349_v19, 0.0  ;;  %v1372_v28 = vsel %vm505_vm0, %v1350_v20, 0.0  ;;  %v1375_v33 = vsel %vm505_vm0, %v1351_v26, 0.0  ;;  %v3116_v35 = vunpack.c.l.bf16 %v2657_v31  ;;  %1527 = vmatprep.subr.bf16.mxu0 %v2753_v4  ;;  %v2756_v11 = vld [vmem:[%s4746_s7 + $0x4] ss:$8 sps:$4 sm:$0xff]   ;;  %v975_v22 = vld [vmem:[%s3194_s25 + $0x18] sm:$0xff] }
  0x19   : > { %1370 = vadd.xlane.f32.xlu1 %v1369_v24  ;;  %2706 = vmatpush3.bf16.msra.mxu1 %v2750_v7  ;;  %v1378_v37 = vsel %vm505_vm0, %v1352_v29, 0.0  ;;  %v1354_v38 = vmul.f32 %v3107_v30, %v3107_v30  ;;  %v3122_v39 = vunpack.c.h.bf16 %v2657_v31  ;;  %v1381_v40 = vsel %vm505_vm0, %v1353_v34, 0.0  ;;  %v2755_v7 = vld [vmem:[%s4746_s7 + $0x10] ss:$8 sps:$4 sm:$0xff]   ;;  %v972_v19 = vld [vmem:[%s3194_s25] sm:$0xff]  ;;  %v981_v20 = vld [vmem:[%s3194_s25 + $0x48] sm:$0xff] }
  0x1a   : > { %4835 = vst [vmem:[#allocation6_spill] sm:$0xff] %v3116_v35  ;;  %v1355_v41 = vmul.f32 %v3116_v35, %v3116_v35  ;;  %v3135_v47 = vunpack.c.h.bf16 %v2658_v44  ;;  %v3137_v48 = vunpack.c.l.bf16 %v2658_v44  ;;  %v3149_v55 = vunpack.c.h.bf16 %v2659_v53  ;;  %2707 = vmatprep.subr.bf16.mxu1 %v2751_v52  ;;  %1528 = vmatpush1.bf16.msra.mxu0 %v2755_v7  ;;  %v976_v23 = vld [vmem:[%s3194_s25 + $0x20] sm:$0xff]  ;;  %v977_v24 = vld [vmem:[%s3194_s25 + $0x28] sm:$0xff]  ;;  %v979_v26 = vld [vmem:[%s3194_s25 + $0x38] sm:$0xff] }
  0x1b   : > { %v1384_v42 = vsel %vm505_vm0, %v1354_v38, 0.0  ;;  %v1356_v43 = vmul.f32 %v3122_v39, %v3122_v39  ;;  %v3151_v56 = vunpack.c.l.bf16 %v2659_v53  ;;  %v3162_v63 = vunpack.c.h.bf16 %v2660_v62  ;;  %1529 = vmatprep.subr.bf16.mxu0 %v2756_v11 }
  0x1c   : > { %2692 = vmatmul.mubr.msk.bf16.gmra.mxu1 %vm505_vm0, %v384_v14  ;;  %1367 = vadd.xlane.f32.xlu0 %v1366_v25  ;;  %v1387_v46 = vsel %vm505_vm0, %v1355_v41, 0.0  ;;  %4836 = vst [vmem:[#allocation7_spill] sm:$0xff] %v3137_v48  ;;  %v1358_v50 = vmul.f32 %v3135_v47, %v3135_v47  ;;  %v1357_v51 = vmul.f32 %v3137_v48, %v3137_v48  ;;  %4837 = vst [vmem:[#allocation8_spill] sm:$0xff] %v3149_v55  ;;  %v2758_v14 = vld [vmem:[%s4746_s7] ss:$8 sps:$4 sm:$0xff]   ;;  %v2974_v15 = vmov 0  }
  0x1d   : > { %2695 = vmatprep.mubr.msk.bf16.mxu1 %vm505_vm0, %v386_v18  ;;  %1373 = vadd.xlane.f32.xlu1 %v1372_v28  ;;  %v1390_v49 = vsel %vm505_vm0, %v1356_v43, 0.0  ;;  %4838 = vst [vmem:[#allocation9_spill] sm:$0xff] %v3151_v56  ;;  %v1360_v58 = vmul.f32 %v3149_v55, %v3149_v55  ;;  %v1359_v59 = vmul.f32 %v3151_v56, %v3151_v56  ;;  %4839 = vst [vmem:[#allocation10_spill] sm:$0xff] %v3162_v63  ;;  %v974_v18 = vld [vmem:[%s3194_s25 + $0x10] sm:$0xff]  ;;  %v980_v28 = vld [vmem:[%s3194_s25 + $0x40] sm:$0xff] }
  0x1e   : > { %v1393_v54 = vsel %vm505_vm0, %v1357_v51, 0.0  ;;  %v1396_v57 = vsel %vm505_vm0, %v1358_v50, 0.0  ;;  %2708 = vmatpush3.bf16.msra.mxu1 %v2751_v52  ;;  %v3164_v0 = vunpack.c.l.bf16 %v2660_v62  ;;  %v1362_v1 = vmul.f32 %v3162_v63, %v3162_v63  ;;  %1530 = vmatpush1.bf16.msra.mxu0 %v2758_v14  ;;  %v978_v25 = vld [vmem:[%s3194_s25 + $0x30] sm:$0xff] }
  0x1f   : > { %v1399_v60 = vsel %vm505_vm0, %v1359_v59, 0.0  ;;  %v1402_v61 = vsel %vm505_vm0, %v1360_v58, 0.0  ;;  %2709 = vmatprep.subr.bf16.mxu1 %v2752_v10  ;;  %1547 = vmatprep.mubr.bf16.mxu0 %v2974_v15 }
  0x20   : > { %1376 = vadd.xlane.f32.xlu0 %v1375_v33  ;;  %4840 = vst [vmem:[#allocation11_spill] sm:$0xff] %v3164_v0  ;;  %v1361_v2 = vmul.f32 %v3164_v0, %v3164_v0  ;;  %v1408_v5 = vsel %vm505_vm0, %v1362_v1, 0.0  ;;  %2738 = vset.pattern.permute.xlu1 %v2974_v15 }
  0x21   : > { %1379 = vadd.xlane.f32.xlu1 %v1378_v37  ;;  %2737 = vset.pattern.permute.xlu0 %v2974_v15 }
  0x22   : > { %v1405_v6 = vsel %vm505_vm0, %v1361_v2, 0.0  ;;  %2710 = vmatpush3.bf16.msra.mxu1 %v2752_v10 }
  0x24   : > { %2696 = vmatmul.mubr.msk.bf16.gmra.mxu1 %vm505_vm0, %v388_v32  ;;  %1382 = vadd.xlane.f32.xlu0 %v1381_v40 }
  0x25   : > { %2699 = vmatprep.mubr.msk.bf16.mxu1 %vm505_vm0, %v390_v36  ;;  %1385 = vadd.xlane.f32.xlu1 %v1384_v42 }
  0x28   : > { %1388 = vadd.xlane.f32.xlu0 %v1387_v46 }
  0x29   : > { %1391 = vadd.xlane.f32.xlu1 %v1390_v49 }
  0x2c   : > { %2700 = vmatmul.mubr.msk.bf16.gmra.mxu1 %vm505_vm0, %v392_v45  ;;  %1394 = vadd.xlane.f32.xlu0 %v1393_v54 }
  0x2d   : > { %1397 = vadd.xlane.f32.xlu1 %v1396_v57 }
  0x30   : > { %1400 = vadd.xlane.f32.xlu0 %v1399_v60 }
  0x31   : > { %1403 = vadd.xlane.f32.xlu1 %v1402_v61 }
  0x34   : > { %1406 = vadd.xlane.f32.xlu0 %v1405_v6 }
  0x35   : > { %1409 = vadd.xlane.f32.xlu1 %v1408_v5 }
  0x46   : > { %994 = vperm.xlu1 %2738, %v973_v16  }
  0x4a   : > { %991 = vperm.xlu0 %2737, %v972_v19   ;;  %997 = vperm.xlu1 %2738, %v974_v18  }
  0x4e   : > { %1018 = vperm.xlu0 %2737, %v981_v20   ;;  %1000 = vperm.xlu1 %2738, %v975_v22  }
  0x52   : > { %1003 = vperm.xlu1 %2738, %v976_v23  }
  0x56   : > { %1006 = vperm.xlu1 %2738, %v977_v24  }
  0x5a   : > { %1009 = vperm.xlu1 %2738, %v978_v25  }
  0x5e   : > { %1012 = vperm.xlu1 %2738, %v979_v26  }
  0x62   : > { %1015 = vperm.xlu1 %2738, %v980_v28  }
  0xa1   : > { %v1365_v29 = vpop.xlane.xlu0 %1364 }
  0xa2   : > { %v1411_v31 = vadd.f32 1e-08, %v1365_v29  ;;  %v1371_v32 = vpop.xlane.xlu1 %1370 }
  0xa3   : > { %v1413_v34 = vadd.f32 1e-08, %v1371_v32 }
  0xa4   : > { %2767 = vrsqrt.f32 %v1411_v31 }
  0xa5   : > { %v1368_v33 = vpop.xlane.xlu0 %1367 }
  0xa6   : > { %v1412_v36 = vadd.f32 1e-08, %v1368_v33  ;;  %v1374_v37 = vpop.xlane.xlu1 %1373 }
  0xa7   : > { %v1414_v38 = vadd.f32 1e-08, %v1374_v37 }
  0xa8   : > { %2769 = vrsqrt.f32 %v1412_v36 }
  0xa9   : > { %2771 = vrsqrt.f32 %v1413_v34  ;;  %v1377_v40 = vpop.xlane.xlu0 %1376 }
  0xaa   : > { %2773 = vrsqrt.f32 %v1414_v38  ;;  %v1380_v41 = vpop.xlane.xlu1 %1379  ;;  %v1415_v42 = vadd.f32 1e-08, %v1377_v40 }
  0xab   : > { %v1416_v43 = vadd.f32 1e-08, %v1380_v41 }
  0xac   : > { %2775 = vrsqrt.f32 %v1415_v42 }
  0xad   : > { %2777 = vrsqrt.f32 %v1416_v43  ;;  %v1383_v45 = vpop.xlane.xlu0 %1382  ;;  %v3227_v43 = vld [vmem:[%s4743_s4] ss:$0 sm:$0xff] }
  0xae   : > { %v1386_v46 = vpop.xlane.xlu1 %1385  ;;  %v1417_v51 = vadd.f32 1e-08, %v1383_v45 }
  0xaf   : > { %v1418_v54 = vadd.f32 1e-08, %v1386_v46 }
  0xb0   : > { %2779 = vrsqrt.f32 %v1417_v51 }
  0xb1   : > { %v2768_v44 = vpop.eup %2767  ;;  %2781 = vrsqrt.f32 %v1418_v54  ;;  %v1389_v61 = vpop.xlane.xlu0 %1388 }
  0xb2   : > { %v1443_v49 = vmul.f32 %v2768_v44, %v3070_v8  ;;  %v1392_v62 = vpop.xlane.xlu1 %1391  ;;  %v1419_v1 = vadd.f32 1e-08, %v1389_v61 }
  0xb3   : > { %v1420_v5 = vadd.f32 1e-08, %v1392_v62 }
  0xb4   : > { %2783 = vrsqrt.f32 %v1419_v1 }
  0xb5   : > { %v2770_v50 = vpop.eup %2769  ;;  %2785 = vrsqrt.f32 %v1420_v5  ;;  %v1395_v11 = vpop.xlane.xlu0 %1394 }
  0xb6   : > { %v2772_v52 = vpop.eup %2771  ;;  %v1444_v53 = vmul.f32 %v2770_v50, %v3072_v9  ;;  %v1398_v14 = vpop.xlane.xlu1 %1397  ;;  %v1421_v16 = vadd.f32 1e-08, %v1395_v11 }
  0xb7   : > { %v2774_v57 = vpop.eup %2773  ;;  %v1445_v59 = vmul.f32 %v2772_v52, %v3077_v12  ;;  %v1422_v20 = vadd.f32 1e-08, %v1398_v14 }
  0xb8   : > { %v1459_v58 = vpack.c.bf16 %v1444_v53, %v1443_v49  ;;  %v1446_v60 = vmul.f32 %v2774_v57, %v3079_v13  ;;  %2787 = vrsqrt.f32 %v1421_v16 }
  0xb9   : > { %v2776_v2 = vpop.eup %2775  ;;  %2789 = vrsqrt.f32 %v1422_v20  ;;  %v1401_v25 = vpop.xlane.xlu0 %1400 }
  0xba   : > { %2612 = vmatmul.mubr.msk.bf16.vlgmr.msra.gmra.mxu0 %vm505_vm0, %v1459_v58  ;;  %v1460_v4 = vpack.c.bf16 %v1446_v60, %v1445_v59  ;;  %v2778_v6 = vpop.eup %2777  ;;  %v1447_v7 = vmul.f32 %v2776_v2, %v3087_v17  ;;  %v1404_v26 = vpop.xlane.xlu1 %1403  ;;  %v1423_v28 = vadd.f32 1e-08, %v1401_v25 }
  0xbb   : > { %1557 = vmatprep.mubr.bf16.mxu0 %v2974_v15  ;;  %v1448_v10 = vmul.f32 %v2778_v6, %v3094_v21  ;;  %v1424_v32 = vadd.f32 1e-08, %v1404_v26 }
  0xbc   : > { %2791 = vrsqrt.f32 %v1423_v28 }
  0xbd   : > { %v2780_v18 = vpop.eup %2779  ;;  %v1461_v19 = vpack.c.bf16 %v1448_v10, %v1447_v7  ;;  %2793 = vrsqrt.f32 %v1424_v32 }
  0xbe   : > { %v2782_v22 = vpop.eup %2781  ;;  %v1449_v23 = vmul.f32 %v2780_v18, %v3102_v27 }
  0xbf   : > { %v1450_v24 = vmul.f32 %v2782_v22, %v3107_v30 }
  0xc1   : > { %v2784_v29 = vpop.eup %2783  ;;  %v1462_v31 = vpack.c.bf16 %v1450_v24, %v1449_v23  ;;  %v1410_v24 = vpop.xlane.xlu1 %1409 }
  0xc2   : > { %2613 = vmatmul.mubr.msk.bf16.gmra.mxu0 %vm505_vm0, %v1460_v4  ;;  %v2786_v33 = vpop.eup %2785  ;;  %v1451_v34 = vmul.f32 %v2784_v29, %v3116_v35  ;;  %v1426_v28 = vadd.f32 1e-08, %v1410_v24  ;;  %v1407_v29 = vpop.xlane.xlu0 %1406 }
  0xc3   : > { %1567 = vmatprep.mubr.bf16.mxu0 %v2974_v15  ;;  %v1452_v36 = vmul.f32 %v2786_v33, %v3122_v39  ;;  %v1425_v32 = vadd.f32 1e-08, %v1407_v29 }
  0xc4   : > { %2795 = vrsqrt.f32 %v1426_v28 }
  0xc5   : > { %v2788_v38 = vpop.eup %2787  ;;  %v1463_v41 = vpack.c.bf16 %v1452_v36, %v1451_v34  ;;  %2797 = vrsqrt.f32 %v1425_v32 }
  0xc6   : > { %v2790_v42 = vpop.eup %2789  ;;  %v1453_v51 = vmul.f32 %v2788_v38, %v3137_v48 }
  0xc7   : > { %v1454_v52 = vmul.f32 %v2790_v42, %v3135_v47 }
  0xc9   : > { %v2792_v60 = vpop.eup %2791  ;;  %v1464_v1 = vpack.c.bf16 %v1454_v52, %v1453_v51 }
  0xca   : > { %2614 = vmatmul.mubr.msk.bf16.gmra.mxu0 %vm505_vm0, %v1461_v19  ;;  %v2794_v2 = vpop.eup %2793  ;;  %v1455_v16 = vmul.f32 %v2792_v60, %v3151_v56 }
  0xcb   : > { %1577 = vmatprep.mubr.bf16.mxu0 %v2974_v15  ;;  %v1456_v18 = vmul.f32 %v2794_v2, %v3149_v55 }
  0xcd   : > { %v1465_v33 = vpack.c.bf16 %v1456_v18, %v1455_v16 }
  0xd2   : > { %2615 = vmatmul.mubr.msk.bf16.gmra.mxu0 %vm505_vm0, %v1462_v31 }
  0xd3   : > { %1587 = vmatprep.mubr.bf16.mxu0 %v2974_v15 }
  0xd4   : > { %v2689_v37 = vpop.f32.mrf.mxu1 }
  0xd5   : > { %v573_v49 = vadd.f32 %v2689_v37, %v3227_v43 }
  0xd6   : > { %v564_v40 = vpop.f32.mrf.mxu1 }
  0xd7   : > { %v565_v45 = vadd.f32 %v3227_v43, %v564_v40  ;;  %v629_v61 = vmax.f32 %v573_v49, 0.0 }
  0xd8   : > { %v2690_v44 = vpop.f32.mrf.mxu1 }
  0xd9   : > { %v576_v46 = vadd.f32 %v2690_v44, %v3227_v43  ;;  %v627_v58 = vmax.f32 %v565_v45, 0.0 }
  0xda   : > { %v567_v50 = vpop.f32.mrf.mxu1  ;;  %2616 = vmatmul.mubr.msk.bf16.gmra.mxu0 %vm505_vm0, %v1463_v41 }
  0xdb   : > { %v568_v53 = vadd.f32 %v3227_v43, %v567_v50  ;;  %1597 = vmatprep.mubr.bf16.mxu0 %v2974_v15  ;;  %v630_v54 = vmax.f32 %v576_v46, 0.0 }
  0xdc   : > { %v2693_v57 = vpop.f32.mrf.mxu1 }
  0xdd   : > { %v628_v59 = vmax.f32 %v568_v53, 0.0  ;;  %v644_v5 = vpack.c.bf16 %v630_v54, %v629_v61  ;;  %v589_v6 = vadd.f32 %v2693_v57, %v3227_v43 }
  0xde   : > { %v580_v62 = vpop.f32.mrf.mxu1 }
  0xdf   : > { %v643_v4 = vpack.c.bf16 %v628_v59, %v627_v58  ;;  %v581_v10 = vadd.f32 %v3227_v43, %v580_v62  ;;  %v633_v20 = vmax.f32 %v589_v6, 0.0 }
  0xe0   : > { %v2694_v7 = vpop.f32.mrf.mxu1 }
  0xe1   : > { %v592_v11 = vadd.f32 %v2694_v7, %v3227_v43  ;;  %2711 = vmatprep.mubr.msk.bf16.mxu1 %vm690_vm1, %v643_v4  ;;  %v631_v25 = vmax.f32 %v581_v10, 0.0  ;;  %v2796_v4 = vpop.eup %2795 }
  0xe2   : > { %v583_v14 = vpop.f32.mrf.mxu1  ;;  %2712 = vmatmul.mubr.msk.bf16.vlgmr.msra.gmra.mxu1 %vm690_vm1, %v644_v5  ;;  %2617 = vmatmul.mubr.msk.bf16.gmra.mxu0 %vm505_vm0, %v1464_v1  ;;  %v2798_v5 = vpop.eup %2797  ;;  %v1458_v7 = vmul.f32 %v2796_v4, %v3162_v63 }
  0xe3   : > { %v584_v19 = vadd.f32 %v3227_v43, %v583_v14  ;;  %1607 = vmatprep.mubr.bf16.mxu0 %v2974_v15  ;;  %v634_v22 = vmax.f32 %v592_v11, 0.0  ;;  %v1457_v11 = vmul.f32 %v2798_v5, %v3164_v0 }
  0xe4   : > { %v2697_v23 = vpop.f32.mrf.mxu1 }
  0xe5   : > { %v632_v26 = vmax.f32 %v584_v19, 0.0  ;;  %v646_v36 = vpack.c.bf16 %v634_v22, %v633_v20  ;;  %v605_v37 = vadd.f32 %v2697_v23, %v3227_v43  ;;  %v1466_v16 = vpack.c.bf16 %v1458_v7, %v1457_v11 }
  0xe6   : > { %v596_v31 = vpop.f32.mrf.mxu1 }
  0xe7   : > { %v645_v34 = vpack.c.bf16 %v632_v26, %v631_v25  ;;  %v597_v40 = vadd.f32 %v3227_v43, %v596_v31  ;;  %v637_v45 = vmax.f32 %v605_v37, 0.0 }
  0xe8   : > { %v2698_v38 = vpop.f32.mrf.mxu1 }
  0xe9   : > { %v608_v41 = vadd.f32 %v2698_v38, %v3227_v43  ;;  %2715 = vmatprep.mubr.msk.bf16.mxu1 %vm690_vm1, %v645_v34  ;;  %v635_v50 = vmax.f32 %v597_v40, 0.0 }
  0xea   : > { %v599_v42 = vpop.f32.mrf.mxu1  ;;  %2716 = vmatmul.mubr.msk.bf16.gmra.mxu1 %vm690_vm1, %v646_v36  ;;  %2618 = vmatmul.mubr.msk.bf16.gmra.mxu0 %vm505_vm0, %v1465_v33 }
  0xeb   : > { %v600_v44 = vadd.f32 %v3227_v43, %v599_v42  ;;  %1617 = vmatprep.mubr.bf16.mxu0 %v2974_v15  ;;  %v638_v46 = vmax.f32 %v608_v41, 0.0 }
  0xec   : > { %v2701_v49 = vpop.f32.mrf.mxu1 }
  0xed   : > { %v636_v51 = vmax.f32 %v600_v44, 0.0  ;;  %v621_v52 = vadd.f32 %v2701_v49, %v3227_v43  ;;  %v648_v58 = vpack.c.bf16 %v638_v46, %v637_v45 }
  0xee   : > { %v612_v53 = vpop.f32.mrf.mxu1 }
  0xef   : > { %v647_v54 = vpack.c.bf16 %v636_v51, %v635_v50  ;;  %v613_v57 = vadd.f32 %v3227_v43, %v612_v53  ;;  %v641_v61 = vmax.f32 %v621_v52, 0.0 }
  0xf0   : > { %v2702_v59 = vpop.f32.mrf.mxu1 }
  0xf1   : > { %v624_v60 = vadd.f32 %v2702_v59, %v3227_v43  ;;  %2719 = vmatprep.mubr.msk.bf16.mxu1 %vm690_vm1, %v647_v54  ;;  %v639_v15 = vmax.f32 %v613_v57, 0.0 }
  0xf2   : > { %v615_v62 = vpop.f32.mrf.mxu1  ;;  %2720 = vmatmul.mubr.msk.bf16.gmra.mxu1 %vm690_vm1, %v648_v58  ;;  %2619 = vmatmul.mubr.msk.bf16.gmra.mxu0 %vm505_vm0, %v1466_v16 }
  0xf3   : > { %v642_v1 = vmax.f32 %v624_v60, 0.0  ;;  %v616_v2 = vadd.f32 %v3227_v43, %v615_v62  ;;  %v2577_v43 = vld [vmem:[%s4745_s6] ss:$0 sm:$0xff]  ;;  %v982_v60 = vld [vmem:[%s3194_s25 + $0x50] sm:$0xff] }
  0xf4   : > { %v984_v62 = vld [vmem:[%s3194_s25 + $0x60] sm:$0xff] }
  0xf5   : > { %v640_v6 = vmax.f32 %v616_v2, 0.0  ;;  %v650_v10 = vpack.c.bf16 %v642_v1, %v641_v61  ;;  %v983_v61 = vld [vmem:[%s3194_s25 + $0x58] sm:$0xff]  ;;  %v986_v1 = vld [vmem:[%s3194_s25 + $0x70] sm:$0xff]  ;;  %v3322_v2 = vpop.permute.xlu1 %994 }
  0xf6   : > { %4857 = vst [vmem:[#allocation28_spill] sm:$0xff] %v3322_v2 }
  0xf7   : > { %v649_v14 = vpack.c.bf16 %v640_v6, %v639_v15  ;;  %v985_v15 = vld [vmem:[%s3194_s25 + $0x68] sm:$0xff] }
  0xf9   : > { %2723 = vmatprep.mubr.msk.bf16.mxu1 %vm690_vm1, %v649_v14  ;;  %v3324_v6 = vpop.permute.xlu1 %997 }
  0xfa   : > { %2724 = vmatmul.mubr.msk.bf16.gmra.mxu1 %vm690_vm1, %v650_v10 }
  0xfd   : > { %v3326_v10 = vpop.permute.xlu1 %1000 }
  0xfe   : > { %4858 = vst [vmem:[#allocation29_spill] sm:$0xff] %v3326_v10 }
 0x101   : > { %v3328_v16 = vpop.permute.xlu1 %1003 }
 0x17a   : > { %v1549_v4 = vpop.f32.mrf.mxu0 }
 0x17c   : > { %v1551_v5 = vpop.f32.mrf.mxu0 }
 0x17e   : > { %v1553_v7 = vpop.f32.mrf.mxu0 }
 0x180   : > { %v1555_v11 = vpop.f32.mrf.mxu0 }
 0x181   : > { %v1631_v0 = vmul.f32 2.0, %v1555_v11 }
 0x182   : > { %v1559_v14 = vpop.f32.mrf.mxu0 }
 0x183   : > { %v1632_v48 = vmul.f32 2.0, %v1559_v14 }
 0x185   : > { %v1664_v12 = vsub.f32 2.0, %v1632_v48 }
 0x1a2   : > { %v2713_v18 = vpop.f32.mrf.mxu1 }
 0x1a3   : > { %v3269_v19 = vadd.f32 %v2713_v18, %v2577_v43  ;;  %v3330_v18 = vpop.permute.xlu1 %1006 }
 0x1a4   : > { %v749_v20 = vpop.f32.mrf.mxu1  ;;  %4859 = vst [vmem:[#allocation30_spill] sm:$0xff] %v3330_v18  ;;  %v3372_v18 = vstv %s2607_s29 }
 0x1a5   : > { %4841 = vst [vmem:[#allocation12_spill] sm:$0xff] %v3269_v19  ;;  %816 = vmax.xlane.f32.xlu0 %v3269_v19  ;;  %v3272_v23 = vadd.f32 %v2577_v43, %v749_v20  ;;  %4865 = vst [vmem:[#allocation36_spill] sm:$0xff] %v3372_v18 }
 0x1a6   : > { %v2714_v22 = vpop.f32.mrf.mxu1 }
 0x1a7   : > { %4842 = vst [vmem:[#allocation13_spill] sm:$0xff] %v3272_v23  ;;  %v3274_v24 = vadd.f32 %v2714_v22, %v2577_v43 }
 0x1a8   : > { %v752_v25 = vpop.f32.mrf.mxu1 }
 0x1a9   : > { %4843 = vst [vmem:[#allocation14_spill] sm:$0xff] %v3274_v24  ;;  %818 = vmax.xlane.f32.xlu1 %v3274_v24  ;;  %812 = vmax.xlane.f32.xlu0 %v3272_v23  ;;  %v3278_v28 = vadd.f32 %v2577_v43, %v752_v25  ;;  %v1628_v25 = vmul.f32 2.0, %v1549_v4  ;;  %v1630_v4 = vmul.f32 2.0, %v1553_v7 }
 0x1aa   : > { %v2717_v26 = vpop.f32.mrf.mxu1 }
 0x1ab   : > { %4844 = vst [vmem:[#allocation15_spill] sm:$0xff] %v3278_v28  ;;  %v3280_v29 = vadd.f32 %v2717_v26, %v2577_v43  ;;  %v3334_v26 = vpop.permute.xlu1 %1009  ;;  %v1662_v35 = vsub.f32 2.0, %v1630_v4 }
 0x1ac   : > { %v765_v31 = vpop.f32.mrf.mxu1 }
 0x1ad   : > { %4845 = vst [vmem:[#allocation16_spill] sm:$0xff] %v3280_v29  ;;  %814 = vmax.xlane.f32.xlu1 %v3278_v28  ;;  %824 = vmax.xlane.f32.xlu0 %v3280_v29  ;;  %v3284_v33 = vadd.f32 %v2577_v43, %v765_v31  ;;  %v988_v31 = vlaneseq }
 0x1ae   : > { %v2718_v32 = vpop.f32.mrf.mxu1 }
 0x1af   : > { %4846 = vst [vmem:[#allocation17_spill] sm:$0xff] %v3284_v33  ;;  %v3286_v34 = vadd.f32 %v2718_v32, %v2577_v43  ;;  %v3336_v32 = vpop.permute.xlu0 %991 }
 0x1b0   : > { %v768_v36 = vpop.f32.mrf.mxu1  ;;  %4860 = vst [vmem:[#allocation31_spill] sm:$0xff] %v3336_v32 }
 0x1b1   : > { %4847 = vst [vmem:[#allocation18_spill] sm:$0xff] %v3286_v34  ;;  %826 = vmax.xlane.f32.xlu1 %v3286_v34  ;;  %820 = vmax.xlane.f32.xlu0 %v3284_v33  ;;  %v3290_v38 = vadd.f32 %v2577_v43, %v768_v36 }
 0x1b2   : > { %v2721_v37 = vpop.f32.mrf.mxu1 }
 0x1b3   : > { %4848 = vst [vmem:[#allocation19_spill] sm:$0xff] %v3290_v38  ;;  %v3292_v40 = vadd.f32 %v2721_v37, %v2577_v43  ;;  %v1660_v37 = vsub.f32 2.0, %v1628_v25  ;;  %v3360_v25 = vand.u32 127, %v988_v31 }
 0x1b4   : > { %v781_v41 = vpop.f32.mrf.mxu1 }
 0x1b5   : > { %4849 = vst [vmem:[#allocation20_spill] sm:$0xff] %v3292_v40  ;;  %822 = vmax.xlane.f32.xlu1 %v3290_v38  ;;  %832 = vmax.xlane.f32.xlu0 %v3292_v40  ;;  %v3296_v44 = vadd.f32 %v2577_v43, %v781_v41  ;;  %v1629_v41 = vmul.f32 2.0, %v1551_v5  ;;  %v3386_v17 = vadd.s32 128, %v3360_v25 }
 0x1b6   : > { %v2722_v42 = vpop.f32.mrf.mxu1 }
 0x1b7   : > { %4850 = vst [vmem:[#allocation21_spill] sm:$0xff] %v3296_v44  ;;  %v3298_v45 = vadd.f32 %v2722_v42, %v2577_v43  ;;  %v3340_v42 = vshrl.u32 %v988_v31, 7 }
 0x1b8   : > { %v784_v46 = vpop.f32.mrf.mxu1 }
 0x1b9   : > { %4851 = vst [vmem:[#allocation22_spill] sm:$0xff] %v3298_v45  ;;  %834 = vmax.xlane.f32.xlu1 %v3298_v45  ;;  %828 = vmax.xlane.f32.xlu0 %v3296_v44  ;;  %v3302_v50 = vadd.f32 %v2577_v43, %v784_v46  ;;  %4861 = vst [vmem:[#allocation32_spill] sm:$0xff] %v3340_v42  ;;  %v3342_v46 = vpop.permute.xlu1 %1012  ;;  %v1284_v10 = vadd.s32 32, %v3340_v42  ;;  %v1288_v11 = vadd.s32 64, %v3340_v42 }
 0x1ba   : > { %v2725_v49 = vpop.f32.mrf.mxu1  ;;  %4862 = vst [vmem:[#allocation33_spill] sm:$0xff] %v3342_v46 }
 0x1bb   : > { %4852 = vst [vmem:[#allocation23_spill] sm:$0xff] %v3302_v50  ;;  %v3304_v51 = vadd.f32 %v2725_v49, %v2577_v43  ;;  %v3405_v63 = vadd.s32 %v3372_v18, %v1284_v10 }
 0x1bc   : > { %v797_v52 = vpop.f32.mrf.mxu1 }
 0x1bd   : > { %4853 = vst [vmem:[#allocation24_spill] sm:$0xff] %v3304_v51  ;;  %v3306_v53 = vadd.f32 %v2577_v43, %v797_v52  ;;  %830 = vmax.xlane.f32.xlu1 %v3302_v50  ;;  %840 = vmax.xlane.f32.xlu0 %v3304_v51  ;;  %v3346_v52 = vmax.f32 %v1660_v37, 0.0  ;;  %v1282_v37 = vadd.s32 16, %v3340_v42 }
 0x1be   : > { %v2726_v54 = vpop.f32.mrf.mxu1 }
 0x1bf   : > { %4854 = vst [vmem:[#allocation25_spill] sm:$0xff] %v3306_v53  ;;  %v3310_v57 = vadd.f32 %v2726_v54, %v2577_v43  ;;  %v1661_v54 = vsub.f32 2.0, %v1629_v41  ;;  %v3364_v41 = vadd.f32 1e-12, %v3346_v52 }
 0x1c0   : > { %v800_v58 = vpop.f32.mrf.mxu1 }
 0x1c1   : > { %4855 = vst [vmem:[#allocation26_spill] sm:$0xff] %v3310_v57  ;;  %842 = vmax.xlane.f32.xlu1 %v3310_v57  ;;  %836 = vmax.xlane.f32.xlu0 %v3306_v53  ;;  %v3314_v59 = vadd.f32 %v2577_v43, %v800_v58  ;;  %v1561_v43 = vpop.f32.mrf.mxu0  ;;  %v3348_v58 = vpop.permute.xlu0 %1018  ;;  %v3366_v46 = vmax.f32 %v1661_v54, 0.0  ;;  %v1286_v54 = vadd.s32 48, %v3340_v42  ;;  %2799 = vrsqrt.f32 %v3364_v41 }
 0x1c2   : > { %4863 = vst [vmem:[#allocation34_spill] sm:$0xff] %v3348_v58  ;;  %vm1758_vm2 = vcmp.eq.f32.partialorder %v3364_v41, inf  ;;  %vm1760_vm3 = vcmp.eq.f32.partialorder %v3364_v41, 0.0 }
 0x1c3   : > { %4856 = vst [vmem:[#allocation27_spill] sm:$0xff] %v3314_v59  ;;  %v1563_v20 = vpop.f32.mrf.mxu0  ;;  %v3393_v14 = vadd.f32 1e-12, %v3366_v46 }
 0x1c4   : > { %v1634_v9 = vmul.f32 2.0, %v1563_v20 }
 0x1c5   : > { %838 = vmax.xlane.f32.xlu1 %v3314_v59  ;;  %v3332_v22 = vpop.f32.mrf.mxu0  ;;  %vm1765_vm4 = vcmp.eq.f32.partialorder %v3393_v14, inf  ;;  %vm1767_vm5 = vcmp.eq.f32.partialorder %v3393_v14, 0.0 }
 0x1c7   : > { %v3338_v36 = vpop.f32.mrf.mxu0 }
 0x1c9   : > { %v3344_v49 = vpop.f32.mrf.mxu0 }
 0x1cb   : > { %v3358_v5 = vpop.f32.mrf.mxu0 }
 0x1cd   : > { %v3383_v2 = vpop.f32.mrf.mxu0 }
 0x1cf   : > { %v3412_v58 = vpop.f32.mrf.mxu0 }
 0x1d6   : > { %1021 = vperm.xlu1 %2738, %v982_v60   ;;  %v1241_v60 = vsub.s32 0, %v3340_v42 }
 0x1d7   : > { %1024 = vperm.xlu0 %2737, %v983_v61   ;;  %v1245_v61 = vsub.s32 1, %v3340_v42 }
 0x1da   : > { %1027 = vperm.xlu1 %2738, %v984_v62   ;;  %v3368_v62 = vpop.permute.xlu1 %1015 }
 0x1db   : > { %1030 = vperm.xlu0 %2737, %v985_v15   ;;  %v1238_v15 = vld [vmem:[%s4747_s8] sm:$0x3] }
 0x1dc   : > { %v3376_v7 = vrot.slane %v1238_v15, %v1245_v61  ;;  %v1663_v61 = vsub.f32 2.0, %v1631_v0  ;;  %v3408_v0 = vadd.s32 %v3372_v18, %v1286_v54  ;;  %v3423_v54 = vadd.s32 %v3372_v18, %v1288_v11  ;;  %v3438_v11 = vpop.f32.mrf.mxu0 }
 0x1de   : > { %1033 = vperm.xlu1 %2738, %v986_v1   ;;  %v3374_v1 = vrot.slane %v1238_v15, %v1241_v60  ;;  %v3389_v60 = vadd.s32 %v3372_v18, %v1282_v37  ;;  %v1633_v15 = vmul.f32 2.0, %v1561_v43  ;;  %v1281_v37 = vadd.s32 8, %v3340_v42  ;;  %4872 = vst [vmem:[#allocation43_spill] sm:$0xff] %v3423_v54 }
 0x1df   : > { %v3410_v43 = vmax.f32 %v1662_v35, 0.0  ;;  %vm1248_vm10 = vcmp.eq.s32.totalorder %v3336_v32, %v3376_v7 }
 0x1e0   : > { %v1665_v48 = vsub.f32 2.0, %v1633_v15  ;;  %v1666_v15 = vsub.f32 2.0, %v1634_v9  ;;  %vm1247_vm7 = vcmp.eq.s32.totalorder %v3336_v32, %v3374_v1  ;;  %vm1251_vm1 = vcmp.eq.s32.totalorder %v3324_v6, %v3374_v1 }
 0x1e1   : > { %4868 = vst [vmem:[#allocation39_spill] sm:$0xff] %v3410_v43 }
 0x22e   : > { %v3370_v56 = vpop.xlane.xlu0 %816 }
 0x22f   : > { %4864 = vst [vmem:[#allocation35_spill] sm:$0xff] %v3370_v56  ;;  %v846_v31 = vsub.f32 %v3269_v19, %v3370_v56 }
 0x231   : > { %v864_v27 = vmul.f32 1.442695, %v846_v31 }
 0x232   : > { %v3395_v19 = vpop.xlane.xlu1 %818  ;;  %v3397_v56 = vpop.xlane.xlu0 %812 }
 0x233   : > { %4866 = vst [vmem:[#allocation37_spill] sm:$0xff] %v3395_v19  ;;  %4867 = vst [vmem:[#allocation38_spill] sm:$0xff] %v3397_v56  ;;  %2801 = vpow2.f32 %v864_v27  ;;  %v847_v4 = vsub.f32 %v3274_v24, %v3395_v19  ;;  %v844_v31 = vsub.f32 %v3272_v23, %v3397_v56  ;;  %v1283_v24 = vadd.s32 24, %v3340_v42 }
 0x234   : > { %2803 = vrsqrt.f32 %v3393_v14  ;;  %v3416_v23 = vmax.f32 %v1663_v61, 0.0  ;;  %v3432_v61 = vmax.f32 %v1664_v12, 0.0  ;;  %v1635_v56 = vmul.f32 2.0, %v3332_v22 }
 0x235   : > { %v866_v27 = vmul.f32 1.442695, %v847_v4  ;;  %v860_v55 = vmul.f32 1.442695, %v844_v31  ;;  %v3430_v31 = vadd.s32 %v3372_v18, %v1281_v37  ;;  %v3436_v19 = vadd.f32 1e-12, %v3410_v43 }
 0x236   : > { %4869 = vst [vmem:[#allocation40_spill] sm:$0xff] %v3416_v23  ;;  %v3418_v20 = vpop.xlane.xlu1 %814  ;;  %v3420_v10 = vpop.xlane.xlu0 %824  ;;  %v3446_v37 = vmax.f32 %v1665_v48, 0.0  ;;  %v3454_v22 = vadd.s32 40, %v3340_v42  ;;  %v3462_v48 = vadd.s32 %v3372_v18, %v3340_v42 }
 0x237   : > { %4870 = vst [vmem:[#allocation41_spill] sm:$0xff] %v3418_v20  ;;  %4871 = vst [vmem:[#allocation42_spill] sm:$0xff] %v3420_v10  ;;  %2805 = vpow2.f32 %v866_v27  ;;  %v845_v35 = vsub.f32 %v3278_v28, %v3418_v20  ;;  %v850_v4 = vsub.f32 %v3280_v29, %v3420_v10  ;;  %v3441_v28 = vadd.s32 %v3372_v18, %v1283_v24 }
 0x238   : > { %4873 = vst [vmem:[#allocation44_spill] sm:$0xff] %v3430_v31  ;;  %2807 = vpow2.f32 %v860_v55  ;;  %v3444_v29 = vadd.f32 1e-12, %v3416_v23  ;;  %v1289_v55 = vadd.s32 72, %v3340_v42  ;;  %4877 = vst [vmem:[#allocation48_spill] sm:$0xff] %v3454_v22  ;;  %v3467_v10 = vmax.f32 %v1666_v15, 0.0  ;;  %v3471_v22 = vpop.f32.mrf.mxu0 }
 0x239   : > { %v862_v27 = vmul.f32 1.442695, %v845_v35  ;;  %v872_v54 = vmul.f32 1.442695, %v850_v4  ;;  %4874 = vst [vmem:[#allocation45_spill] sm:$0xff] %v3441_v28  ;;  %v1667_v20 = vsub.f32 2.0, %v1635_v56  ;;  %v2800_v56 = vpop.eup %2799  ;;  %vm1315_vm12 = vcmp.ne.s32.totalorder %v3462_v48, %v3360_v25 }
 0x23a   : > { %v3448_v12 = vpop.xlane.xlu1 %826  ;;  %v3450_v9 = vpop.xlane.xlu0 %820  ;;  %v3465_v4 = vadd.f32 1e-12, %v3432_v61  ;;  %4878 = vst [vmem:[#allocation49_spill] sm:$0xff] %v3467_v10  ;;  %vm1316_vm14 = vcmp.ne.s32.totalorder %v3462_v48, %v3386_v17 }
 0x23b   : > { %4875 = vst [vmem:[#allocation46_spill] sm:$0xff] %v3448_v12  ;;  %4876 = vst [vmem:[#allocation47_spill] sm:$0xff] %v3450_v9  ;;  %2809 = vpow2.f32 %v862_v27  ;;  %v851_v35 = vsub.f32 %v3286_v34, %v3448_v12  ;;  %v848_v24 = vsub.f32 %v3284_v33, %v3450_v9  ;;  %v1636_v27 = vmul.f32 2.0, %v3338_v36 }
 0x23c   : > { %2811 = vpow2.f32 %v872_v54  ;;  %v3475_v33 = vadd.f32 1e-12, %v3446_v37  ;;  %v1637_v9 = vmul.f32 2.0, %v3344_v49  ;;  %v3490_v49 = vadd.f32 1e-12, %v3467_v10 }
 0x23d   : > { %2813 = vrsqrt.f32 %v3436_v19  ;;  %v874_v34 = vmul.f32 1.442695, %v851_v35  ;;  %v868_v12 = vmul.f32 1.442695, %v848_v24  ;;  %v3492_v23 = vmax.f32 %v1667_v20, 0.0 }
 0x23e   : > { %2815 = vrsqrt.f32 %v3444_v29  ;;  %v3478_v28 = vpop.xlane.xlu1 %822  ;;  %v3480_v15 = vpop.xlane.xlu0 %832  ;;  %4881 = vst [vmem:[#allocation52_spill] sm:$0xff] %v3490_v49  ;;  %v1669_v35 = vsub.f32 2.0, %v1637_v9  ;;  %vm1786_vm6 = vcmp.eq.f32.partialorder %v3465_v4, inf  ;;  %vm1788_vm8 = vcmp.eq.f32.partialorder %v3465_v4, 0.0 }
 0x23f   : > { %4879 = vst [vmem:[#allocation50_spill] sm:$0xff] %v3478_v28  ;;  %4880 = vst [vmem:[#allocation51_spill] sm:$0xff] %v3480_v15  ;;  %2817 = vpow2.f32 %v874_v34  ;;  %v849_v36 = vsub.f32 %v3290_v38, %v3478_v28  ;;  %v854_v54 = vsub.f32 %v3292_v40, %v3480_v15  ;;  %v1668_v34 = vsub.f32 2.0, %v1636_v27  ;;  %v3496_v38 = vpop.f32.mrf.mxu0 }
 0x240   : > { %v2802_v24 = vpop.eup %2801  ;;  %4882 = vst [vmem:[#allocation53_spill] sm:$0xff] %v3492_v23  ;;  %2819 = vpow2.f32 %v868_v12  ;;  %v1638_v15 = vmul.f32 2.0, %v3358_v5  ;;  %v1757_v12 = vmul.f32 %v2800_v56, %v3364_v41  ;;  %v3511_v9 = vadd.f32 1e-12, %v3492_v23 }
 0x241   : > { %2821 = vrsqrt.f32 %v3465_v4  ;;  %v870_v28 = vmul.f32 1.442695, %v849_v36  ;;  %v880_v40 = vmul.f32 1.442695, %v854_v54  ;;  %896 = vadd.xlane.f32.xlu0 %v2802_v24  ;;  %v2804_v43 = vpop.eup %2803  ;;  %v1640_v5 = vmul.f32 2.0, %v3412_v58 }
 0x242   : > { %2823 = vrsqrt.f32 %v3475_v33  ;;  %v3500_v10 = vpop.xlane.xlu1 %834  ;;  %v3502_v20 = vpop.xlane.xlu0 %828  ;;  %4885 = vst [vmem:[#allocation56_spill] sm:$0xff] %v3511_v9  ;;  %v3516_v56 = vadd.s32 %v3372_v18, %v1289_v55  ;;  %v1670_v23 = vsub.f32 2.0, %v1638_v15  ;;  %v1639_v58 = vmul.f32 2.0, %v3383_v2 }
 0x243   : > { %4883 = vst [vmem:[#allocation54_spill] sm:$0xff] %v3500_v10  ;;  %4884 = vst [vmem:[#allocation55_spill] sm:$0xff] %v3502_v20  ;;  %2825 = vpow2.f32 %v870_v28  ;;  %v855_v27 = vsub.f32 %v3298_v45, %v3500_v10  ;;  %v852_v36 = vsub.f32 %v3296_v44, %v3502_v20  ;;  %v3519_v45 = vmax.f32 %v1668_v34, 0.0  ;;  %v1589_v44 = vpop.f32.mrf.mxu0 }
 0x244   : > { %v2806_v24 = vpop.eup %2805  ;;  %2827 = vpow2.f32 %v880_v40  ;;  %v3521_v20 = vmax.f32 %v1669_v35, 0.0  ;;  %v1759_v55 = vsel %vm1758_vm2, %v3364_v41, %v1757_v12  ;;  %v1764_v15 = vmul.f32 %v2804_v43, %v3393_v14 }
 0x245   : > { %v2808_v28 = vpop.eup %2807  ;;  %2829 = vrsqrt.f32 %v3490_v49  ;;  %v882_v10 = vmul.f32 1.442695, %v855_v27  ;;  %v876_v54 = vmul.f32 1.442695, %v852_v36  ;;  %898 = vadd.xlane.f32.xlu1 %v2806_v24  ;;  %v1672_v2 = vsub.f32 2.0, %v1640_v5  ;;  %v1591_v12 = vpop.f32.mrf.mxu0 }
 0x246   : > { %892 = vadd.xlane.f32.xlu0 %v2808_v28  ;;  %v3524_v40 = vpop.xlane.xlu1 %830  ;;  %v3526_v31 = vpop.xlane.xlu0 %840  ;;  %v1641_v36 = vmul.f32 2.0, %v3438_v11  ;;  %v3545_v43 = vadd.f32 1e-12, %v3521_v20  ;;  %v3547_v5 = vmax.f32 %v1670_v23, 0.0  ;;  %v1671_v11 = vsub.f32 2.0, %v1639_v58 }
 0x247   : > { %4886 = vst [vmem:[#allocation57_spill] sm:$0xff] %v3524_v40  ;;  %4887 = vst [vmem:[#allocation58_spill] sm:$0xff] %v3526_v31  ;;  %2831 = vpow2.f32 %v882_v10  ;;  %v853_v34 = vsub.f32 %v3302_v50, %v3524_v40  ;;  %v858_v35 = vsub.f32 %v3304_v51, %v3526_v31  ;;  %v3540_v10 = vadd.f32 1e-12, %v3519_v45 }
 0x248   : > { %v2810_v27 = vpop.eup %2809  ;;  %2833 = vpow2.f32 %v876_v54  ;;  %4889 = vst [vmem:[#allocation60_spill] sm:$0xff] %v3547_v5  ;;  %v4892_v31 = vand.u32 2147483648, %v3364_v41  ;;  %v1766_v58 = vsel %vm1765_vm4, %v3393_v14, %v1764_v15  ;;  %v1673_v49 = vsub.f32 2.0, %v1641_v36 }
 0x249   : > { %v2812_v28 = vpop.eup %2811  ;;  %2835 = vrsqrt.f32 %v3511_v9  ;;  %v878_v50 = vmul.f32 1.442695, %v853_v34  ;;  %v888_v40 = vmul.f32 1.442695, %v858_v35  ;;  %894 = vadd.xlane.f32.xlu1 %v2810_v27  ;;  %v3566_v9 = vmax.f32 %v1672_v2, 0.0 }
 0x24a   : > { %v3542_v51 = vpop.eup %2813  ;;  %904 = vadd.xlane.f32.xlu0 %v2812_v28  ;;  %v3549_v54 = vpop.xlane.xlu1 %842  ;;  %v1762_v34 = vsel %vm1760_vm3, %v4892_v31, %v1759_v55  ;;  %v1644_v18 = vmul.f32 2.0, %v1589_v44  ;;  %v3572_v15 = vadd.f32 1e-12, %v3547_v5  ;;  %v3574_v2 = vmax.f32 %v1671_v11, 0.0 }
 0x24b   : > { %4888 = vst [vmem:[#allocation59_spill] sm:$0xff] %v3542_v51  ;;  %4890 = vst [vmem:[#allocation61_spill] sm:$0xff] %v3549_v54  ;;  %v3551_v24 = vpop.xlane.xlu0 %836  ;;  %v3557_v35 = vpop.eup %2815  ;;  %2837 = vpow2.f32 %v878_v50  ;;  %v859_v27 = vsub.f32 %v3310_v57, %v3549_v54  ;;  %v1645_v50 = vmul.f32 2.0, %v1591_v12  ;;  %v1642_v44 = vmul.f32 2.0, %v3471_v22 }
 0x24c   : > { %4891 = vst [vmem:[#allocation62_spill] sm:$0xff] %v3551_v24  ;;  %4893 = vst [vmem:[#allocation63_spill] sm:$0xff] %v3557_v35  ;;  %v856_v23 = vsub.f32 %v3306_v53, %v3551_v24  ;;  %v2818_v28 = vpop.eup %2817  ;;  %2839 = vpow2.f32 %v888_v40  ;;  %v1593_v31 = vpop.f32.mrf.mxu0  ;;  %v3588_v11 = vadd.f32 1e-12, %v3566_v9  ;;  %v3590_v22 = vmax.f32 %v1673_v49, 0.0 }
 0x24d   : > { %v2820_v41 = vpop.eup %2819  ;;  %2841 = vrsqrt.f32 %v3540_v10  ;;  %v890_v55 = vmul.f32 1.442695, %v859_v27  ;;  %906 = vadd.xlane.f32.xlu1 %v2818_v28  ;;  %4894 = vst [vmem:[#allocation64_spill] sm:$0xff] %v3572_v15  ;;  %4895 = vst [vmem:[#allocation65_spill] sm:$0xff] %v3574_v2  ;;  %v4897_v27 = vand.u32 2147483648, %v3393_v14  ;;  %v1980_v28 = vsub.f32 0.5, %v1762_v34 }
 0x24e   : > { %v884_v57 = vmul.f32 1.442695, %v856_v23  ;;  %v2822_v54 = vpop.eup %2821  ;;  %2843 = vrsqrt.f32 %v3545_v43  ;;  %900 = vadd.xlane.f32.xlu0 %v2820_v41  ;;  %v3577_v40 = vpop.xlane.xlu1 %838  ;;  %v1676_v41 = vsub.f32 2.0, %v1644_v18  ;;  %v1646_v24 = vmul.f32 2.0, %v1593_v31 }
 0x24f   : > { %4896 = vst [vmem:[#allocation66_spill] sm:$0xff] %v3577_v40  ;;  %v3579_v36 = vpop.eup %2823  ;;  %2845 = vpow2.f32 %v890_v55  ;;  %v857_v12 = vsub.f32 %v3314_v59, %v3577_v40  ;;  %v1769_v23 = vsel %vm1767_vm5, %v4897_v27, %v1766_v58  ;;  %v1643_v59 = vmul.f32 2.0, %v3496_v38  ;;  %v1595_v5 = vpop.f32.mrf.mxu0 }
 0x250   : > { %v2826_v53 = vpop.eup %2825  ;;  %2847 = vpow2.f32 %v884_v57  ;;  %v1677_v40 = vsub.f32 2.0, %v1645_v50  ;;  %v1674_v49 = vsub.f32 2.0, %v1642_v44  ;;  %vm1793_vm9 = vcmp.eq.f32.partialorder %v3475_v33, inf }
 0x251   : > { %v2828_v55 = vpop.eup %2827  ;;  %v886_v14 = vmul.f32 1.442695, %v857_v12  ;;  %902 = vadd.xlane.f32.xlu1 %v2826_v53  ;;  %2849 = vrsqrt.f32 %v3572_v15  ;;  %v1599_v38 = vpop.f32.mrf.mxu0  ;;  %v1981_v58 = vsub.f32 0.5, %v1769_v23  ;;  %v2012_v50 = vmax.f32 %v1980_v28, 0.0 }
 0x252   : > { %v3596_v34 = vpop.eup %2829  ;;  %912 = vadd.xlane.f32.xlu0 %v2828_v55  ;;  %v1785_v53 = vmul.f32 %v2822_v54, %v3465_v4  ;;  %v3604_v12 = vadd.f32 1e-12, %v3574_v2  ;;  %v3607_v44 = vadd.f32 1e-12, %v3590_v22  ;;  %v3609_v27 = vmax.f32 %v1676_v41, 0.0  ;;  %v3625_v2 = vld [vmem:[%s3052_s21 + $0x8] sm:$0xff]  }
 0x253   : > { %4898 = vst [vmem:[#allocation67_spill] sm:$0xff] %v3596_v34  ;;  %2851 = vpow2.f32 %v886_v14  ;;  %v1647_v55 = vmul.f32 2.0, %v1595_v5  ;;  %v1675_v23 = vsub.f32 2.0, %v1643_v59  ;;  %v3614_v28 = vmax.f32 %v1677_v40, 0.0  ;;  %v1601_v40 = vpop.f32.mrf.mxu0 }
 0x254   : > { %v2832_v31 = vpop.eup %2831  ;;  %4899 = vst [vmem:[#allocation68_spill] sm:$0xff] %v3604_v12  ;;  %2853 = vrsqrt.f32 %v3588_v11  ;;  %v1678_v54 = vsub.f32 2.0, %v1646_v24  ;;  %vm1795_vm11 = vcmp.eq.f32.partialorder %v3475_v33, 0.0  ;;  %v3619_v57 = vmax.f32 %v1674_v49, 0.0 }
 0x255   : > { %v2834_v18 = vpop.eup %2833  ;;  %4900 = vst [vmem:[#allocation69_spill] sm:$0xff] %v3614_v28  ;;  %914 = vadd.xlane.f32.xlu1 %v2832_v31  ;;  %v4903_v5 = vunpack.c.l.bf16 %v3060_v3  ;;  %v413_v15 = vunpack.c.h.bf16 %v3625_v2  ;;  %v1648_v24 = vmul.f32 2.0, %v1599_v38  ;;  %v2013_v31 = vmax.f32 %v1981_v58, 0.0 }
 0x256   : > { %v3617_v14 = vpop.eup %2835  ;;  %4902 = vst [vmem:[#allocation71_spill] sm:$0xff] %v3619_v57  ;;  %908 = vadd.xlane.f32.xlu0 %v2834_v18  ;;  %v1787_v49 = vsel %vm1786_vm6, %v3465_v4, %v1785_v53  ;;  %2855 = vrsqrt.f32 %v3607_v44  ;;  %v1649_v34 = vmul.f32 2.0, %v1601_v40  ;;  %v3638_v35 = vmax.f32 %v1675_v23, 0.0  ;;  %v3651_v23 = vld [vmem:[%s3052_s21 + $0x10] sm:$0xff]  }
 0x257   : > { %4901 = vst [vmem:[#allocation70_spill] sm:$0xff] %v3617_v14  ;;  %v2209_v41 = vsub.f32 %v4903_v5, %v3070_v8  ;;  %v2044_v14 = vmul.f32 %v2012_v50, %v2012_v50  ;;  %v3636_v8 = vadd.f32 1e-12, %v3609_v27  ;;  %v1679_v5 = vsub.f32 2.0, %v1647_v55 }
 0x258   : > { %v2838_v18 = vpop.eup %2837  ;;  %4904 = vst [vmem:[#allocation72_spill] sm:$0xff] %v3638_v35  ;;  %v3641_v38 = vadd.f32 1e-12, %v3614_v28  ;;  %v3643_v58 = vmax.f32 %v1678_v54, 0.0  ;;  %v1792_v50 = vmul.f32 %v3579_v36, %v3475_v33  ;;  %vm1814_vm13 = vcmp.eq.f32.partialorder %v3540_v10, inf }
 0x259   : > { %v2840_v42 = vpop.eup %2839  ;;  %910 = vadd.xlane.f32.xlu1 %v2838_v18  ;;  %2857 = vrsqrt.f32 %v3604_v12  ;;  %v2225_v55 = vadd.f32 1e-06, %v2209_v41  ;;  %v2212_v40 = vsub.f32 %v413_v15, %v3079_v13  ;;  %v415_v59 = vunpack.c.h.bf16 %v3651_v23 }
 0x25a   : > { %v2842_v53 = vpop.eup %2841  ;;  %920 = vadd.xlane.f32.xlu0 %v2840_v42  ;;  %v3655_v54 = vadd.f32 1e-12, %v3619_v57  ;;  %v1680_v18 = vsub.f32 2.0, %v1648_v24  ;;  %v2045_v28 = vmul.f32 %v2013_v31, %v2013_v31  ;;  %v2076_v36 = vsel %vm1247_vm7, %v3346_v52, %v2044_v14 }
 0x25b   : > { %v2844_v51 = vpop.eup %2843  ;;  %2859 = vrsqrt.f32 %v3636_v8  ;;  %v3662_v13 = vmax.f32 %v1679_v5, 0.0  ;;  %v1681_v42 = vsub.f32 2.0, %v1649_v34  ;;  %v4906_v15 = vand.u32 2147483648, %v3465_v4  ;;  %v3683_v5 = vld [vmem:[%s3052_s21 + $0x18] sm:$0xff]  }
 0x25c   : > { %4905 = vst [vmem:[#allocation73_spill] sm:$0xff] %v3655_v54  ;;  %v2846_v12 = vpop.eup %2845  ;;  %v3671_v31 = vadd.f32 1e-12, %v3638_v35  ;;  %2861 = vrsqrt.f32 %v3641_v38  ;;  %v3675_v52 = vadd.f32 1e-12, %v3643_v58  ;;  %v1794_v34 = vsel %vm1793_vm9, %v3475_v33, %v1792_v50 }
 0x25d   : > { %v1790_v41 = vsel %vm1788_vm8, %v4906_v15, %v1787_v49  ;;  %v2848_v24 = vpop.eup %2847  ;;  %922 = vadd.xlane.f32.xlu1 %v2846_v12  ;;  %vm1816_vm15 = vcmp.eq.f32.partialorder %v3540_v10, 0.0  ;;  %v2241_v14 = vmul.f32 %v2225_v55, %v2225_v55  ;;  %v2228_v4 = vadd.f32 1e-06, %v2212_v40 }
 0x25e   : > { %4907 = vst [vmem:[#allocation74_spill] sm:$0xff] %v3671_v31  ;;  %916 = vadd.xlane.f32.xlu0 %v2848_v24  ;;  %v2214_v49 = vsub.f32 %v415_v59, %v3094_v21  ;;  %v417_v15 = vunpack.c.h.bf16 %v3683_v5  ;;  %v3686_v35 = vpop.eup %2849  ;;  %2863 = vrsqrt.f32 %v3655_v54  ;;  %v3689_v12 = vmax.f32 %v1680_v18, 0.0 }
 0x25f   : > { %4908 = vst [vmem:[#allocation75_spill] sm:$0xff] %v3686_v35  ;;  %v2077_v50 = vsel %vm1248_vm10, %v3366_v46, %v2045_v28  ;;  %v1984_v24 = vsub.f32 0.5, %v1790_v41  ;;  %v3696_v40 = vadd.f32 1e-12, %v3662_v13  ;;  %v3698_v21 = vmax.f32 %v1681_v42, 0.0 }
 0x260   : > { %v2852_v55 = vpop.eup %2851  ;;  %v4910_v59 = vand.u32 2147483648, %v3475_v33  ;;  %v1813_v18 = vmul.f32 %v2842_v53, %v3540_v10  ;;  %2865 = vrsqrt.f32 %v3675_v52  ;;  %v2108_v46 = vsel %vm1315_vm12, %v2076_v36, 0.0 }
 0x261   : > { %4909 = vst [vmem:[#allocation76_spill] sm:$0xff] %v3698_v21  ;;  %918 = vadd.xlane.f32.xlu1 %v2852_v55  ;;  %v1820_v28 = vmul.f32 %v2844_v51, %v3545_v43  ;;  %vm1821_vm2 = vcmp.eq.f32.partialorder %v3545_v43, inf  ;;  %v2854_v42 = vpop.eup %2853  ;;  %v2257_v33 = vsel %vm505_vm0, %v2241_v14, 0.0  ;;  %v2244_v41 = vmul.f32 %v2228_v4, %v2228_v4 }
 0x262   : > { %v1797_v57 = vsel %vm1795_vm11, %v4910_v59, %v1794_v34  ;;  %v2230_v34 = vadd.f32 1e-06, %v2214_v49  ;;  %v2216_v53 = vsub.f32 %v417_v15, %v3107_v30  ;;  %2867 = vrsqrt.f32 %v3671_v31  ;;  %v1603_v15 = vpop.f32.mrf.mxu0 }
 0x263   : > { %v3717_v55 = vadd.f32 1e-12, %v3689_v12  ;;  %v1985_v36 = vsub.f32 0.5, %v1797_v57  ;;  %v2016_v59 = vmax.f32 %v1984_v24, 0.0  ;;  %2869 = vrsqrt.f32 %v3696_v40  ;;  %v2856_v14 = vpop.eup %2855 }
 0x264   : > { %v3721_v51 = vadd.f32 1e-12, %v3698_v21  ;;  %vm1252_vm3 = vcmp.eq.s32.totalorder %v3324_v6, %v3376_v7  ;;  %v1815_v30 = vsel %vm1814_vm13, %v3540_v10, %v1813_v18  ;;  %vm1823_vm4 = vcmp.eq.f32.partialorder %v3545_v43, 0.0  ;;  %v3737_v18 = vld [vmem:[%s3052_s21 + $0x20] sm:$0xff]  }
 0x265   : > { %2258 = vadd.xlane.f32.xlu1 %v2257_v33  ;;  %v1822_v57 = vsel %vm1821_vm2, %v3545_v43, %v1820_v28  ;;  %v1824_v4 = vand.u32 2147483648, %v3545_v43  ;;  %v1841_v49 = vmul.f32 %v2854_v42, %v3588_v11  ;;  %vm1842_vm5 = vcmp.eq.f32.partialorder %v3588_v11, inf }
 0x266   : > { %v2266_v24 = vsel %vm505_vm0, %v2244_v41, 0.0  ;;  %v2246_v32 = vmul.f32 %v2230_v34, %v2230_v34  ;;  %v2232_v31 = vadd.f32 1e-06, %v2216_v53  ;;  %v419_v54 = vunpack.c.h.bf16 %v3737_v18  ;;  %v3740_v33 = vpop.eup %2857 }
 0x267   : > { %4911 = vst [vmem:[#allocation77_spill] sm:$0xff] %v3740_v33  ;;  %2871 = vrsqrt.f32 %v3717_v55  ;;  %v1650_v28 = vmul.f32 2.0, %v1603_v15  ;;  %v2109_v42 = vsel %vm1316_vm14, %v2077_v50, 0.0  ;;  %v2017_v35 = vmax.f32 %v1985_v36, 0.0 }
 0x268   : > { %2873 = vrsqrt.f32 %v3721_v51  ;;  %vm1319_vm6 = vcmp.ne.s32.totalorder %v3389_v60, %v3360_v25  ;;  %v2048_v41 = vmul.f32 %v2016_v59, %v2016_v59  ;;  %v4912_v34 = vand.u32 2147483648, %v3540_v10  ;;  %v2860_v21 = vpop.eup %2859 }
 0x269   : > { %v1845_v33 = vand.u32 2147483648, %v3588_v11  ;;  %2267 = vadd.xlane.f32.xlu1 %v2266_v24  ;;  %vm1320_vm7 = vcmp.ne.s32.totalorder %v3389_v60, %v3386_v17  ;;  %v1825_v48 = vsel %vm1823_vm4, %v1824_v4, %v1822_v57  ;;  %v1843_v50 = vsel %vm1842_vm5, %v3588_v11, %v1841_v49  ;;  %v2862_v10 = vpop.eup %2861  ;;  %v3783_v49 = vld [vmem:[%s3052_s21 + $0x28] sm:$0xff]  }
 0x26a   : > { %v1818_v53 = vsel %vm1816_vm15, %v4912_v34, %v1815_v30  ;;  %vm1844_vm8 = vcmp.eq.f32.partialorder %v3588_v11, 0.0  ;;  %v1848_v36 = vmul.f32 %v2856_v14, %v3607_v44  ;;  %v2272_v59 = vsel %vm505_vm0, %v2246_v32, 0.0 }
 0x26b   : > { %v2248_v30 = vmul.f32 %v2232_v31, %v2232_v31  ;;  %v2218_v15 = vsub.f32 %v419_v54, %v3122_v39  ;;  %vm1849_vm9 = vcmp.eq.f32.partialorder %v3607_v44, inf  ;;  %v1682_v24 = vsub.f32 2.0, %v1650_v28  ;;  %v3766_v4 = vpop.eup %2863 }
 0x26c   : > { %v2140_v34 = vadd.f32 %v2109_v42, %v2108_v46  ;;  %v2049_v43 = vmul.f32 %v2017_v35, %v2017_v35  ;;  %v1988_v57 = vsub.f32 0.5, %v1818_v53  ;;  %vm1255_vm10 = vcmp.eq.s32.totalorder %v3328_v16, %v3374_v1 }
 0x26d   : > { %v2080_v32 = vsel %vm1251_vm1, %v3432_v61, %v2048_v41  ;;  %v1989_v11 = vsub.f32 0.5, %v1825_v48  ;;  %v1846_v31 = vsel %vm1844_vm8, %v1845_v33, %v1843_v50  ;;  %v1852_v39 = vand.u32 2147483648, %v3607_v44  ;;  %2273 = vadd.xlane.f32.xlu1 %v2272_v59  ;;  %v2866_v46 = vpop.eup %2865 }
 0x26e   : > { %vm1256_vm11 = vcmp.eq.s32.totalorder %v3328_v16, %v3376_v7  ;;  %v1850_v35 = vsel %vm1849_vm9, %v3607_v44, %v1848_v36  ;;  %vm1851_vm12 = vcmp.eq.f32.partialorder %v3607_v44, 0.0  ;;  %v1869_v54 = vmul.f32 %v2860_v21, %v3636_v8 }
 0x26f   : > { %vm1870_vm13 = vcmp.eq.f32.partialorder %v3636_v8, inf  ;;  %v2278_v14 = vsel %vm505_vm0, %v2248_v30, 0.0  ;;  %v2234_v61 = vadd.f32 1e-06, %v2218_v15  ;;  %v421_v33 = vunpack.c.h.bf16 %v3783_v49  ;;  %v3794_v41 = vpop.eup %2867 }
 0x270   : > { %v1876_v28 = vmul.f32 %v2862_v10, %v3641_v38  ;;  %v3787_v42 = vmax.f32 %v1682_v24, 0.0  ;;  %v2081_v44 = vsel %vm1252_vm3, %v3446_v37, %v2049_v43  ;;  %v2020_v21 = vmax.f32 %v1988_v57, 0.0  ;;  %v2870_v59 = vpop.eup %2869  ;;  %v987_v10 = vld [vmem:[%s3194_s25 + $0x78] sm:$0xff] }
 0x271   : > { %vm1877_vm14 = vcmp.eq.f32.partialorder %v3641_v38, inf  ;;  %v2021_v53 = vmax.f32 %v1989_v11, 0.0  ;;  %v1853_v48 = vsel %vm1851_vm12, %v1852_v39, %v1850_v35  ;;  %v1992_v50 = vsub.f32 0.5, %v1846_v31  ;;  %2279 = vadd.xlane.f32.xlu1 %v2278_v14 }
 0x272   : > { %v1873_v36 = vand.u32 2147483648, %v3636_v8  ;;  %v1871_v30 = vsel %vm1870_vm13, %v3636_v8, %v1869_v54  ;;  %vm1872_vm15 = vcmp.eq.f32.partialorder %v3636_v8, 0.0  ;;  %vm1879_vm1 = vcmp.eq.f32.partialorder %v3641_v38, 0.0 }
 0x273   : > { %v1880_v37 = vand.u32 2147483648, %v3641_v38  ;;  %v2250_v15 = vmul.f32 %v2234_v61, %v2234_v61  ;;  %v2220_v24 = vsub.f32 %v421_v33, %v3135_v47  ;;  %v1878_v43 = vsel %vm1877_vm14, %v3641_v38, %v1876_v28 }
 0x274   : > { %v1883_v57 = vmul.f32 %v2866_v46, %v3675_v52  ;;  %v2112_v11 = vsel %vm1319_vm6, %v2080_v32, 0.0  ;;  %v2052_v31 = vmul.f32 %v2020_v21, %v2020_v21  ;;  %v1993_v39 = vsub.f32 0.5, %v1853_v48  ;;  %v2872_v35 = vpop.eup %2871  ;;  %1036 = vperm.xlu0 %2737, %v987_v10  }
 0x275   : > { %vm1884_vm2 = vcmp.eq.f32.partialorder %v3675_v52, inf  ;;  %v2113_v54 = vsel %vm1320_vm7, %v2081_v44, 0.0  ;;  %v2053_v47 = vmul.f32 %v2021_v53, %v2021_v53  ;;  %v2024_v14 = vmax.f32 %v1992_v50, 0.0  ;;  %v2874_v61 = vpop.eup %2873  ;;  %2141 = vadd.xlane.f32.xlu1 %v2140_v34  ;;  %v3833_v34 = vld [vmem:[%s3052_s21 + $0x30] sm:$0xff]  }
 0x276   : > { %v1874_v46 = vsel %vm1872_vm15, %v1873_v36, %v1871_v30  ;;  %vm1259_vm3 = vcmp.eq.s32.totalorder %v3334_v26, %v3374_v1  ;;  %v3819_v32 = vadd.f32 1e-12, %v3787_v42  ;;  %vm1323_vm4 = vcmp.ne.s32.totalorder %v3405_v63, %v3360_v25 }
 0x277   : > { %vm1324_vm5 = vcmp.ne.s32.totalorder %v3405_v63, %v3386_v17  ;;  %v1881_v60 = vsel %vm1879_vm1, %v1880_v37, %v1878_v43  ;;  %vm1886_vm6 = vcmp.eq.f32.partialorder %v3675_v52, 0.0  ;;  %v1887_v8 = vand.u32 2147483648, %v3675_v52  ;;  %v4913_v43 = vld [vmem:[#allocation8_spill] sm:$0xff] }
 0x278   : > { %vm1260_vm7 = vcmp.eq.s32.totalorder %v3334_v26, %v3376_v7  ;;  %v2284_v33 = vsel %vm505_vm0, %v2250_v15, 0.0  ;;  %v2236_v28 = vadd.f32 1e-06, %v2220_v24  ;;  %v423_v44 = vunpack.c.h.bf16 %v3833_v34 }
 0x279   : > { %v1885_v21 = vsel %vm1884_vm2, %v3675_v52, %v1883_v57  ;;  %v2146_v38 = vadd.f32 %v2113_v54, %v2112_v11  ;;  %v2084_v53 = vsel %vm1255_vm10, %v3519_v45, %v2052_v31  ;;  %v2025_v48 = vmax.f32 %v1993_v39, 0.0  ;;  %2285 = vadd.xlane.f32.xlu1 %v2284_v33 }
 0x27a   : > { %v1996_v50 = vsub.f32 0.5, %v1874_v46  ;;  %v2085_v36 = vsel %vm1256_vm11, %v3521_v20, %v2053_v47  ;;  %v2056_v10 = vmul.f32 %v2024_v14, %v2024_v14  ;;  %v1997_v30 = vsub.f32 0.5, %v1881_v60  ;;  %v1605_v20 = vpop.f32.mrf.mxu0 }
 0x27b   : > { %v1890_v37 = vmul.f32 %v2870_v59, %v3696_v40  ;;  %v1897_v15 = vmul.f32 %v2872_v35, %v3717_v55  ;;  %v1904_v24 = vmul.f32 %v2874_v61, %v3721_v51  ;;  %vm1327_vm8 = vcmp.ne.s32.totalorder %v3408_v0, %v3360_v25 }
 0x27c   : > { %v1888_v45 = vsel %vm1886_vm6, %v1887_v8, %v1885_v21  ;;  %vm1891_vm9 = vcmp.eq.f32.partialorder %v3696_v40, inf  ;;  %vm1263_vm10 = vcmp.eq.s32.totalorder %v3368_v62, %v3374_v1  ;;  %vm1264_vm11 = vcmp.eq.s32.totalorder %v3368_v62, %v3376_v7  ;;  %v1609_v60 = vpop.f32.mrf.mxu0  ;;  %v4914_v21 = vld [vmem:[#allocation43_spill] sm:$0xff] }
 0x27d   : > { %vm1898_vm12 = vcmp.eq.f32.partialorder %v3717_v55, inf  ;;  %vm1905_vm13 = vcmp.eq.f32.partialorder %v3721_v51, inf  ;;  %v2252_v59 = vmul.f32 %v2236_v28, %v2236_v28  ;;  %v2222_v57 = vsub.f32 %v423_v44, %v4913_v43  ;;  %2147 = vadd.xlane.f32.xlu1 %v2146_v38  ;;  %v3875_v28 = vld [vmem:[%s3052_s21 + $0x38] sm:$0xff]   ;;  %v4915_v38 = vld [vmem:[#allocation34_spill] sm:$0xff]  ;;  %s2557_s21 = sshll.u32 %s5005_s10, 3 }
 0x27e   : > { %vm1328_vm14 = vcmp.ne.s32.totalorder %v3408_v0, %v3386_v17  ;;  %v2057_v52 = vmul.f32 %v2025_v48, %v2025_v48  ;;  %v2028_v11 = vmax.f32 %v1996_v50, 0.0  ;;  %vm1893_vm15 = vcmp.eq.f32.partialorder %v3696_v40, 0.0  ;;  %s376_s16 = scalar_lea.vmem %s4748_s9, %s2557_s21 }
 0x27f   : > { %v1894_v31 = vand.u32 2147483648, %v3696_v40  ;;  %v1901_v39 = vand.u32 2147483648, %v3717_v55  ;;  %v2029_v35 = vmax.f32 %v1997_v30, 0.0  ;;  %v1892_v54 = vsel %vm1891_vm9, %v3696_v40, %v1890_v37 }
 0x280   : > { %v1998_v47 = vsub.f32 0.5, %v1888_v45  ;;  %v1899_v14 = vsel %vm1898_vm12, %v3717_v55, %v1897_v15  ;;  %vm1900_vm1 = vcmp.eq.f32.partialorder %v3717_v55, 0.0  ;;  %v1906_v46 = vsel %vm1905_vm13, %v3721_v51, %v1904_v24 }
 0x281   : > { %v1908_v61 = vand.u32 2147483648, %v3721_v51  ;;  %vm1907_vm2 = vcmp.eq.f32.partialorder %v3721_v51, 0.0  ;;  %v2290_v8 = vsel %vm505_vm0, %v2252_v59, 0.0  ;;  %v2238_v33 = vadd.f32 1e-06, %v2222_v57 }
 0x282   : > { %v425_v44 = vunpack.c.h.bf16 %v3875_v28  ;;  %vm1331_vm6 = vcmp.ne.s32.totalorder %v4914_v21, %v3360_v25  ;;  %vm1332_vm9 = vcmp.ne.s32.totalorder %v4914_v21, %v3386_v17  ;;  %vm1772_vm12 = vcmp.eq.f32.partialorder %v3436_v19, inf  ;;  %2291 = vadd.xlane.f32.xlu1 %v2290_v8 }
 0x283   : > { %2875 = vrsqrt.f32 %v3819_v32  ;;  %v1651_v48 = vmul.f32 2.0, %v1605_v20  ;;  %v3886_v50 = vmul.f32 2.0, %v1609_v60  ;;  %v1895_v30 = vsel %vm1893_vm15, %v1894_v31, %v1892_v54  ;;  %v4917_v31 = vld [vmem:[#allocation2_spill] sm:$0xff] }
 0x284   : > { %v1902_v37 = vsel %vm1900_vm1, %v1901_v39, %v1899_v14  ;;  %v2116_v15 = vsel %vm1323_vm4, %v2084_v53, 0.0  ;;  %v2117_v24 = vsel %vm1324_vm5, %v2085_v36, 0.0  ;;  %v2088_v45 = vsel %vm1259_vm3, %v3566_v9, %v2056_v10  ;;  %v4916_v36 = vld [vmem:[#allocation10_spill] sm:$0xff] }
 0x285   : > { %vm1779_vm13 = vcmp.eq.f32.partialorder %v3444_v29, inf  ;;  %v1909_v40 = vsel %vm1907_vm2, %v1908_v61, %v1906_v46  ;;  %v2089_v55 = vsel %vm1260_vm7, %v3590_v22, %v2057_v52  ;;  %v2060_v53 = vmul.f32 %v2028_v11, %v2028_v11  ;;  %v4919_v46 = vld [vmem:[#allocation69_spill] sm:$0xff] }
 0x286   : > { %v2061_v20 = vmul.f32 %v2029_v35, %v2029_v35  ;;  %vm1774_vm4 = vcmp.eq.f32.partialorder %v3436_v19, 0.0  ;;  %v2254_v63 = vmul.f32 %v2238_v33, %v2238_v33  ;;  %v2224_v59 = vsub.f32 %v425_v44, %v4916_v36 }
 0x287   : > { %vm1333_vm3 = vcmp.ne.s32.totalorder %v3516_v56, %v3360_v25  ;;  %v1999_v9 = vsub.f32 0.5, %v1895_v30  ;;  %v2030_v10 = vmax.f32 %v1998_v47, 0.0  ;;  %vm1266_vm5 = vcmp.eq.s32.totalorder %v4915_v38, %v3376_v7  ;;  %v4921_v30 = vld [vmem:[#allocation63_spill] sm:$0xff] }
 0x288   : > { %v1683_v51 = vsub.f32 2.0, %v1651_v48  ;;  %v1684_v43 = vsub.f32 2.0, %v3886_v50  ;;  %v2000_v57 = vsub.f32 0.5, %v1902_v37  ;;  %v2152_v22 = vadd.f32 %v2117_v24, %v2116_v15 }
 0x289   : > { %vm1781_vm7 = vcmp.eq.f32.partialorder %v3444_v29, 0.0  ;;  %v2001_v52 = vsub.f32 0.5, %v1909_v40  ;;  %v2120_v11 = vsel %vm1327_vm8, %v2088_v45, 0.0  ;;  %v4918_v39 = vunpack.c.h.bf16 %v3060_v3  ;;  %v4920_v3 = vld [vmem:[#allocation59_spill] sm:$0xff] }
 0x28a   : > { %v412_v54 = vunpack.c.l.bf16 %v3625_v2  ;;  %2153 = vadd.xlane.f32.xlu1 %v2152_v22  ;;  %v2121_v47 = vsel %vm1328_vm14, %v2089_v55, 0.0  ;;  %v2092_v14 = vsel %vm1263_vm10, %v3609_v27, %v2060_v53  ;;  %v2093_v61 = vsel %vm1264_vm11, %v4919_v46, %v2061_v20  ;;  %v4922_v40 = vld [vmem:[#allocation3_spill] sm:$0xff]  ;;  %v4925_v22 = vld [vmem:[#allocation4_spill] sm:$0xff] }
 0x28b   : > { %v2210_v35 = vsub.f32 %v4918_v39, %v4917_v31  ;;  %v1771_v60 = vmul.f32 %v4920_v3, %v3436_v19  ;;  %v2296_v2 = vsel %vm505_vm0, %v2254_v63, 0.0  ;;  %v2240_v8 = vadd.f32 1e-06, %v2224_v59  ;;  %v4923_v63 = vld [vmem:[#allocation32_spill] sm:$0xff] }
 0x28c   : > { %vm1334_vm8 = vcmp.ne.s32.totalorder %v3516_v56, %v3386_v17  ;;  %v2031_v0 = vmax.f32 %v1999_v9, 0.0  ;;  %v2062_v33 = vmul.f32 %v2030_v10, %v2030_v10  ;;  %v3940_v44 = vmax.f32 %v1683_v51, 0.0  ;;  %v4927_v46 = vld [vmem:[#allocation36_spill] sm:$0xff] }
 0x28d   : > { %v2032_v48 = vmax.f32 %v2000_v57, 0.0  ;;  %v414_v27 = vunpack.c.l.bf16 %v3651_v23  ;;  %v1778_v37 = vmul.f32 %v4921_v30, %v3444_v29  ;;  %v2033_v15 = vmax.f32 %v2001_v52, 0.0  ;;  %v4928_v3 = vld [vmem:[#allocation52_spill] sm:$0xff] }
 0x28e   : > { %v2158_v24 = vadd.f32 %v2121_v47, %v2120_v11  ;;  %v2226_v45 = vadd.f32 1e-06, %v2210_v35  ;;  %v2211_v55 = vsub.f32 %v412_v54, %v4922_v40  ;;  %2297 = vadd.xlane.f32.xlu1 %v2296_v2  ;;  %v2124_v53 = vsel %vm1331_vm6, %v2092_v14, 0.0 }
 0x28f   : > { %v2125_v20 = vsel %vm1332_vm9, %v2093_v61, 0.0  ;;  %v1290_v36 = vadd.s32 80, %v4923_v63  ;;  %v1773_v23 = vsel %vm1772_vm12, %v3436_v19, %v1771_v60  ;;  %v2256_v59 = vmul.f32 %v2240_v8, %v2240_v8  ;;  %v4929_v60 = vld [vmem:[#allocation67_spill] sm:$0xff] }
 0x290   : > { %v2063_v9 = vmul.f32 %v2031_v0, %v2031_v0  ;;  %vm4924_vm10 = vcmp.eq.s32.totalorder %v4915_v38, %v3374_v1  ;;  %v1782_v51 = vand.u32 2147483648, %v3444_v29  ;;  %v2064_v57 = vmul.f32 %v2032_v48, %v2032_v48  ;;  %v3966_v31 = vpop.eup %2875 }
 0x291   : > { %v2094_v10 = vsel %vm4924_vm10, %v3643_v58, %v2062_v33  ;;  %v2213_v52 = vsub.f32 %v414_v27, %v4925_v22  ;;  %v416_v21 = vunpack.c.l.bf16 %v3683_v5  ;;  %v1780_v11 = vsel %vm1779_vm13, %v3444_v29, %v1778_v37  ;;  %v3986_v33 = vpop.permute.xlu1 %1021  ;;  %v4930_v27 = vld [vmem:[#allocation5_spill] sm:$0xff] }
 0x292   : > { %v2065_v39 = vmul.f32 %v2033_v15, %v2033_v15  ;;  %v2242_v35 = vmul.f32 %v2226_v45, %v2226_v45  ;;  %v2227_v54 = vadd.f32 1e-06, %v2211_v55  ;;  %v4926_v47 = vand.u32 2147483648, %v3436_v19  ;;  %2159 = vadd.xlane.f32.xlu1 %v2158_v24  ;;  %v4931_v15 = vld [vmem:[#allocation56_spill] sm:$0xff]  ;;  %v4932_v24 = vld [vmem:[#allocation70_spill] sm:$0xff] }
 0x293   : > { %v2164_v14 = vadd.f32 %v2125_v20, %v2124_v53  ;;  %v2126_v5 = vsel %vm1333_vm3, %v2094_v10, 0.0  ;;  %v1308_v61 = vadd.s32 %v4927_v46, %v1290_v36  ;;  %v1799_v2 = vmul.f32 %v4929_v60, %v4928_v3  ;;  %v1611_v36 = vpop.f32.mrf.mxu0 }
 0x294   : > { %v1776_v58 = vsel %vm1774_vm4, %v4926_v47, %v1773_v23  ;;  %v2302_v8 = vsel %vm505_vm0, %v2256_v59, 0.0  ;;  %v2095_v0 = vsel %vm1266_vm5, %v3662_v13, %v2063_v9  ;;  %v1783_v19 = vsel %vm1781_vm7, %v1782_v51, %v1780_v11  ;;  %v4933_v9 = vld [vmem:[#allocation28_spill] sm:$0xff] }
 0x295   : > { %vm1800_vm11 = vcmp.eq.f32.partialorder %v4928_v3, inf  ;;  %v2229_v48 = vadd.f32 1e-06, %v2213_v52  ;;  %v2215_v30 = vsub.f32 %v416_v21, %v4930_v27  ;;  %v1982_v37 = vsub.f32 0.5, %v1776_v58  ;;  %v4934_v52 = vld [vmem:[#allocation6_spill] sm:$0xff]  ;;  %v1613_v50 = vpop.f32.mrf.mxu0  ;;  %v4936_v58 = vld [vmem:[#allocation44_spill] sm:$0xff] }
 0x296   : > { %v1806_v45 = vmul.f32 %v4932_v24, %v4931_v15  ;;  %v2260_v40 = vsel %vm505_vm0, %v2242_v35, 0.0  ;;  %v2243_v55 = vmul.f32 %v2227_v54, %v2227_v54  ;;  %v418_v53 = vunpack.c.l.bf16 %v3737_v18  ;;  %2303 = vadd.xlane.f32.xlu1 %v2302_v8  ;;  %v4935_v35 = vld [vmem:[#allocation76_spill] sm:$0xff]  ;;  %v4940_v24 = vld [vmem:[#allocation77_spill] sm:$0xff] }
 0x297   : > { %vm1807_vm14 = vcmp.eq.f32.partialorder %v4931_v15, inf  ;;  %v2127_v29 = vsel %vm1334_vm8, %v2095_v0, 0.0  ;;  %v1983_v13 = vsub.f32 0.5, %v1783_v19  ;;  %v1801_v20 = vsel %vm1800_vm11, %v4928_v3, %v1799_v2  ;;  %2261 = vadd.xlane.f32.xlu0 %v2260_v40  ;;  %v1615_v40 = vpop.f32.mrf.mxu0 }
 0x298   : > { %vm1802_vm15 = vcmp.eq.f32.partialorder %v4928_v3, 0.0  ;;  %vm1267_vm1 = vcmp.eq.s32.totalorder %v3986_v33, %v3374_v1  ;;  %vm1268_vm2 = vcmp.eq.s32.totalorder %v3986_v33, %v3376_v7  ;;  %v1803_v18 = vand.u32 2147483648, %v4928_v3 }
 0x299   : > { %v1810_v23 = vand.u32 2147483648, %v4931_v15  ;;  %v2245_v59 = vmul.f32 %v2229_v48, %v2229_v48  ;;  %v2231_v56 = vadd.f32 1e-06, %v2215_v30  ;;  %vm1249_vm6 = vcmp.eq.s32.totalorder %v4933_v9, %v3374_v1 }
 0x29a   : > { %v1808_v10 = vsel %vm1807_vm14, %v4931_v15, %v1806_v45  ;;  %vm1809_vm9 = vcmp.eq.f32.partialorder %v4931_v15, 0.0  ;;  %v4011_v51 = vmax.f32 %v1684_v43, 0.0  ;;  %v2263_v22 = vsel %vm505_vm0, %v2243_v55, 0.0  ;;  %2165 = vadd.xlane.f32.xlu1 %v2164_v14  ;;  %v4938_v14 = vld [vmem:[#allocation75_spill] sm:$0xff]  ;;  %v4939_v15 = vld [vmem:[#allocation68_spill] sm:$0xff] }
 0x29b   : > { %vm1335_vm12 = vcmp.ne.s32.totalorder %v1308_v61, %v3360_v25  ;;  %v2217_v21 = vsub.f32 %v418_v53, %v4934_v52  ;;  %vm1250_vm13 = vcmp.eq.s32.totalorder %v4933_v9, %v3376_v7  ;;  %v2096_v11 = vsel %vm1267_vm1, %v3689_v12, %v2064_v57  ;;  %2264 = vadd.xlane.f32.xlu0 %v2263_v22 }
 0x29c   : > { %v2097_v54 = vsel %vm1268_vm2, %v4935_v35, %v2065_v39  ;;  %vm1336_vm4 = vcmp.ne.s32.totalorder %v1308_v61, %v3386_v17  ;;  %v2014_v47 = vmax.f32 %v1982_v37, 0.0  ;;  %v2167_v43 = vadd.f32 %v2127_v29, %v2126_v5  ;;  %v4937_v39 = vld [vmem:[#allocation64_spill] sm:$0xff]  ;;  %v4941_v61 = vld [vmem:[#allocation29_spill] sm:$0xff] }
 0x29d   : > { %vm1317_vm3 = vcmp.ne.s32.totalorder %v4936_v58, %v3360_v25  ;;  %v2015_v60 = vmax.f32 %v1983_v13, 0.0  ;;  %v1804_v2 = vsel %vm1802_vm15, %v1803_v18, %v1801_v20  ;;  %v1811_v8 = vsel %vm1809_vm9, %v1810_v23, %v1808_v10  ;;  %v4942_v23 = vld [vmem:[#allocation7_spill] sm:$0xff] }
 0x29e   : > { %v2269_v12 = vsel %vm505_vm0, %v2245_v59, 0.0  ;;  %v2247_v57 = vmul.f32 %v2231_v56, %v2231_v56  ;;  %vm1318_vm5 = vcmp.ne.s32.totalorder %v4936_v58, %v3386_v17  ;;  %v1827_v5 = vmul.f32 %v4938_v14, %v4937_v39  ;;  %2168 = vadd.xlane.f32.xlu1 %v2167_v43  ;;  %v4944_v43 = vld [vmem:[#allocation40_spill] sm:$0xff] }
 0x29f   : > { %vm1828_vm7 = vcmp.eq.f32.partialorder %v4937_v39, inf  ;;  %v2128_v0 = vsel %vm1335_vm12, %v2096_v11, 0.0  ;;  %v2129_v3 = vsel %vm1336_vm4, %v2097_v54, 0.0  ;;  %v2233_v19 = vadd.f32 1e-06, %v2217_v21  ;;  %2270 = vadd.xlane.f32.xlu0 %v2269_v12  ;;  %v4943_v11 = vld [vmem:[#allocation39_spill] sm:$0xff] }
 0x2a0   : > { %v420_v48 = vunpack.c.l.bf16 %v3783_v49  ;;  %v4036_v27 = vmul.f32 2.0, %v1611_v36  ;;  %v4038_v30 = vmul.f32 2.0, %v1613_v50  ;;  %v2046_v37 = vmul.f32 %v2014_v47, %v2014_v47  ;;  %v1619_v50 = vpop.f32.mrf.mxu0  ;;  %v4946_v12 = vld [vmem:[#allocation73_spill] sm:$0xff] }
 0x2a1   : > { %v1834_v45 = vmul.f32 %v4940_v24, %v4939_v15  ;;  %v2047_v55 = vmul.f32 %v2015_v60, %v2015_v60  ;;  %v1986_v53 = vsub.f32 0.5, %v1804_v2  ;;  %v1987_v29 = vsub.f32 0.5, %v1811_v8  ;;  %v4945_v2 = vld [vmem:[#allocation45_spill] sm:$0xff] }
 0x2a2   : > { %vm1835_vm8 = vcmp.eq.f32.partialorder %v4939_v15, inf  ;;  %vm1253_vm10 = vcmp.eq.s32.totalorder %v4941_v61, %v3374_v1  ;;  %v2170_v49 = vadd.f32 %v2129_v3, %v2128_v0  ;;  %v1829_v13 = vsel %vm1828_vm7, %v4937_v39, %v1827_v5 }
 0x2a3   : > { %vm1830_vm11 = vcmp.eq.f32.partialorder %v4937_v39, 0.0  ;;  %v1831_v20 = vand.u32 2147483648, %v4937_v39  ;;  %vm1254_vm14 = vcmp.eq.s32.totalorder %v4941_v61, %v3376_v7  ;;  %v2275_v36 = vsel %vm505_vm0, %v2247_v57, 0.0 }
 0x2a4   : > { %v2249_v18 = vmul.f32 %v2233_v19, %v2233_v19  ;;  %v2219_v59 = vsub.f32 %v420_v48, %v4942_v23  ;;  %v1838_v56 = vand.u32 2147483648, %v4939_v15  ;;  %v4056_v10 = vadd.f32 1e-12, %v3940_v44  ;;  %2171 = vadd.xlane.f32.xlu1 %v2170_v49  ;;  %2276 = vadd.xlane.f32.xlu0 %v2275_v36 }
 0x2a5   : > { %v4058_v22 = vmul.f32 2.0, %v1615_v40  ;;  %v1836_v52 = vsel %vm1835_vm8, %v4939_v15, %v1834_v45  ;;  %vm1837_vm15 = vcmp.eq.f32.partialorder %v4939_v15, 0.0  ;;  %v1685_v21 = vsub.f32 2.0, %v4036_v27  ;;  %v4947_v27 = vld [vmem:[#allocation74_spill] sm:$0xff]  ;;  %v1621_v15 = vpop.f32.mrf.mxu0 }
 0x2a6   : > { %v2078_v35 = vsel %vm1249_vm6, %v4943_v11, %v2046_v37  ;;  %v2018_v54 = vmax.f32 %v1986_v53, 0.0  ;;  %v2019_v47 = vmax.f32 %v1987_v29, 0.0  ;;  %v2079_v60 = vsel %vm1250_vm13, %v4944_v43, %v2047_v55  ;;  %v4949_v53 = vld [vmem:[#allocation9_spill] sm:$0xff] }
 0x2a7   : > { %vm1321_vm1 = vcmp.ne.s32.totalorder %v4945_v2, %v3360_v25  ;;  %vm1322_vm2 = vcmp.ne.s32.totalorder %v4945_v2, %v3386_v17  ;;  %v1832_v8 = vsel %vm1830_vm11, %v1831_v20, %v1829_v13  ;;  %v1855_v57 = vmul.f32 %v3766_v4, %v4946_v12 }
 0x2a8   : > { %vm1856_vm6 = vcmp.eq.f32.partialorder %v4946_v12, inf  ;;  %v2281_v14 = vsel %vm505_vm0, %v2249_v18, 0.0  ;;  %v2235_v5 = vadd.f32 1e-06, %v2219_v59  ;;  %v422_v0 = vunpack.c.l.bf16 %v3833_v34 }
 0x2a9   : > { %v1839_v3 = vsel %vm1837_vm15, %v1838_v56, %v1836_v52  ;;  %v1686_v19 = vsub.f32 2.0, %v4038_v30  ;;  %v1687_v48 = vsub.f32 2.0, %v4058_v22  ;;  %v2110_v39 = vsel %vm1317_vm3, %v2078_v35, 0.0  ;;  %2282 = vadd.xlane.f32.xlu0 %v2281_v14  ;;  %v4950_v56 = vld [vmem:[#allocation49_spill] sm:$0xff]  ;;  %v4952_v14 = vld [vmem:[#allocation48_spill] sm:$0xff] }
 0x2aa   : > { %v1862_v4 = vmul.f32 %v3794_v41, %v4947_v27  ;;  %v2111_v37 = vsel %vm1318_vm5, %v2079_v60, 0.0  ;;  %v2050_v24 = vmul.f32 %v2018_v54, %v2018_v54  ;;  %v2051_v34 = vmul.f32 %v2019_v47, %v2019_v47  ;;  %v4948_v41 = vld [vmem:[#allocation30_spill] sm:$0xff]  ;;  %v4951_v52 = vld [vmem:[#allocation53_spill] sm:$0xff] }
 0x2ab   : > { %vm1863_vm9 = vcmp.eq.f32.partialorder %v4947_v27, inf  ;;  %v1990_v30 = vsub.f32 0.5, %v1832_v8  ;;  %v1991_v45 = vsub.f32 0.5, %v1839_v3  ;;  %v1857_v40 = vsel %vm1856_vm6, %v4946_v12, %v1855_v57 }
 0x2ac   : > { %v1859_v55 = vand.u32 2147483648, %v4946_v12  ;;  %vm1257_vm12 = vcmp.eq.s32.totalorder %v4948_v41, %v3374_v1  ;;  %vm1258_vm13 = vcmp.eq.s32.totalorder %v4948_v41, %v3376_v7  ;;  %v2251_v58 = vmul.f32 %v2235_v5, %v2235_v5 }
 0x2ad   : > { %v2221_v29 = vsub.f32 %v422_v0, %v4949_v53  ;;  %vm1858_vm4 = vcmp.eq.f32.partialorder %v4946_v12, 0.0  ;;  %v1866_v49 = vand.u32 2147483648, %v4947_v27  ;;  %v1656_v13 = vmul.f32 2.0, %v1619_v50  ;;  %v4955_v53 = vld [vmem:[#allocation65_spill] sm:$0xff] }
 0x2ae   : > { %v2143_v20 = vadd.f32 %v2111_v37, %v2110_v39  ;;  %v1864_v36 = vsel %vm1863_vm9, %v4947_v27, %v1862_v4  ;;  %vm1865_vm3 = vcmp.eq.f32.partialorder %v4947_v27, 0.0  ;;  %vm1086_vm5 = vcmp.lt.s32.totalorder %v3360_v25, 8 }
 0x2af   : > { %v4109_v18 = vmax.f32 %v1685_v21, 0.0  ;;  %v4111_v23 = vmax.f32 %v1686_v19, 0.0  ;;  %v1657_v59 = vmul.f32 2.0, %v1621_v15  ;;  %v2082_v22 = vsel %vm1253_vm10, %v4950_v56, %v2050_v24  ;;  %v4953_v15 = vld [vmem:[#allocation11_spill] sm:$0xff] }
 0x2b0   : > { %vm1041_vm7 = vcmp.eq.s32.totalorder %v3360_v25, %v4941_v61  ;;  %2144 = vadd.xlane.f32.xlu0 %v2143_v20  ;;  %v2083_v11 = vsel %vm1254_vm14, %v4951_v52, %v2051_v34  ;;  %v2022_v35 = vmax.f32 %v1990_v30, 0.0  ;;  %v2023_v21 = vmax.f32 %v1991_v45, 0.0  ;;  %v4956_v61 = vld [vmem:[#allocation33_spill] sm:$0xff] }
 0x2b1   : > { %v1860_v54 = vsel %vm1858_vm4, %v1859_v55, %v1857_v40  ;;  %v2287_v47 = vsel %vm505_vm0, %v2251_v58, 0.0  ;;  %v2237_v50 = vadd.f32 1e-06, %v2221_v29  ;;  %v424_v43 = vunpack.c.l.bf16 %v3875_v28 }
 0x2b2   : > { %v1867_v60 = vsel %vm1865_vm3, %v1866_v49, %v1864_v36  ;;  %2877 = vrsqrt.f32 %v4056_v10  ;;  %v4129_v8 = vadd.f32 1e-12, %v4011_v51  ;;  %v1688_v57 = vsub.f32 2.0, %v1656_v13 }
 0x2b3   : > { %v1303_v5 = vadd.s32 %v4927_v46, %v4952_v14  ;;  %v4134_v0 = vadd.f32 1e-12, %v4109_v18  ;;  %v1689_v12 = vsub.f32 2.0, %v1657_v59  ;;  %v2114_v3 = vsel %vm1321_vm1, %v2082_v22, 0.0 }
 0x2b4   : > { %v2115_v28 = vsel %vm1322_vm2, %v2083_v11, 0.0  ;;  %2288 = vadd.xlane.f32.xlu0 %v2287_v47  ;;  %v2054_v19 = vmul.f32 %v2022_v35, %v2022_v35  ;;  %v2055_v39 = vmul.f32 %v2023_v21, %v2023_v21  ;;  %v1994_v27 = vsub.f32 0.5, %v1860_v54 }
 0x2b5   : > { %v1995_v4 = vsub.f32 0.5, %v1867_v60  ;;  %v4143_v37 = vadd.f32 1e-12, %v4111_v23  ;;  %v4145_v24 = vmax.f32 %v1687_v48, 0.0  ;;  %v2253_v34 = vmul.f32 %v2237_v50, %v2237_v50  ;;  %v4954_v48 = vld [vmem:[#allocation60_spill] sm:$0xff] }
 0x2b6   : > { %v2223_v30 = vsub.f32 %v424_v43, %v4953_v15  ;;  %2879 = vrsqrt.f32 %v4129_v8  ;;  %v4149_v45 = vmax.f32 %v1688_v57, 0.0  ;;  %v2149_v40 = vadd.f32 %v2115_v28, %v2114_v3  ;;  %v4958_v28 = vld [vmem:[#allocation72_spill] sm:$0xff] }
 0x2b7   : > { %vm1325_vm8 = vcmp.ne.s32.totalorder %v1303_v5, %v3360_v25  ;;  %2881 = vrsqrt.f32 %v4134_v0  ;;  %v4153_v2 = vmax.f32 %v1689_v12, 0.0  ;;  %vm1326_vm10 = vcmp.ne.s32.totalorder %v1303_v5, %v3386_v17  ;;  %v4957_v12 = vld [vmem:[#allocation71_spill] sm:$0xff] }
 0x2b8   : > { %v1287_v55 = vadd.s32 56, %v4923_v63  ;;  %2150 = vadd.xlane.f32.xlu0 %v2149_v40  ;;  %v2086_v58 = vsel %vm1257_vm12, %v4954_v48, %v2054_v19  ;;  %v2087_v29 = vsel %vm1258_vm13, %v4955_v53, %v2055_v39  ;;  %v2026_v49 = vmax.f32 %v1994_v27, 0.0 }
 0x2b9   : > { %v2027_v13 = vmax.f32 %v1995_v4, 0.0  ;;  %2883 = vrsqrt.f32 %v4143_v37  ;;  %v4167_v20 = vadd.f32 1e-12, %v4145_v24  ;;  %v2293_v36 = vsel %vm505_vm0, %v2253_v34, 0.0 }
 0x2ba   : > { %v2239_v59 = vadd.f32 1e-06, %v2223_v30  ;;  %v4827_v56 = vmov 0.0   ;;  %v4176_v52 = vadd.f32 1e-12, %v4149_v45  ;;  %v2118_v21 = vsel %vm1325_vm8, %v2086_v58, 0.0 }
 0x2bb   : > { %v4173_v22 = vsel %vm1086_vm5, 1.0, %v4827_v56  ;;  %v2593_v11 = vsel %vm1041_vm7, 1.0, %v4827_v56  ;;  %v4183_v35 = vadd.f32 1e-12, %v4153_v2  ;;  %v2119_v54 = vsel %vm1326_vm10, %v2087_v29, 0.0 }
 0x2bc   : > { %vm1043_vm11 = vcmp.eq.s32.totalorder %v3360_v25, %v4948_v41  ;;  %2294 = vadd.xlane.f32.xlu0 %v2293_v36  ;;  %v1305_v47 = vadd.s32 %v4927_v46, %v1287_v55  ;;  %v2058_v50 = vmul.f32 %v2026_v49, %v2026_v49  ;;  %v2059_v43 = vmul.f32 %v2027_v13, %v2027_v13 }
 0x2bd   : > { %vm1261_vm14 = vcmp.eq.s32.totalorder %v4956_v61, %v3374_v1  ;;  %vm1262_vm15 = vcmp.eq.s32.totalorder %v4956_v61, %v3376_v7  ;;  %2885 = vrsqrt.f32 %v4167_v20  ;;  %v2255_v60 = vmul.f32 %v2239_v59, %v2239_v59 }
 0x2be   : > { %v1108_v57 = vsub.f32 %v4173_v22, %v2593_v11  ;;  %vm1042_vm1 = vcmp.eq.s32.totalorder %v3360_v25, %v3328_v16  ;;  %2887 = vrsqrt.f32 %v4176_v52  ;;  %v2155_v41 = vadd.f32 %v2119_v54, %v2118_v21 }
 0x2bf   : > { %v2878_v14 = vpop.eup %2877  ;;  %v2595_v5 = vsel %vm1043_vm11, 1.0, %v4827_v56  ;;  %vm1045_vm2 = vcmp.eq.s32.totalorder %v3360_v25, %v4956_v61  ;;  %2889 = vrsqrt.f32 %v4183_v35  ;;  %vm1329_vm6 = vcmp.ne.s32.totalorder %v1305_v47, %v3360_v25 }
 0x2c0   : > { %2156 = vadd.xlane.f32.xlu0 %v2155_v41  ;;  %vm1330_vm9 = vcmp.ne.s32.totalorder %v1305_v47, %v3386_v17  ;;  %v2090_v3 = vsel %vm1261_vm14, %v4957_v12, %v2058_v50  ;;  %v2091_v16 = vsel %vm1262_vm15, %v4958_v28, %v2059_v43  ;;  %v4210_v19 = vsel %vm1042_vm1, 1.0, %v4827_v56  ;;  %v4265_v12 = vpop.permute.xlu0 %1024 }
 0x2c1   : > { %vm1044_vm12 = vcmp.eq.s32.totalorder %v3360_v25, %v3334_v26  ;;  %v1911_v39 = vmul.f32 %v3966_v31, %v3819_v32  ;;  %v2299_v27 = vsel %vm505_vm0, %v2255_v60, 0.0  ;;  %v4217_v4 = vmul.f32 0.9, %v2593_v11  ;;  %v4959_v26 = vld [vmem:[#allocation31_spill] sm:$0xff] }
 0x2c2   : > { %v4219_v34 = vmul.f32 0.014285714, %v1108_v57  ;;  %v1110_v15 = vsub.f32 %v4173_v22, %v2595_v5  ;;  %vm1912_vm13 = vcmp.eq.f32.partialorder %v3819_v32, inf  ;;  %v2597_v40 = vsel %vm1045_vm2, 1.0, %v4827_v56 }
 0x2c3   : > { %v2880_v30 = vpop.eup %2879  ;;  %vm1038_vm4 = vcmp.eq.s32.totalorder %v3360_v25, %v4959_v26  ;;  %v2122_v31 = vsel %vm1329_vm6, %v2090_v3, 0.0  ;;  %v2123_v55 = vsel %vm1330_vm9, %v2091_v16, 0.0  ;;  %v1109_v58 = vsub.f32 %v4173_v22, %v4210_v19 }
 0x2c4   : > { %v2882_v48 = vpop.eup %2881  ;;  %v4232_v53 = vsel %vm1044_vm12, 1.0, %v4827_v56  ;;  %v1915_v29 = vand.u32 2147483648, %v3819_v32  ;;  %v1918_v49 = vmul.f32 %v2878_v14, %v4056_v10  ;;  %2300 = vadd.xlane.f32.xlu0 %v2299_v27  ;;  %v4236_v13 = vmul.f32 0.9, %v2595_v5  ;;  %v1623_v14 = vpop.f32.mrf.mxu0 }
 0x2c5   : > { %v1913_v36 = vsel %vm1912_vm13, %v3819_v32, %v1911_v39  ;;  %vm1914_vm0 = vcmp.eq.f32.partialorder %v3819_v32, 0.0  ;;  %vm1919_vm3 = vcmp.eq.f32.partialorder %v4056_v10, inf  ;;  %v4241_v11 = vmul.f32 0.014285714, %v1110_v15 }
 0x2c6   : > { %v2884_v59 = vpop.eup %2883  ;;  %v1112_v21 = vsub.f32 %v4173_v22, %v2597_v40  ;;  %v4248_v54 = vsel %vm1038_vm4, 1.0, %v4827_v56  ;;  %v2161_v47 = vadd.f32 %v2123_v55, %v2122_v31  ;;  %v1111_v50 = vsub.f32 %v4173_v22, %v4232_v53 }
 0x2c7   : > { %v4252_v43 = vmul.f32 0.9, %v2597_v40  ;;  %v4255_v32 = vmul.f32 0.9, %v4248_v54  ;;  %v1922_v61 = vand.u32 2147483648, %v4056_v10  ;;  %v4258_v60 = vsel %vm1914_vm0, %v1915_v29, %v1913_v36  ;;  %v4291_v29 = vpop.permute.xlu1 %1027 }
 0x2c8   : > { %v1920_v57 = vsel %vm1919_vm3, %v4056_v10, %v1918_v49  ;;  %vm1921_vm5 = vcmp.eq.f32.partialorder %v4056_v10, 0.0  ;;  %v1925_v41 = vmul.f32 %v2880_v30, %v4129_v8  ;;  %2162 = vadd.xlane.f32.xlu0 %v2161_v47  ;;  %v1105_v5 = vsub.f32 %v4173_v22, %v4248_v54 }
 0x2c9   : > { %vm1926_vm7 = vcmp.eq.f32.partialorder %v4129_v8, inf  ;;  %v1932_v3 = vmul.f32 %v2882_v48, %v4134_v0  ;;  %v1939_v28 = vmul.f32 %v2884_v59, %v4143_v37  ;;  %v4270_v39 = vmul.f32 0.014285714, %v1112_v21  ;;  %v1625_v48 = vpop.f32.mrf.mxu0 }
 0x2ca   : > { %v2886_v16 = vpop.eup %2885  ;;  %vm1046_vm8 = vcmp.eq.s32.totalorder %v3360_v25, %v3368_v62  ;;  %vm1933_vm10 = vcmp.eq.f32.partialorder %v4134_v0, inf  ;;  %vm1940_vm11 = vcmp.eq.f32.partialorder %v4143_v37, inf  ;;  %vm1047_vm14 = vcmp.eq.s32.totalorder %v3360_v25, %v4915_v38 }
 0x2cb   : > { %v2888_v27 = vpop.eup %2887  ;;  %v1923_v15 = vsel %vm1921_vm5, %v1922_v61, %v1920_v57  ;;  %v2002_v30 = vsub.f32 0.5, %v4258_v60  ;;  %vm1928_vm15 = vcmp.eq.f32.partialorder %v4129_v8, 0.0  ;;  %vm1040_vm1 = vcmp.eq.s32.totalorder %v3360_v25, %v3324_v6  ;;  %v4301_v61 = vpop.permute.xlu0 %1030 }
 0x2cc   : > { %v2890_v40 = vpop.eup %2889  ;;  %v1927_v26 = vsel %vm1926_vm7, %v4129_v8, %v1925_v41  ;;  %v1929_v31 = vand.u32 2147483648, %v4129_v8  ;;  %vm1935_vm2 = vcmp.eq.f32.partialorder %v4134_v0, 0.0  ;;  %v1936_v55 = vand.u32 2147483648, %v4134_v0 }
 0x2cd   : > { %vm1039_vm6 = vcmp.eq.s32.totalorder %v3360_v25, %v4933_v9  ;;  %v1934_v10 = vsel %vm1933_vm10, %v4134_v0, %v1932_v3  ;;  %v1941_v49 = vsel %vm1940_vm11, %v4143_v37, %v1939_v28  ;;  %v1943_v36 = vand.u32 2147483648, %v4143_v37 }
 0x2ce   : > { %v1946_v59 = vmul.f32 %v2886_v16, %v4167_v20  ;;  %vm1942_vm9 = vcmp.eq.f32.partialorder %v4143_v37, 0.0  ;;  %vm1947_vm12 = vcmp.eq.f32.partialorder %v4167_v20, inf  ;;  %v1953_v21 = vmul.f32 %v2888_v27, %v4176_v52 }
 0x2cf   : > { %v1658_v54 = vmul.f32 2.0, %v1623_v14  ;;  %v2003_v47 = vsub.f32 0.5, %v1923_v15  ;;  %vm1954_vm13 = vcmp.eq.f32.partialorder %v4176_v52, inf  ;;  %v1960_v60 = vmul.f32 %v2890_v40, %v4183_v35 }
 0x2d0   : > { %v1659_v57 = vmul.f32 2.0, %v1625_v48  ;;  %v1930_v41 = vsel %vm1928_vm15, %v1929_v31, %v1927_v26  ;;  %v1937_v3 = vsel %vm1935_vm2, %v1936_v55, %v1934_v10  ;;  %v1950_v37 = vand.u32 2147483648, %v4167_v20  ;;  %v4319_v26 = vpop.permute.xlu1 %1033  ;;  %v897_v55 = vpop.xlane.xlu0 %896 }
 0x2d1   : > { %vm1961_vm4 = vcmp.eq.f32.partialorder %v4183_v35, inf  ;;  %v1944_v28 = vsel %vm1942_vm9, %v1943_v36, %v1941_v49  ;;  %v1948_v14 = vsel %vm1947_vm12, %v4167_v20, %v1946_v59  ;;  %vm1949_vm0 = vcmp.eq.f32.partialorder %v4167_v20, 0.0 }
 0x2d2   : > { %v1957_v16 = vand.u32 2147483648, %v4176_v52  ;;  %v1955_v27 = vsel %vm1954_vm13, %v4176_v52, %v1953_v21  ;;  %vm1956_vm3 = vcmp.eq.f32.partialorder %v4176_v52, 0.0  ;;  %v1964_v8 = vand.u32 2147483648, %v4183_v35 }
 0x2d3   : > { %v1690_v15 = vsub.f32 2.0, %v1658_v54  ;;  %v2004_v0 = vsub.f32 0.5, %v1930_v41  ;;  %v1962_v40 = vsel %vm1961_vm4, %v4183_v35, %v1960_v60  ;;  %vm1963_vm5 = vcmp.eq.f32.partialorder %v4183_v35, 0.0 }
 0x2d4   : > { %v1691_v31 = vsub.f32 2.0, %v1659_v57  ;;  %v4325_v20 = vsel %vm1046_vm8, 1.0, %v4827_v56  ;;  %v2005_v48 = vsub.f32 0.5, %v1937_v3  ;;  %v1951_v10 = vsel %vm1949_vm0, %v1950_v37, %v1948_v14  ;;  %v893_v52 = vpop.xlane.xlu0 %892 }
 0x2d5   : > { %2891 = vlog2.f32 %v897_v55  ;;  %v1121_v49 = vmul.f32 0.014285714, %v1105_v5  ;;  %v4331_v36 = vsel %vm1047_vm14, 1.0, %v4827_v56  ;;  %v2006_v35 = vsub.f32 0.5, %v1944_v28  ;;  %v899_v5 = vpop.xlane.xlu1 %898 }
 0x2d6   : > { %v1958_v59 = vsel %vm1956_vm3, %v1957_v16, %v1955_v27  ;;  %v2034_v21 = vmax.f32 %v2002_v30, 0.0  ;;  %v2035_v54 = vmax.f32 %v2003_v47, 0.0  ;;  %v1965_v60 = vsel %vm1963_vm5, %v1964_v8, %v1962_v40 }
 0x2d7   : > { %v4335_v62 = vmax.f32 %v1690_v15, 0.0  ;;  %v2036_v57 = vmax.f32 %v2004_v0, 0.0  ;;  %v2007_v41 = vsub.f32 0.5, %v1951_v10  ;;  %v4337_v3 = vmax.f32 %v1691_v31, 0.0 }
 0x2d8   : > { %v2592_v38 = vsel %vm1040_vm1, 1.0, %v4827_v56  ;;  %v2037_v37 = vmax.f32 %v2005_v48, 0.0  ;;  %v2008_v28 = vsub.f32 0.5, %v1958_v59  ;;  %2893 = vlog2.f32 %v899_v5  ;;  %v905_v59 = vpop.xlane.xlu0 %904 }
 0x2d9   : > { %4960 = vst [vmem:[#allocation8_spill] sm:$0xff] %v4335_v62  ;;  %4961 = vst [vmem:[#allocation43_spill] sm:$0xff] %v4337_v3  ;;  %v2591_v30 = vsel %vm1039_vm6, 1.0, %v4827_v56  ;;  %v1113_v47 = vsub.f32 %v4173_v22, %v4325_v20  ;;  %v2038_v14 = vmax.f32 %v2006_v35, 0.0  ;;  %v2009_v16 = vsub.f32 0.5, %v1965_v60  ;;  %v895_v31 = vpop.xlane.xlu1 %894 }
 0x2da   : > { %2895 = vlog2.f32 %v893_v52  ;;  %v4351_v6 = vmul.f32 %v2034_v21, %v2034_v21  ;;  %v4354_v8 = vadd.f32 1e-12, %v4335_v62  ;;  %v1107_v15 = vsub.f32 %v4173_v22, %v2592_v38 }
 0x2db   : > { %v4357_v0 = vmul.f32 %v2035_v54, %v2035_v54  ;;  %v2039_v9 = vmax.f32 %v2007_v41, 0.0  ;;  %v4360_v40 = vadd.f32 1e-12, %v4337_v3  ;;  %v1106_v55 = vsub.f32 %v4173_v22, %v2591_v30  ;;  %v4972_v3 = vld [vmem:[#allocation42_spill] sm:$0xff] }
 0x2dc   : > { %v4363_v48 = vmul.f32 %v2036_v57, %v2036_v57  ;;  %v4365_v10 = vmul.f32 %v2037_v37, %v2037_v37  ;;  %v2040_v35 = vmax.f32 %v2008_v28, 0.0  ;;  %2897 = vlog2.f32 %v895_v31 }
 0x2dd   : > { %v4367_v21 = vmul.f32 %v2038_v14, %v2038_v14  ;;  %v2041_v60 = vmax.f32 %v2009_v16, 0.0  ;;  %2899 = vlog2.f32 %v905_v59  ;;  %v1091_v54 = vmul.f32 0.9, %v2592_v38  ;;  %v907_v37 = vpop.xlane.xlu1 %906  ;;  %v901_v38 = vpop.xlane.xlu0 %900 }
 0x2de   : > { %2901 = vrsqrt.f32 %v4354_v8  ;;  %v1123_v41 = vmul.f32 0.014285714, %v1107_v15  ;;  %v1095_v5 = vmul.f32 0.9, %v4232_v53  ;;  %v1127_v57 = vmul.f32 0.014285714, %v1111_v50 }
 0x2df   : > { %v4374_v52 = vmul.f32 %v2039_v9, %v2039_v9  ;;  %2903 = vrsqrt.f32 %v4360_v40  ;;  %v1090_v28 = vmul.f32 0.9, %v2591_v30  ;;  %v1122_v14 = vmul.f32 0.014285714, %v1106_v55 }
 0x2e0   : > { %v4377_v31 = vmul.f32 %v2040_v35, %v2040_v35  ;;  %2905 = vlog2.f32 %v907_v37  ;;  %v1093_v16 = vmul.f32 0.9, %v4210_v19  ;;  %v1125_v15 = vmul.f32 0.014285714, %v1109_v58 }
 0x2e1   : > { %v4383_v53 = vmul.f32 %v2041_v60, %v2041_v60  ;;  %2907 = vlog2.f32 %v901_v38  ;;  %v1137_v50 = vadd.f32 %v1121_v49, %v4255_v32  ;;  %v4388_v30 = vadd.f32 %v4219_v34, %v4217_v4  ;;  %v903_v27 = vpop.xlane.xlu1 %902  ;;  %v913_v49 = vpop.xlane.xlu0 %912  ;;  %v4962_v4 = vld [vmem:[#allocation35_spill] sm:$0xff] }
 0x2e2   : > { %v2892_v59 = vpop.eup %2891  ;;  %v1139_v55 = vadd.f32 %v1123_v41, %v1091_v54  ;;  %v4390_v35 = vadd.f32 %v1127_v57, %v1095_v5  ;;  %v1291_v37 = vadd.s32 88, %v4923_v63  ;;  %v4393_v56 = vadd.f32 %v1122_v14, %v1090_v28 }
 0x2e3   : > { %v929_v9 = vmul.f32 0.6931472, %v2892_v59  ;;  %v4397_v19 = vadd.f32 %v4270_v39, %v4252_v43  ;;  %v1097_v58 = vmul.f32 0.9, %v4325_v20  ;;  %v1129_v32 = vmul.f32 0.014285714, %v1113_v47 }
 0x2e4   : > { %2909 = vlog2.f32 %v903_v27  ;;  %v4401_v60 = vadd.f32 %v1125_v15, %v1093_v16  ;;  %v4405_v54 = vadd.f32 %v4241_v11, %v4236_v13  ;;  %vm1048_vm7 = vcmp.eq.s32.totalorder %v3360_v25, %v3986_v33  ;;  %v4963_v47 = vld [vmem:[#allocation12_spill] sm:$0xff] }
 0x2e5   : > { %v958_v34 = vadd.f32 %v929_v9, %v4962_v4  ;;  %v2894_v41 = vpop.eup %2893  ;;  %vm1049_vm8 = vcmp.eq.s32.totalorder %v3360_v25, %v4265_v12  ;;  %2911 = vlog2.f32 %v913_v49  ;;  %v1292_v43 = vadd.s32 96, %v4923_v63  ;;  %v915_v57 = vpop.xlane.xlu1 %914  ;;  %v4966_v49 = vld [vmem:[#allocation38_spill] sm:$0xff] }
 0x2e6   : > { %v931_v20 = vmul.f32 0.6931472, %v2894_v41  ;;  %v4414_v5 = vadd.s32 %v4927_v46, %v1291_v37  ;;  %v1293_v13 = vadd.s32 104, %v4923_v63  ;;  %v4417_v28 = vadd.f32 %v1129_v32, %v1097_v58  ;;  %v909_v59 = vpop.xlane.xlu0 %908  ;;  %v4965_v58 = vld [vmem:[#allocation37_spill] sm:$0xff] }
 0x2e7   : > { %v2896_v39 = vpop.eup %2895  ;;  %v1155_v27 = vsub.f32 %v958_v34, %v4963_v47  ;;  %v4420_v33 = vmul.f32 0.9, %v4331_v36  ;;  %v1294_v14 = vadd.s32 112, %v4923_v63  ;;  %v4964_v38 = vmov 0.0  }
 0x2e8   : > { %v925_v11 = vmul.f32 0.6931472, %v2896_v39  ;;  %v4424_v16 = vsel %vm1048_vm7, 1.0, %v4964_v38  ;;  %v4427_v15 = vsel %vm1049_vm8, 1.0, %v4964_v38  ;;  %2913 = vlog2.f32 %v915_v57 }
 0x2e9   : > { %v1171_v9 = vmul.f32 %v1155_v27, %v1139_v55  ;;  %v2898_v37 = vpop.eup %2897  ;;  %vm1269_vm10 = vcmp.eq.s32.totalorder %v4265_v12, %v3374_v1  ;;  %v959_v32 = vadd.f32 %v931_v20, %v4965_v58  ;;  %2915 = vlog2.f32 %v909_v59  ;;  %v911_v59 = vpop.xlane.xlu1 %910  ;;  %v4969_v58 = vld [vmem:[#allocation13_spill] sm:$0xff] }
 0x2ea   : > { %v956_v4 = vadd.f32 %v925_v11, %v4966_v49  ;;  %v2900_v34 = vpop.eup %2899  ;;  %v927_v41 = vmul.f32 0.6931472, %v2898_v37  ;;  %v4434_v39 = vadd.s32 %v4927_v46, %v1292_v43  ;;  %v4437_v47 = vadd.s32 %v4927_v46, %v1293_v13  ;;  %v921_v49 = vpop.xlane.xlu0 %920 }
 0x2eb   : > { %1189 = vadd.xlane.f32.xlu0 %v1171_v9  ;;  %v4967_v55 = vsub.f32 %v4173_v22, %v4331_v36  ;;  %v2902_v57 = vpop.eup %2901  ;;  %v937_v11 = vmul.f32 0.6931472, %v2900_v34  ;;  %v4448_v9 = vadd.s32 %v4927_v46, %v1294_v14  ;;  %vm1270_vm11 = vcmp.eq.s32.totalorder %v4265_v12, %v3376_v7  ;;  %v4970_v34 = vld [vmem:[#allocation41_spill] sm:$0xff] }
 0x2ec   : > { %v1153_v37 = vsub.f32 %v956_v4, %v4969_v58  ;;  %v2904_v43 = vpop.eup %2903  ;;  %v4459_v36 = vsel %vm1269_vm10, %v3787_v42, %v4351_v6  ;;  %v957_v4 = vadd.f32 %v927_v41, %v4970_v34  ;;  %2917 = vlog2.f32 %v911_v59  ;;  %v4971_v58 = vld [vmem:[#allocation14_spill] sm:$0xff]  ;;  %v4973_v42 = vld [vmem:[#allocation15_spill] sm:$0xff] }
 0x2ed   : > { %v4442_v27 = vmul.f32 0.014285714, %v4967_v55  ;;  %v2906_v55 = vpop.eup %2905  ;;  %v1156_v20 = vsub.f32 %v959_v32, %v4971_v58  ;;  %v962_v13 = vadd.f32 %v937_v11, %v4972_v3  ;;  %vm1271_vm14 = vcmp.eq.s32.totalorder %v4291_v29, %v3374_v1  ;;  %v4974_v32 = vld [vmem:[#allocation46_spill] sm:$0xff]  ;;  %v4479_v11 = vpop.xlane.xlu1 %922 }
 0x2ee   : > { %v1169_v14 = vmul.f32 %v1153_v37, %v1137_v50  ;;  %v2908_v62 = vpop.eup %2907  ;;  %vm1272_vm15 = vcmp.eq.s32.totalorder %v4291_v29, %v3376_v7  ;;  %v1154_v6 = vsub.f32 %v957_v4, %v4973_v42  ;;  %vm1273_vm1 = vcmp.eq.s32.totalorder %v4301_v61, %v3374_v1  ;;  %v4975_v37 = vld [vmem:[#allocation16_spill] sm:$0xff]  ;;  %v917_v58 = vpop.xlane.xlu0 %916 }
 0x2ef   : > { %4968 = vst [vmem:[#allocation34_spill] sm:$0xff] %v4442_v27  ;;  %v939_v27 = vmul.f32 0.6931472, %v2906_v55  ;;  %vm1274_vm2 = vcmp.eq.s32.totalorder %v4301_v61, %v3376_v7  ;;  %v933_v50 = vmul.f32 0.6931472, %v2908_v62  ;;  %v1967_v3 = vmul.f32 %v2902_v57, %v4354_v8  ;;  %v4976_v55 = vld [vmem:[#allocation47_spill] sm:$0xff] }
 0x2f0   : > { %1185 = vadd.xlane.f32.xlu1 %v1169_v14  ;;  %vm1337_vm6 = vcmp.ne.s32.totalorder %v4414_v5, %v3360_v25  ;;  %vm1338_vm9 = vcmp.ne.s32.totalorder %v4414_v5, %v3386_v17  ;;  %v1170_v59 = vmul.f32 %v1154_v6, %v4393_v56  ;;  %v1159_v34 = vsub.f32 %v962_v13, %v4975_v37  ;;  %v4977_v13 = vld [vmem:[#allocation18_spill] sm:$0xff] }
 0x2f1   : > { %v963_v41 = vadd.f32 %v939_v27, %v4974_v32  ;;  %vm1968_vm12 = vcmp.eq.f32.partialorder %v4354_v8, inf  ;;  %vm1339_vm13 = vcmp.ne.s32.totalorder %v4434_v39, %v3360_v25  ;;  %v2910_v62 = vpop.eup %2909  ;;  %2919 = vlog2.f32 %v921_v49 }
 0x2f2   : > { %v1172_v57 = vmul.f32 %v1156_v20, %v4388_v30  ;;  %v1974_v4 = vmul.f32 %v2904_v43, %v4360_v40  ;;  %v960_v14 = vadd.f32 %v933_v50, %v4976_v55  ;;  %vm1340_vm4 = vcmp.ne.s32.totalorder %v4434_v39, %v3386_v17  ;;  %v2912_v27 = vpop.eup %2911  ;;  %1187 = vadd.xlane.f32.xlu0 %v1170_v59  ;;  %v4978_v43 = vld [vmem:[#allocation50_spill] sm:$0xff]  ;;  %v4979_v59 = vld [vmem:[#allocation17_spill] sm:$0xff]  ;;  %v4980_v55 = vld [vmem:[#allocation51_spill] sm:$0xff] }
 0x2f3   : > { %v935_v56 = vmul.f32 0.6931472, %v2910_v62  ;;  %v1160_v42 = vsub.f32 %v963_v41, %v4977_v13  ;;  %v1971_v6 = vand.u32 2147483648, %v4354_v8  ;;  %vm1975_vm0 = vcmp.eq.f32.partialorder %v4360_v40, inf  ;;  %v4983_v13 = vld [vmem:[#allocation20_spill] sm:$0xff] }
 0x2f4   : > { %v945_v49 = vmul.f32 0.6931472, %v2912_v27  ;;  %1191 = vadd.xlane.f32.xlu1 %v1172_v57  ;;  %v1969_v30 = vsel %vm1968_vm12, %v4354_v8, %v1967_v3  ;;  %vm1970_vm3 = vcmp.eq.f32.partialorder %v4354_v8, 0.0  ;;  %v1978_v20 = vand.u32 2147483648, %v4360_v40 }
 0x2f5   : > { %v961_v50 = vadd.f32 %v935_v56, %v4978_v43  ;;  %v1175_v32 = vmul.f32 %v1159_v34, %v4390_v35  ;;  %v1176_v41 = vmul.f32 %v1160_v42, %v4397_v19  ;;  %v1157_v37 = vsub.f32 %v960_v14, %v4979_v59  ;;  %v2914_v62 = vpop.eup %2913  ;;  %v919_v34 = vpop.xlane.xlu1 %918 }
 0x2f6   : > { %2921 = vlog2.f32 %v917_v58  ;;  %v1976_v57 = vsel %vm1975_vm0, %v4360_v40, %v1974_v4  ;;  %vm1977_vm5 = vcmp.eq.f32.partialorder %v4360_v40, 0.0  ;;  %v966_v3 = vadd.f32 %v945_v49, %v4980_v55  ;;  %v2916_v27 = vpop.eup %2915  ;;  %v4981_v4 = vld [vmem:[#allocation19_spill] sm:$0xff] }
 0x2f7   : > { %vm1341_vm7 = vcmp.ne.s32.totalorder %v4437_v47, %v3360_v25  ;;  %vm1342_vm8 = vcmp.ne.s32.totalorder %v4437_v47, %v3386_v17  ;;  %v2099_v35 = vsel %vm1270_vm11, %v3940_v44, %v4357_v0  ;;  %v2100_v19 = vsel %vm1271_vm14, %v4011_v51, %v4363_v48  ;;  %1197 = vadd.xlane.f32.xlu0 %v1175_v32 }
 0x2f8   : > { %v1158_v14 = vsub.f32 %v961_v50, %v4981_v4  ;;  %v4982_v56 = vsub.f32 %v4173_v22, %v4424_v16  ;;  %vm1050_vm10 = vcmp.eq.s32.totalorder %v3360_v25, %v4291_v29  ;;  %v2101_v44 = vsel %vm1272_vm15, %v4109_v18, %v4365_v10  ;;  %1199 = vadd.xlane.f32.xlu1 %v1176_v41  ;;  %v4985_v50 = vld [vmem:[#allocation54_spill] sm:$0xff] }
 0x2f9   : > { %v2102_v51 = vsel %vm1273_vm1, %v4111_v23, %v4367_v21  ;;  %v2103_v12 = vsel %vm1274_vm2, %v4145_v24, %v4374_v52  ;;  %v1099_v0 = vmul.f32 0.9, %v4424_v16  ;;  %v1972_v48 = vsel %vm1970_vm3, %v1971_v6, %v1969_v30  ;;  %v2918_v8 = vpop.eup %2917  ;;  %v4988_v4 = vld [vmem:[#allocation22_spill] sm:$0xff] }
 0x2fa   : > { %v1131_v58 = vmul.f32 0.014285714, %v4982_v56  ;;  %v1979_v18 = vsel %vm1977_vm5, %v1978_v20, %v1976_v57  ;;  %v1173_v10 = vmul.f32 %v1157_v37, %v4401_v60  ;;  %v1163_v42 = vsub.f32 %v966_v3, %v4983_v13  ;;  %v4984_v20 = vld [vmem:[#allocation55_spill] sm:$0xff]  ;;  %v4986_v57 = vld [vmem:[#allocation21_spill] sm:$0xff] }
 0x2fb   : > { %vm1343_vm11 = vcmp.ne.s32.totalorder %v4448_v9, %v3360_v25  ;;  %v947_v23 = vmul.f32 0.6931472, %v2914_v62  ;;  %v941_v21 = vmul.f32 0.6931472, %v2916_v27  ;;  %2923 = vlog2.f32 %v919_v34  ;;  %v4989_v56 = vld [vmem:[#allocation57_spill] sm:$0xff] }
 0x2fc   : > { %v1174_v24 = vmul.f32 %v1158_v14, %v4405_v54  ;;  %vm1344_vm14 = vcmp.ne.s32.totalorder %v4448_v9, %v3386_v17  ;;  %vm1052_vm15 = vcmp.eq.s32.totalorder %v3360_v25, %v4319_v26  ;;  %1193 = vadd.xlane.f32.xlu0 %v1173_v10  ;;  %v1147_v40 = vadd.f32 %v1131_v58, %v1099_v0  ;;  %v4990_v10 = vld [vmem:[#allocation58_spill] sm:$0xff] }
 0x2fd   : > { %v2130_v52 = vsel %vm1337_vm6, %v4459_v36, 0.0  ;;  %v2131_v60 = vsel %vm1338_vm9, %v2099_v35, 0.0  ;;  %vm1275_vm1 = vcmp.eq.s32.totalorder %v4319_v26, %v3374_v1  ;;  %vm1276_vm2 = vcmp.eq.s32.totalorder %v4319_v26, %v3376_v7 }
 0x2fe   : > { %v2010_v54 = vsub.f32 0.5, %v1972_v48  ;;  %1195 = vadd.xlane.f32.xlu1 %v1174_v24  ;;  %v2132_v16 = vsel %vm1339_vm13, %v2100_v19, 0.0  ;;  %2925 = vlog2.f32 %v4479_v11  ;;  %v2011_v6 = vsub.f32 0.5, %v1979_v18  ;;  %v2920_v41 = vpop.eup %2919 }
 0x2ff   : > { %v1179_v36 = vmul.f32 %v1163_v42, %v1147_v40  ;;  %v2133_v5 = vsel %vm1340_vm4, %v2101_v44, 0.0  ;;  %v943_v49 = vmul.f32 0.6931472, %v2918_v8  ;;  %v2173_v30 = vadd.f32 %v2131_v60, %v2130_v52  ;;  %v4992_v40 = vld [vmem:[#allocation34_spill] sm:$0xff] }
 0x300   : > { %v964_v43 = vadd.f32 %v941_v21, %v4984_v20  ;;  %v967_v32 = vadd.f32 %v947_v23, %v4985_v50  ;;  %v2604_v59 = vsel %vm1052_vm15, 1.0, %v4964_v38  ;;  %v2104_v11 = vsel %vm1275_vm1, %v4149_v45, %v4377_v31  ;;  %v4991_v23 = vld [vmem:[#allocation23_spill] sm:$0xff] }
 0x301   : > { %v2105_v37 = vsel %vm1276_vm2, %v4153_v2, %v4383_v53  ;;  %1205 = vadd.xlane.f32.xlu0 %v1179_v36  ;;  %v1295_v39 = vadd.s32 120, %v4923_v63  ;;  %v2042_v62 = vmax.f32 %v2010_v54, 0.0  ;;  %v2176_v3 = vadd.f32 %v2133_v5, %v2132_v16  ;;  %v1037_v53 = vpop.permute.xlu0 %1036  ;;  %v4994_v54 = vld [vmem:[#allocation43_spill] sm:$0xff]  ;;  %v4995_v5 = vld [vmem:[#allocation62_spill] sm:$0xff] }
 0x302   : > { %2174 = vadd.xlane.f32.xlu1 %v2173_v30  ;;  %v1161_v55 = vsub.f32 %v964_v43, %v4986_v57  ;;  %v4987_v27 = vsub.f32 %v4173_v22, %v4427_v15  ;;  %v2043_v26 = vmax.f32 %v2011_v6, 0.0  ;;  %v1100_v19 = vmul.f32 0.9, %v4427_v15  ;;  %v4996_v43 = vld [vmem:[#allocation24_spill] sm:$0xff] }
 0x303   : > { %v2134_v45 = vsel %vm1341_vm7, %v2102_v51, 0.0  ;;  %v2135_v2 = vsel %vm1342_vm8, %v2103_v12, 0.0  ;;  %v953_v31 = vmul.f32 0.6931472, %v2920_v41  ;;  %v1164_v14 = vsub.f32 %v967_v32, %v4988_v4  ;;  %v2922_v44 = vpop.eup %2921 }
 0x304   : > { %v1132_v35 = vmul.f32 0.014285714, %v4987_v27  ;;  %v1177_v34 = vmul.f32 %v1161_v55, %v4417_v28  ;;  %v965_v58 = vadd.f32 %v943_v49, %v4989_v56  ;;  %v2602_v15 = vsel %vm1050_vm10, 1.0, %v4964_v38  ;;  %v4998_v27 = vld [vmem:[#allocation25_spill] sm:$0xff] }
 0x305   : > { %vm1051_vm6 = vcmp.eq.s32.totalorder %v3360_v25, %v4301_v61  ;;  %v1119_v47 = vsub.f32 %v4173_v22, %v2604_v59  ;;  %v1313_v51 = vadd.s32 %v4927_v46, %v1295_v39  ;;  %v2074_v12 = vmul.f32 %v2042_v62, %v2042_v62  ;;  %v4997_v62 = vld [vmem:[#allocation66_spill] sm:$0xff] }
 0x306   : > { %1201 = vadd.xlane.f32.xlu0 %v1177_v34  ;;  %2177 = vadd.xlane.f32.xlu1 %v2176_v3  ;;  %v1148_v28 = vadd.f32 %v1132_v35, %v1100_v19  ;;  %v2179_v0 = vadd.f32 %v2135_v2, %v2134_v45  ;;  %v2136_v48 = vsel %vm1343_vm11, %v2104_v11, 0.0  ;;  %v2075_v18 = vmul.f32 %v2043_v26, %v2043_v26 }
 0x307   : > { %vm1277_vm9 = vcmp.eq.s32.totalorder %v1037_v53, %v3374_v1  ;;  %vm1278_vm12 = vcmp.eq.s32.totalorder %v1037_v53, %v3376_v7  ;;  %v2137_v29 = vsel %vm1344_vm14, %v2105_v37, 0.0  ;;  %v970_v46 = vadd.f32 %v953_v31, %v4990_v10  ;;  %v4993_v7 = vld [vmem:[#allocation8_spill] sm:$0xff]  ;;  %v4999_v31 = vld [vmem:[#allocation61_spill] sm:$0xff] }
 0x308   : > { %v949_v13 = vmul.f32 0.6931472, %v2922_v44  ;;  %v1180_v42 = vmul.f32 %v1164_v14, %v1148_v28  ;;  %v1162_v21 = vsub.f32 %v965_v58, %v4991_v23  ;;  %v2924_v24 = vpop.eup %2923  ;;  %v1117_v8 = vsub.f32 %v4173_v22, %v2602_v15  ;;  %v5000_v14 = vld [vmem:[#allocation27_spill] sm:$0xff] }
 0x309   : > { %v1146_v52 = vadd.f32 %v4992_v40, %v4420_v33  ;;  %vm1345_vm13 = vcmp.ne.s32.totalorder %v1313_v51, %v3360_v25  ;;  %v1135_v1 = vmul.f32 0.014285714, %v1119_v47  ;;  %v2106_v60 = vsel %vm1277_vm9, %v4993_v7, %v2074_v12  ;;  %v2259_v12 = vpop.xlane.xlu1 %2258 }
 0x30a   : > { %v2107_v9 = vsel %vm1278_vm12, %v4994_v54, %v2075_v18  ;;  %1207 = vadd.xlane.f32.xlu0 %v1180_v42  ;;  %2180 = vadd.xlane.f32.xlu1 %v2179_v0  ;;  %vm1346_vm4 = vcmp.ne.s32.totalorder %v1313_v51, %v3386_v17  ;;  %v2603_v16 = vsel %vm1051_vm6, 1.0, %v4964_v38  ;;  %v1103_v6 = vmul.f32 0.9, %v2604_v59 }
 0x30b   : > { %vm1053_vm0 = vcmp.eq.s32.totalorder %v3360_v25, %v1037_v53  ;;  %v2182_v33 = vadd.f32 %v2137_v29, %v2136_v48  ;;  %v2926_v36 = vpop.eup %2925  ;;  %v968_v49 = vadd.f32 %v949_v13, %v4995_v5  ;;  %v951_v30 = vmul.f32 0.6931472, %v2924_v24 }
 0x30c   : > { %v1178_v20 = vmul.f32 %v1162_v21, %v1146_v52  ;;  %v1167_v50 = vsub.f32 %v970_v46, %v4996_v43  ;;  %v2138_v32 = vsel %vm1345_vm13, %v2106_v60, 0.0  ;;  %v2139_v17 = vsel %vm1346_vm4, %v2107_v9, 0.0 }
 0x30d   : > { %v1133_v41 = vmul.f32 0.014285714, %v1117_v8  ;;  %v1118_v11 = vsub.f32 %v4173_v22, %v2603_v16  ;;  %v1151_v61 = vadd.f32 %v1135_v1, %v1103_v6  ;;  %v1101_v59 = vmul.f32 0.9, %v2602_v15  ;;  %v5001_v15 = vld [vmem:[#allocation26_spill] sm:$0xff]  ;;  %v2268_v28 = vpop.xlane.xlu1 %2267 }
 0x30e   : > { %1203 = vadd.xlane.f32.xlu0 %v1178_v20  ;;  %2183 = vadd.xlane.f32.xlu1 %v2182_v33  ;;  %v955_v37 = vmul.f32 0.6931472, %v2926_v36  ;;  %v2605_v39 = vsel %vm1053_vm0, 1.0, %v4964_v38  ;;  %v969_v57 = vadd.f32 %v951_v30, %v4997_v62  ;;  %v2185_v3 = vadd.f32 %v2139_v17, %v2138_v32 }
 0x30f   : > { %v1183_v55 = vmul.f32 %v1167_v50, %v1151_v61  ;;  %v1165_v35 = vsub.f32 %v968_v49, %v4998_v27  ;;  %v1134_v26 = vmul.f32 0.014285714, %v1118_v11  ;;  %v1120_v19 = vsub.f32 %v4173_v22, %v2605_v39 }
 0x310   : > { %v1149_v45 = vadd.f32 %v1133_v41, %v1101_v59  ;;  %v1102_v2 = vmul.f32 0.9, %v2603_v16  ;;  %v971_v34 = vadd.f32 %v955_v37, %v4999_v31  ;;  %v1166_v56 = vsub.f32 %v969_v57, %v5000_v14 }
 0x311   : > { %v1136_v53 = vmul.f32 0.014285714, %v1120_v19  ;;  %v1104_v58 = vmul.f32 0.9, %v2605_v39  ;;  %2927 = vrsqrt.f32 %v2259_v12  ;;  %v4642_v0 = vpop.xlane.xlu1 %2273  ;;  %vm2307_vm3 = vcmp.eq.f32.partialorder %v2259_v12, inf }
 0x312   : > { %1213 = vadd.xlane.f32.xlu0 %v1183_v55  ;;  %2186 = vadd.xlane.f32.xlu1 %v2185_v3  ;;  %v1181_v4 = vmul.f32 %v1165_v35, %v1149_v45  ;;  %v1150_v38 = vadd.f32 %v1134_v26, %v1102_v2  ;;  %v1168_v47 = vsub.f32 %v971_v34, %v5001_v15  ;;  %2929 = vrsqrt.f32 %v2268_v28 }
 0x313   : > { %v1152_v51 = vadd.f32 %v1136_v53, %v1104_v58  ;;  %v2310_v23 = vand.u32 2147483648, %v2259_v12  ;;  %vm2309_vm5 = vcmp.eq.f32.partialorder %v2259_v12, 0.0  ;;  %vm2328_vm7 = vcmp.eq.f32.partialorder %v2268_v28, inf }
 0x314   : > { %v1182_v44 = vmul.f32 %v1166_v56, %v1150_v38  ;;  %vm2330_vm11 = vcmp.eq.f32.partialorder %v2268_v28, 0.0  ;;  %v2331_v9 = vand.u32 2147483648, %v2268_v28  ;;  %vm2342_vm15 = vcmp.eq.f32.partialorder %v4642_v0, inf }
 0x315   : > { %v1184_v22 = vmul.f32 %v1168_v47, %v1152_v51  ;;  %v4645_v10 = vpop.xlane.xlu1 %2279  ;;  %vm2344_vm2 = vcmp.eq.f32.partialorder %v4642_v0, 0.0  ;;  %v2345_v32 = vand.u32 2147483648, %v4642_v0 }
 0x316   : > { %1209 = vadd.xlane.f32.xlu0 %v1181_v4  ;;  %vm2356_vm12 = vcmp.eq.f32.partialorder %v4645_v10, inf  ;;  %vm2358_vm13 = vcmp.eq.f32.partialorder %v4645_v10, 0.0  ;;  %v2359_v57 = vand.u32 2147483648, %v4645_v10 }
 0x319   : > { %v2142_v49 = vpop.xlane.xlu1 %2141 }
 0x31a   : > { %1211 = vadd.xlane.f32.xlu0 %v1182_v44 }
 0x31d   : > { %v4657_v55 = vpop.xlane.xlu1 %2285 }
 0x31e   : > { %1215 = vadd.xlane.f32.xlu0 %v1184_v22  ;;  %v2928_v29 = vpop.eup %2927 }
 0x31f   : > { %v2306_v13 = vmul.f32 %v2928_v29, %v2259_v12  ;;  %v2930_v42 = vpop.eup %2929 }
 0x320   : > { %v2262_v48 = vpop.xlane.xlu0 %2261  ;;  %v2327_v8 = vmul.f32 %v2930_v42, %v2268_v28 }
 0x321   : > { %2931 = vrsqrt.f32 %v2262_v48  ;;  %v2308_v24 = vsel %vm2307_vm3, %v2259_v12, %v2306_v13  ;;  %vm2314_vm8 = vcmp.eq.f32.partialorder %v2262_v48, inf  ;;  %v2317_v52 = vand.u32 2147483648, %v2262_v48  ;;  %v2148_v38 = vpop.xlane.xlu1 %2147 }
 0x322   : > { %2933 = vrsqrt.f32 %v4642_v0  ;;  %vm2316_vm10 = vcmp.eq.f32.partialorder %v2262_v48, 0.0  ;;  %v2311_v60 = vsel %vm2309_vm5, %v2310_v23, %v2308_v24  ;;  %v2329_v54 = vsel %vm2328_vm7, %v2268_v28, %v2327_v8 }
 0x323   : > { %v2332_v50 = vsel %vm2330_vm11, %v2331_v9, %v2329_v54  ;;  %vm2370_vm7 = vcmp.eq.f32.partialorder %v4657_v55, inf }
 0x324   : > { %v2265_v18 = vpop.xlane.xlu0 %2264 }
 0x325   : > { %2935 = vrsqrt.f32 %v2265_v18  ;;  %vm2321_vm14 = vcmp.eq.f32.partialorder %v2265_v18, inf  ;;  %v2324_v5 = vand.u32 2147483648, %v2265_v18  ;;  %vm2323_vm1 = vcmp.eq.f32.partialorder %v2265_v18, 0.0  ;;  %v4664_v47 = vpop.xlane.xlu1 %2291 }
 0x326   : > { %2937 = vrsqrt.f32 %v4645_v10 }
 0x328   : > { %v2271_v46 = vpop.xlane.xlu0 %2270 }
 0x329   : > { %2939 = vrsqrt.f32 %v2271_v46  ;;  %vm2335_vm6 = vcmp.eq.f32.partialorder %v2271_v46, inf  ;;  %v2338_v59 = vand.u32 2147483648, %v2271_v46  ;;  %vm2337_vm9 = vcmp.eq.f32.partialorder %v2271_v46, 0.0  ;;  %v2154_v12 = vpop.xlane.xlu1 %2153 }
 0x32d   : > { %v2277_v21 = vpop.xlane.xlu0 %2276  ;;  %v4668_v28 = vpop.xlane.xlu1 %2297 }
 0x32e   : > { %2941 = vrsqrt.f32 %v2277_v21  ;;  %v2932_v40 = vpop.eup %2931  ;;  %vm2349_vm4 = vcmp.eq.f32.partialorder %v2277_v21, inf  ;;  %v2352_v45 = vand.u32 2147483648, %v2277_v21  ;;  %vm2351_vm0 = vcmp.eq.f32.partialorder %v2277_v21, 0.0 }
 0x32f   : > { %v2934_v1 = vpop.eup %2933  ;;  %v2313_v7 = vmul.f32 %v2932_v40, %v2262_v48 }
 0x330   : > { %v2341_v33 = vmul.f32 %v2934_v1, %v4642_v0 }
 0x331   : > { %v2315_v16 = vsel %vm2314_vm8, %v2262_v48, %v2313_v7  ;;  %v2160_v48 = vpop.xlane.xlu1 %2159  ;;  %vm2372_vm8 = vcmp.eq.f32.partialorder %v4657_v55, 0.0 }
 0x332   : > { %v2936_v6 = vpop.eup %2935  ;;  %v2318_v36 = vsel %vm2316_vm10, %v2317_v52, %v2315_v16  ;;  %v2343_v11 = vsel %vm2342_vm15, %v4642_v0, %v2341_v33  ;;  %v2283_v15 = vpop.xlane.xlu0 %2282  ;;  %vm2386_vm15 = vcmp.eq.f32.partialorder %v4664_v47, 0.0 }
 0x333   : > { %v2433_v30 = vadd.f32 %v2318_v36, %v2311_v60  ;;  %v2320_v20 = vmul.f32 %v2936_v6, %v2265_v18  ;;  %v2938_v43 = vpop.eup %2937  ;;  %v2346_v26 = vsel %vm2344_vm2, %v2345_v32, %v2343_v11  ;;  %2943 = vrsqrt.f32 %v2283_v15 }
 0x334   : > { %v2355_v37 = vmul.f32 %v2938_v43, %v4645_v10  ;;  %2945 = vrsqrt.f32 %v4657_v55  ;;  %vm2363_vm3 = vcmp.eq.f32.partialorder %v2283_v15, inf  ;;  %v2366_v7 = vand.u32 2147483648, %v2283_v15 }
 0x335   : > { %v2322_v17 = vsel %vm2321_vm14, %v2265_v18, %v2320_v20  ;;  %v4672_v29 = vpop.xlane.xlu1 %2303  ;;  %vm2365_vm5 = vcmp.eq.f32.partialorder %v2283_v15, 0.0  ;;  %v2373_v36 = vand.u32 2147483648, %v4657_v55  ;;  %vm2384_vm14 = vcmp.eq.f32.partialorder %v4664_v47, inf }
 0x336   : > { %v2940_v41 = vpop.eup %2939  ;;  %v2325_v61 = vsel %vm2323_vm1, %v2324_v5, %v2322_v17  ;;  %v2357_v2 = vsel %vm2356_vm12, %v4645_v10, %v2355_v37 }
 0x337   : > { %v2434_v39 = vadd.f32 %v2433_v30, %v2325_v61  ;;  %v2334_v62 = vmul.f32 %v2940_v41, %v2271_v46  ;;  %v2360_v56 = vsel %vm2358_vm13, %v2359_v57, %v2357_v2 }
 0x339   : > { %v2336_v3 = vsel %vm2335_vm6, %v2271_v46, %v2334_v62  ;;  %v2435_v27 = vadd.f32 %v2434_v39, %v2332_v50  ;;  %v2145_v51 = vpop.xlane.xlu0 %2144  ;;  %v4675_v46 = vpop.xlane.xlu1 %2165  ;;  %vm2398_vm6 = vcmp.eq.f32.partialorder %v4668_v28, inf }
 0x33a   : > { %v2339_v19 = vsel %vm2337_vm9, %v2338_v59, %v2336_v3  ;;  %vm2400_vm9 = vcmp.eq.f32.partialorder %v4668_v28, 0.0 }
 0x33b   : > { %v2942_v35 = vpop.eup %2941  ;;  %v2436_v31 = vadd.f32 %v2435_v27, %v2339_v19 }
 0x33c   : > { %v2348_v34 = vmul.f32 %v2942_v35, %v2277_v21 }
 0x33d   : > { %v2437_v14 = vadd.f32 %v2436_v31, %v2346_v26  ;;  %v4666_v22 = vpop.xlane.xlu0 %2288  ;;  %v4680_v42 = vpop.xlane.xlu1 %2168  ;;  %v2387_v26 = vand.u32 2147483648, %v4664_v47 }
 0x33e   : > { %v2350_v4 = vsel %vm2349_vm4, %v2277_v21, %v2348_v34  ;;  %2947 = vrsqrt.f32 %v4666_v22  ;;  %v2188_v21 = vadd.f32 %v2145_v51, %v2142_v49  ;;  %vm2377_vm10 = vcmp.eq.f32.partialorder %v4666_v22, inf }
 0x33f   : > { %v2353_v53 = vsel %vm2351_vm0, %v2352_v45, %v2350_v4  ;;  %2949 = vrsqrt.f32 %v4664_v47  ;;  %v2380_v59 = vand.u32 2147483648, %v4666_v22  ;;  %vm2379_vm11 = vcmp.eq.f32.partialorder %v4666_v22, 0.0 }
 0x340   : > { %v2438_v58 = vadd.f32 %v2437_v14, %v2353_v53  ;;  %v2944_v23 = vpop.eup %2943  ;;  %v2189_v1 = vadd.f32 %v2188_v21, %v2148_v38  ;;  %vm2412_vm4 = vcmp.eq.f32.partialorder %v4672_v29, inf  ;;  %vm2414_vm0 = vcmp.eq.f32.partialorder %v4672_v29, 0.0 }
 0x341   : > { %v2151_v0 = vpop.xlane.xlu0 %2150  ;;  %v2362_v24 = vmul.f32 %v2944_v23, %v2283_v15  ;;  %v2946_v40 = vpop.eup %2945  ;;  %v2401_v23 = vand.u32 2147483648, %v4668_v28 }
 0x342   : > { %v2439_v44 = vadd.f32 %v2438_v58, %v2360_v56  ;;  %v4684_v52 = vpop.xlane.xlu1 %2171  ;;  %v2369_v60 = vmul.f32 %v2946_v40, %v4657_v55  ;;  %v2190_v9 = vadd.f32 %v2189_v1, %v2151_v0 }
 0x343   : > { %v2364_v54 = vsel %vm2363_vm3, %v2283_v15, %v2362_v24  ;;  %vm2460_vm3 = vcmp.eq.s32.totalorder %v3360_v25, 1 }
 0x344   : > { %v2367_v5 = vsel %vm2365_vm5, %v2366_v7, %v2364_v54  ;;  %v2371_v49 = vsel %vm2370_vm7, %v4657_v55, %v2369_v60  ;;  %v2191_v20 = vadd.f32 %v2190_v9, %v2154_v12  ;;  %vm2456_vm5 = vcmp.eq.s32.totalorder %v3360_v25, 0 }
 0x345   : > { %v4670_v18 = vpop.xlane.xlu0 %2294  ;;  %v2440_v41 = vadd.f32 %v2439_v44, %v2367_v5  ;;  %v2374_v61 = vsel %vm2372_vm8, %v2373_v36, %v2371_v49  ;;  %vm2455_vm7 = vcmp.eq.s32.totalorder %v4923_v63, 0 }
 0x346   : > { %2951 = vrsqrt.f32 %v4670_v18  ;;  %vm2391_vm1 = vcmp.eq.f32.partialorder %v4670_v18, inf  ;;  %v2394_v15 = vand.u32 2147483648, %v4670_v18  ;;  %vm2393_vm2 = vcmp.eq.f32.partialorder %v4670_v18, 0.0  ;;  %vm2461_vm8 = vmand %vm2455_vm7, %vm2460_vm3 }
 0x347   : > { %2953 = vrsqrt.f32 %v4668_v28  ;;  %v2441_v27 = vadd.f32 %v2440_v41, %v2374_v61 }
 0x349   : > { %v2157_v10 = vpop.xlane.xlu0 %2156 }
 0x34a   : > { %v2192_v11 = vadd.f32 %v2191_v20, %v2157_v10 }
 0x34b   : > { %v2948_v6 = vpop.eup %2947 }
 0x34c   : > { %v2376_v30 = vmul.f32 %v2948_v6, %v4666_v22  ;;  %v2950_v50 = vpop.eup %2949  ;;  %v2193_v35 = vadd.f32 %v2192_v11, %v2160_v48 }
 0x34d   : > { %v4678_v13 = vpop.xlane.xlu0 %2300  ;;  %v2383_v39 = vmul.f32 %v2950_v50, %v4664_v47 }
 0x34e   : > { %2955 = vrsqrt.f32 %v4678_v13  ;;  %v2378_v62 = vsel %vm2377_vm10, %v4666_v22, %v2376_v30  ;;  %vm2405_vm12 = vcmp.eq.f32.partialorder %v4678_v13, inf  ;;  %vm2407_vm13 = vcmp.eq.f32.partialorder %v4678_v13, 0.0 }
 0x34f   : > { %2957 = vrsqrt.f32 %v4672_v29  ;;  %v2381_v19 = vsel %vm2379_vm11, %v2380_v59, %v2378_v62  ;;  %v2385_v31 = vsel %vm2384_vm14, %v4664_v47, %v2383_v39  ;;  %v2415_v30 = vand.u32 2147483648, %v4672_v29  ;;  %vm2457_vm11 = vmand %vm2455_vm7, %vm2456_vm5 }
 0x350   : > { %v2442_v38 = vadd.f32 %v2441_v27, %v2381_v19  ;;  %v2388_v58 = vsel %vm2386_vm15, %v2387_v26, %v2385_v31  ;;  %vm2464_vm10 = vcmp.eq.s32.totalorder %v3360_v25, 2 }
 0x351   : > { %v2163_v8 = vpop.xlane.xlu0 %2162  ;;  %vm2465_vm14 = vmand %vm2455_vm7, %vm2464_vm10 }
 0x352   : > { %v2194_v4 = vadd.f32 %v2193_v35, %v2163_v8  ;;  %v2443_v10 = vadd.f32 %v2442_v38, %v2388_v58 }
 0x353   : > { %v2952_v55 = vpop.eup %2951 }
 0x354   : > { %v2954_v2 = vpop.eup %2953  ;;  %v2390_v34 = vmul.f32 %v2952_v55, %v4670_v18  ;;  %v2195_v47 = vadd.f32 %v2194_v4, %v4675_v46 }
 0x355   : > { %v2397_v44 = vmul.f32 %v2954_v2, %v4668_v28 }
 0x356   : > { %v2392_v51 = vsel %vm2391_vm1, %v4670_v18, %v2390_v34  ;;  %v2196_v46 = vadd.f32 %v2195_v47, %v4680_v42 }
 0x357   : > { %v2395_v21 = vsel %vm2393_vm2, %v2394_v15, %v2392_v51  ;;  %v2399_v8 = vsel %vm2398_vm6, %v4668_v28, %v2397_v44 }
 0x358   : > { %v2444_v60 = vadd.f32 %v2443_v10, %v2395_v21  ;;  %v2402_v54 = vsel %vm2400_vm9, %v2401_v23, %v2399_v8  ;;  %v2197_v28 = vadd.f32 %v2196_v46, %v4684_v52 }
 0x35a   : > { %v2445_v5 = vadd.f32 %v2444_v60, %v2402_v54 }
 0x35b   : > { %v2956_v0 = vpop.eup %2955 }
 0x35c   : > { %v2958_v24 = vpop.eup %2957  ;;  %v2404_v40 = vmul.f32 %v2956_v0, %v4678_v13 }
 0x35d   : > { %v2411_v9 = vmul.f32 %v2958_v24, %v4672_v29 }
 0x35e   : > { %v2406_v6 = vsel %vm2405_vm12, %v4678_v13, %v2404_v40 }
 0x374   : > { %v1190_v16 = vpop.xlane.xlu0 %1189 }
 0x379   : > { %v1186_v33 = vpop.xlane.xlu1 %1185 }
 0x37b   : > { %v1188_v43 = vpop.xlane.xlu0 %1187 }
 0x37c   : > { %v1217_v32 = vadd.f32 %v1188_v43, %v1186_v33  ;;  %v2413_v43 = vsel %vm2412_vm4, %v4672_v29, %v2411_v9 }
 0x37d   : > { %v1192_v17 = vpop.xlane.xlu1 %1191  ;;  %v2416_v61 = vsel %vm2414_vm0, %v2415_v30, %v2413_v43 }
 0x37e   : > { %v1218_v37 = vadd.f32 %v1217_v32, %v1190_v16  ;;  %v2408_v16 = vand.u32 2147483648, %v4678_v13 }
 0x380   : > { %v1198_v57 = vpop.xlane.xlu0 %1197  ;;  %v1219_v45 = vadd.f32 %v1218_v37, %v1192_v17  ;;  %v2409_v20 = vsel %vm2407_vm13, %v2408_v16, %v2406_v6 }
 0x381   : > { %v1200_v3 = vpop.xlane.xlu1 %1199  ;;  %v2446_v41 = vadd.f32 %v2445_v5, %v2409_v20 }
 0x383   : > { %v2447_v62 = vadd.f32 %v2446_v41, %v2416_v61 }
 0x385   : > { %v1194_v14 = vpop.xlane.xlu0 %1193  ;;  %v2448_v35 = vrot.slane %v2447_v62, 4 }
 0x386   : > { %v1220_v56 = vadd.f32 %v1219_v45, %v1194_v14 }
 0x387   : > { %v1196_v53 = vpop.xlane.xlu1 %1195  ;;  %v2449_v31 = vadd.f32 %v2448_v35, %v2447_v62 }
 0x388   : > { %v1221_v12 = vadd.f32 %v1220_v56, %v1196_v53 }
 0x389   : > { %v2450_v53 = vrot.slane %v2449_v31, 2 }
 0x38a   : > { %v1206_v22 = vpop.xlane.xlu0 %1205  ;;  %v1222_v18 = vadd.f32 %v1221_v12, %v1198_v57 }
 0x38b   : > { %v2175_v48 = vpop.xlane.xlu1 %2174  ;;  %v2451_v15 = vadd.f32 %v2450_v53, %v2449_v31 }
 0x38c   : > { %v1223_v33 = vadd.f32 %v1222_v18, %v1200_v3  ;;  %v2198_v49 = vadd.f32 %v2197_v28, %v2175_v48 }
 0x38f   : > { %v1202_v1 = vpop.xlane.xlu0 %1201  ;;  %v2178_v7 = vpop.xlane.xlu1 %2177 }
 0x390   : > { %v1224_v50 = vadd.f32 %v1223_v33, %v1202_v1  ;;  %v2199_v32 = vadd.f32 %v2198_v49, %v2178_v7 }
 0x393   : > { %v1208_v42 = vpop.xlane.xlu0 %1207  ;;  %v2181_v36 = vpop.xlane.xlu1 %2180 }
 0x394   : > { %v2200_v52 = vadd.f32 %v2199_v32, %v2181_v36 }
 0x397   : > { %v1204_v17 = vpop.xlane.xlu0 %1203  ;;  %v2184_v13 = vpop.xlane.xlu1 %2183 }
 0x398   : > { %v1225_v11 = vadd.f32 %v1224_v50, %v1204_v17  ;;  %v2201_v59 = vadd.f32 %v2200_v52, %v2184_v13 }
 0x39a   : > { %v1226_v57 = vadd.f32 %v1225_v11, %v1206_v22  ;;  %v2452_v22 = vrot.slane %v2451_v15, 1 }
 0x39b   : > { %v1214_v37 = vpop.xlane.xlu0 %1213  ;;  %v2187_v39 = vpop.xlane.xlu1 %2186 }
 0x39c   : > { %v2202_v55 = vadd.f32 %v2201_v59, %v2187_v39  ;;  %v1227_v26 = vadd.f32 %v1226_v57, %v1208_v42  ;;  %v2453_v23 = vadd.f32 %v2452_v22, %v2451_v15 }
 0x39e   : > { %v2203_v3 = vrot.slane %v2202_v55, 4  ;;  %v2466_v40 = vsel %vm2465_vm14, %v2453_v23, 0.0 }
 0x39f   : > { %v1210_v27 = vpop.xlane.xlu0 %1209 }
 0x3a0   : > { %v2204_v29 = vadd.f32 %v2203_v3, %v2202_v55  ;;  %v1228_v19 = vadd.f32 %v1227_v26, %v1210_v27 }
 0x3a2   : > { %v2205_v34 = vrot.slane %v2204_v29, 2 }
 0x3a3   : > { %v1212_v45 = vpop.xlane.xlu0 %1211 }
 0x3a4   : > { %v1229_v2 = vadd.f32 %v1228_v19, %v1212_v45  ;;  %v2206_v38 = vadd.f32 %v2205_v34, %v2204_v29 }
 0x3a6   : > { %v1230_v4 = vadd.f32 %v1229_v2, %v1214_v37  ;;  %v2207_v51 = vrot.slane %v2206_v38, 1 }
 0x3a7   : > { %v1216_v14 = vpop.xlane.xlu0 %1215 }
 0x3a8   : > { %v1231_v56 = vadd.f32 %v1230_v4, %v1216_v14  ;;  %v2208_v0 = vadd.f32 %v2207_v51, %v2206_v38 }
 0x3aa   : > { %v1232_v58 = vrot.slane %v1231_v56, 4  ;;  %v2462_v21 = vsel %vm2461_vm8, %v2208_v0, 0.0 }
 0x3ac   : > { %v1233_v44 = vadd.f32 %v1232_v58, %v1231_v56 }
 0x3ae   : > { %v1234_v47 = vrot.slane %v1233_v44, 2 }
 0x3b0   : > { %v1235_v12 = vadd.f32 %v1234_v47, %v1233_v44 }
 0x3b2   : > { %v1236_v48 = vrot.slane %v1235_v12, 1 }
 0x3b4   : > { %v1237_v10 = vadd.f32 %v1236_v48, %v1235_v12 }
 0x3b6   : > { %v2458_v24 = vsel %vm2457_vm11, %v1237_v10, 0.0 }
 0x3b7   : > { %v2463_v8 = vadd.f32 %v2462_v21, %v2458_v24 }
 0x3b9   : > { %v2467_v63 = vadd.f32 %v2466_v40, %v2463_v8 }
 0x3bb   : > { %2468 = vst [vmem:[%s376_s16] sm:$0xff] %v2467_v63 }
 0x3bc PF: > { %s19_s30 = sadd.s32 1, %s2972_s30  }
 0x3bd   : > { %p16_p5 = scmp.ge.s32.totalorder %s19_s30, 4  }
 0x3bf   :  { %18 = sbr.rel (!%p16_p5) target bundleno = 1 (0x1), region = 92 }

</bundles_post_ra>
